<compile_context>
chip_gen: v7x
topology: tpu7x:2x2x1
jax: 0.10.0
libtpu: 0.0.40
codegen_flags: <defaults>
</compile_context>

<pallas_src>
import functools

import jax
import jax.numpy as jnp
from jax.experimental import pallas as pl
from jax.experimental.pallas import tpu as pltpu


# ---------------------------------------------------------------------------
# Fused kernel: two stages of (conv -> GroupNorm -> ReLU), Bt packed samples
# per grid step.
# ---------------------------------------------------------------------------
def _group_block_kernel(x_ref, t1_ref, t2_ref, consts_ref, mred_ref, mredt_ref,
                        red_ref, redt_ref, o_ref, xpad1_ref, xpad2_ref,
                        *, k, H, W, Bt, C1, C2, eps, n_groups):
    p = k // 2
    Hp = H + 2 * p
    M = Bt * Hp - 2 * p            # packed conv-output rows (incl. junk boundary rows)
    WC1 = W * C1
    WC2 = W * C2
    inv_n = 1.0 / float(H * W * (C2 // n_groups))

    def conv(xpad_ref, t_ref):
        # k row-shifted matmuls: (M, W*Cin)bf16 @ (W*Cin, W*Cout)bf16, f32 acc.
        acc = jnp.dot(xpad_ref[0:M, :].astype(t_ref.dtype), t_ref[0],
                      preferred_element_type=jnp.float32)
        for di in range(1, k):
            acc = acc + jnp.dot(xpad_ref[di:di + M, :].astype(t_ref.dtype), t_ref[di],
                                preferred_element_type=jnp.float32)
        return acc                                            # (M, WC2) f32

    def gn_relu(y, bias_row, gamma_row, beta_row):
        yb = y + bias_row                                     # (M, WC2)
        rmat = red_ref[...]                                   # (Bt, M)  block-ones
        rmatt = redt_ref[...]                                 # (M, Bt)
        # per-sample spatial reduce (MXU) + per-group reduce / broadcast (MXU)
        rowsum = jnp.dot(rmat, yb, preferred_element_type=jnp.float32)       # (Bt, WC2)
        gmean = jnp.dot(rowsum, mred_ref[...],
                        preferred_element_type=jnp.float32) * inv_n          # (Bt, G)
        mean_full = jnp.dot(rmatt,
                            jnp.dot(gmean, mredt_ref[...],
                                    preferred_element_type=jnp.float32),
                            preferred_element_type=jnp.float32)              # (M, WC2)
        d = yb - mean_full                                    # two-pass (exact) variance
        rowsq = jnp.dot(rmat, d * d, preferred_element_type=jnp.float32)
        gvar = jnp.dot(rowsq, mred_ref[...],
                       preferred_element_type=jnp.float32) * inv_n
        rstd_full = jnp.dot(rmatt,
                            jnp.dot(jax.lax.rsqrt(gvar + eps), mredt_ref[...],
                                    preferred_element_type=jnp.float32),
                            preferred_element_type=jnp.float32)              # (M, WC2)
        return jnp.maximum(d * (rstd_full * gamma_row) + beta_row, 0.0)      # ReLU

    # ----- stage 1: in-kernel vertical zero padding of Bt packed samples -----
    zero1 = jnp.zeros((p, WC1), xpad1_ref.dtype)
    for s in range(Bt):
        base = s * Hp
        xpad1_ref[base:base + p, :] = zero1
        xpad1_ref[base + p + H:base + Hp, :] = zero1
        xpad1_ref[base + p:base + p + H, :] = x_ref[s]
    y1 = gn_relu(conv(xpad1_ref, t1_ref),
                 consts_ref[0:1, :], consts_ref[1:2, :], consts_ref[2:3, :])

    # ----- stage 2: intermediate activation stays in VMEM ---------------------
    zero2 = jnp.zeros((p, WC2), xpad2_ref.dtype)
    for s in range(Bt):
        base = s * Hp
        xpad2_ref[base:base + p, :] = zero2
        xpad2_ref[base + p + H:base + Hp, :] = zero2
        xpad2_ref[base + p:base + p + H, :] = y1[base:base + H, :]
    y2 = gn_relu(conv(xpad2_ref, t2_ref),
                 consts_ref[3:4, :], consts_ref[4:5, :], consts_ref[5:6, :])

    # lane-dense (H, WC2) store per sample; junk boundary rows are dropped
    for s in range(Bt):
        o_ref[s] = y2[s * Hp:s * Hp + H, :].astype(o_ref.dtype)


# ---------------------------------------------------------------------------
# Plain-JAX glue: p4 weight folding, Toeplitz conv weights, packed constants.
# ---------------------------------------------------------------------------
def p4_effective_weight(w):
    """w: (Cout, Cin, |G|, k, k) p4 group-conv weight
    -> effective OIHW conv weight (Cout*|G|, Cin*|G|, k, k),
       out index = co*|G| + r, in index = ci*|G| + g."""
    C_out, C_in, G, k, _ = w.shape
    per_r = []
    for r in range(G):
        wr = jnp.rot90(w, k=r, axes=(-2, -1))   # rotate filter spatially by r*90deg
        wr = jnp.roll(wr, shift=r, axis=2)      # cyclic shift of filter group axis
        per_r.append(wr)
    w_all = jnp.stack(per_r, axis=1)            # (Cout, G_out, Cin, G_in, k, k)
    return w_all.reshape(C_out * G, C_in * G, k, k)


def build_toeplitz(w_hwio, W):
    """(k, k, Cin, Cout) HWIO weights -> per-row-tap Toeplitz matmul weights
    (k, W*Cin, W*Cout):  T[a, u*Cin+c, j*Cout+o] = w[a, u-j+p, c, o] inside the
    k-band, 0 outside -- encodes the horizontal taps AND the horizontal 'same'
    zero padding, so the matmul input row is just the raw (W*Cin,) image row."""
    k, _, Cin, Cout = w_hwio.shape
    p = k // 2
    u = jnp.arange(W)
    sel = (u[:, None, None] ==
           (u[None, :, None] + jnp.arange(k)[None, None, :] - p)).astype(w_hwio.dtype)
    T = jnp.einsum('ujd,adco->aucjo', sel, w_hwio)           # (k, W, Cin, W, Cout)
    return T.reshape(k, W * Cin, W * Cout)


def make_params(key, C_in, C_out, G, k):
    k1, k2, k3, k4 = jax.random.split(key, 4)
    w1 = jax.random.normal(k1, (C_out, C_in, G, k, k), jnp.float32) / jnp.sqrt(C_in * G * k * k)
    b1 = 0.1 * jax.random.normal(k2, (C_out,), jnp.float32)
    w2 = jax.random.normal(k3, (C_out, C_out, G, k, k), jnp.float32) / jnp.sqrt(C_out * G * k * k)
    b2 = 0.1 * jax.random.normal(k4, (C_out,), jnp.float32)
    return dict(w1=w1, b1=b1, w2=w2, b2=b2,
                gamma1=jnp.ones((C_out,), jnp.float32), beta1=jnp.zeros((C_out,), jnp.float32),
                gamma2=jnp.ones((C_out,), jnp.float32), beta2=jnp.zeros((C_out,), jnp.float32))


def prepare_group_block(params, *, W, n_groups=4, compute_dtype=jnp.bfloat16):
    """Hoisted (once per weight set) kernel-constant preparation: folded p4
    Toeplitz weights in bf16 + packed GN/bias constants + group one-hots."""
    C_out, C_in, G, k, _ = params["w1"].shape
    CoutG = C_out * G

    w1 = jnp.transpose(p4_effective_weight(params["w1"]), (2, 3, 1, 0))   # HWIO
    w2 = jnp.transpose(p4_effective_weight(params["w2"]), (2, 3, 1, 0))
    T1 = build_toeplitz(w1, W).astype(compute_dtype)          # (k, W*CinG, W*CoutG)
    T2 = build_toeplitz(w2, W).astype(compute_dtype)          # (k, W*CoutG, W*CoutG)

    # bias/gamma/beta packed into ONE lane-aligned (6, W*CoutG) f32 block
    def lane_tile(v):
        return jnp.tile(jnp.repeat(v, G), (W,))               # lane = j*CoutG + c*G + g
    consts = jnp.stack([
        lane_tile(params["b1"]), lane_tile(params["gamma1"]), lane_tile(params["beta1"]),
        lane_tile(params["b2"]), lane_tile(params["gamma2"]), lane_tile(params["beta2"]),
    ]).astype(jnp.float32)

    # one-hot lane -> group matrices for GroupNorm reductions / broadcasts
    cpg = CoutG // n_groups
    lane_group = (jnp.arange(W * CoutG) % CoutG) // cpg
    mred = (lane_group[:, None] == jnp.arange(n_groups)[None, :]).astype(jnp.float32)

    return dict(T1=T1, T2=T2, consts=consts, mred=mred, mredt=mred.T,
                meta=dict(k=int(k), G=int(G), Cin=int(C_in), Cout=int(C_out),
                          W=int(W), n_groups=int(n_groups)))


def group_block_forward(x, prep, *, eps=1e-5):
    """GroupBlock.forward. x: (B, C_in, |G|, H, W) -> (B, C_out, |G|, H, W)."""
    B, Cin, G, H, W = x.shape
    meta = prep["meta"]
    assert (Cin, G, W) == (meta["Cin"], meta["G"], meta["W"])
    k, Cout, n_groups = meta["k"], meta["Cout"], meta["n_groups"]
    CinG, CoutG = Cin * G, Cout * G
    WC1, WC2 = W * CinG, W * CoutG
    p = k // 2
    Hp = H + 2 * p

    # Pack Bt samples per grid step so the conv matmul M-dim approaches the MXU
    # row count (<= 256) while keeping grid = B // Bt steps for megacore/pipelining.
    Bt = 1
    for d in range(1, B + 1):
        if B % d == 0 and d * Hp <= 256:
            Bt = d
    M_out = Bt * Hp - 2 * p

    # block-ones per-sample row-reduce matrix (and its transpose for broadcast):
    # excludes the 2p junk conv-output rows at each sample boundary.
    rows = jnp.arange(M_out)[None, :]
    base = (jnp.arange(Bt) * Hp)[:, None]
    red = ((rows >= base) & (rows < base + H)).astype(jnp.float32)   # (Bt, M_out)
    redt = red.T                                                     # (M_out, Bt)

    # (B, Cin, G, H, W) -> lane-flattened rows (B, H, W*CinG)
    x2 = jnp.transpose(x.reshape(B, CinG, H, W), (0, 2, 3, 1)).reshape(B, H, WC1)

    kern = functools.partial(_group_block_kernel, k=k, H=H, W=W, Bt=Bt,
                             C1=CinG, C2=CoutG, eps=eps, n_groups=n_groups)

    out = pl.pallas_call(
        kern,
        out_shape=jax.ShapeDtypeStruct((B, H, WC2), jnp.float32),
        grid=(B // Bt,),
        in_specs=[
            pl.BlockSpec((Bt, H, WC1), lambda b: (b, 0, 0)),
            # grid-invariant weights/constants: constant index_map => fetched once
            pl.BlockSpec((k, WC1, WC2), lambda b: (0, 0, 0)),
            pl.BlockSpec((k, WC2, WC2), lambda b: (0, 0, 0)),
            pl.BlockSpec((6, WC2), lambda b: (0, 0)),
            pl.BlockSpec((WC2, n_groups), lambda b: (0, 0)),
            pl.BlockSpec((n_groups, WC2), lambda b: (0, 0)),
            pl.BlockSpec((Bt, M_out), lambda b: (0, 0)),
            pl.BlockSpec((M_out, Bt), lambda b: (0, 0)),
        ],
        out_specs=pl.BlockSpec((Bt, H, WC2), lambda b: (b, 0, 0)),
        scratch_shapes=[pltpu.VMEM((Bt * Hp, WC1), jnp.float32),
                        pltpu.VMEM((Bt * Hp, WC2), jnp.float32)],
        compiler_params=pltpu.CompilerParams(
            dimension_semantics=("parallel",),
            # 48 MiB: headroom under v7x's 64 MiB/TC; raise toward ~100 MiB on
            # v5e/v6e (128 MiB) when growing the per-step activation block.
            vmem_limit_bytes=48 * 1024 * 1024),
    )(x2, prep["T1"], prep["T2"], prep["consts"], prep["mred"], prep["mredt"],
      red, redt)

    out = out.reshape(B, H, W, CoutG)
    return jnp.transpose(out, (0, 3, 1, 2)).reshape(B, Cout, G, H, W)


# ---------------------------------------------------------------------------
# Pure-JAX reference (correctness check), f32 throughout.
# ---------------------------------------------------------------------------
def reference_forward(x, params, n_groups=4, eps=1e-5):
    B, Cin, G, H, W = x.shape
    Cout = params["w1"].shape[0]

    def conv(xc, w_eff, b_eff):
        y = jax.lax.conv_general_dilated(
            xc, w_eff, (1, 1), "SAME",
            dimension_numbers=("NCHW", "OIHW", "NCHW"),
            precision=jax.lax.Precision.HIGHEST)
        return y + b_eff[None, :, None, None]

    def gn(y, gamma_eff, beta_eff):
        Bc, C, Hh, Ww = y.shape
        yg = y.reshape(Bc, n_groups, C // n_groups, Hh, Ww)
        mu = yg.mean(axis=(2, 3, 4), keepdims=True)
        var = yg.var(axis=(2, 3, 4), keepdims=True)
        yn = ((yg - mu) / jnp.sqrt(var + eps)).reshape(Bc, C, Hh, Ww)
        return yn * gamma_eff[None, :, None, None] + beta_eff[None, :, None, None]

    x_eff = x.reshape(B, Cin * G, H, W)
    y = jax.nn.relu(gn(conv(x_eff, p4_effective_weight(params["w1"]), jnp.repeat(params["b1"], G)),
                       jnp.repeat(params["gamma1"], G), jnp.repeat(params["beta1"], G)))
    y = jax.nn.relu(gn(conv(y, p4_effective_weight(params["w2"]), jnp.repeat(params["b2"], G)),
                       jnp.repeat(params["gamma2"], G), jnp.repeat(params["beta2"], G)))
    return y.reshape(B, Cout, G, H, W)


if __name__ == "__main__":
    B, C_in, C_out, G, k, H, W = 2, 4, 8, 4, 3, 16, 16
    key = jax.random.PRNGKey(0)
    kp, kx = jax.random.split(key)
    params = make_params(kp, C_in, C_out, G, k)
    x = jax.random.normal(kx, (B, C_in, G, H, W), jnp.float32)

    prep = prepare_group_block(params, W=W)   # hoisted: once per weight set
    out = jax.block_until_ready(group_block_forward(x, prep))
    assert out.shape == (B, C_out, G, H, W), out.shape

    ref = jax.block_until_ready(reference_forward(x, params))
    max_err = float(jnp.max(jnp.abs(out - ref)))
    # tolerance widened vs f32 version: conv operands/weights are bf16 (GN is f32)
    assert jnp.allclose(out, ref, atol=5e-2, rtol=5e-2), f"max abs err {max_err}"

    print("KERNEL_OK")
</pallas_src>

<mosaic_0001>
module attributes {stable_mosaic.version = 11 : i64} {
  func.func @_group_block_kernel(%arg0: i32, %arg1: memref<2x16x256xf32, #tpu.memory_space<vmem>>, %arg2: memref<3x256x512xbf16, #tpu.memory_space<vmem>>, %arg3: memref<3x512x512xbf16, #tpu.memory_space<vmem>>, %arg4: memref<6x512xf32, #tpu.memory_space<vmem>>, %arg5: memref<512x4xf32, #tpu.memory_space<vmem>>, %arg6: memref<4x512xf32, #tpu.memory_space<vmem>>, %arg7: memref<2x34xf32, #tpu.memory_space<vmem>>, %arg8: memref<34x2xf32, #tpu.memory_space<vmem>>, %arg9: memref<2x16x512xf32, #tpu.memory_space<vmem>>, %arg10: memref<36x256xf32, #tpu.memory_space<vmem>>, %arg11: memref<36x512xf32, #tpu.memory_space<vmem>>) attributes {dimension_semantics = [#tpu.dimension_semantics<parallel>], iteration_bounds = array<i64: 1>, scalar_prefetch = 0 : i64, scratch_operands = 2 : i64, tpu.core_type = #tpu.core_type<tc>, window_params = [{transform_indices = @transform_0, window_bounds = array<i64: 2, 16, 256>}, {pipeline_mode = #tpu.pipeline_mode<synchronous>, transform_indices = @transform_1, window_bounds = array<i64: 3, 256, 512>}, {pipeline_mode = #tpu.pipeline_mode<synchronous>, transform_indices = @transform_2, window_bounds = array<i64: 3, 512, 512>}, {pipeline_mode = #tpu.pipeline_mode<synchronous>, transform_indices = @transform_3, window_bounds = array<i64: 6, 512>}, {pipeline_mode = #tpu.pipeline_mode<synchronous>, transform_indices = @transform_4, window_bounds = array<i64: 512, 4>}, {pipeline_mode = #tpu.pipeline_mode<synchronous>, transform_indices = @transform_5, window_bounds = array<i64: 4, 512>}, {pipeline_mode = #tpu.pipeline_mode<synchronous>, transform_indices = @transform_6, window_bounds = array<i64: 2, 34>}, {pipeline_mode = #tpu.pipeline_mode<synchronous>, transform_indices = @transform_7, window_bounds = array<i64: 34, 2>}, {transform_indices = @transform_8, window_bounds = array<i64: 2, 16, 512>}]} {
    %cst = arith.constant 0.000000e+00 : f32
    %0 = vector.broadcast %cst : f32 to vector<1x256xf32>
    %c0 = arith.constant 0 : index
    %c0_0 = arith.constant 0 : index
    %1 = vector.load %arg10[%c0, %c0_0] : memref<36x256xf32, #tpu.memory_space<vmem>>, vector<1x256xf32>
    tpu.vector_store %arg10[%c0, %c0_0], %0 {strides = array<i32>} : memref<36x256xf32, #tpu.memory_space<vmem>>, vector<1x256xf32>,
    %c17 = arith.constant 17 : index
    %c0_1 = arith.constant 0 : index
    %2 = vector.load %arg10[%c17, %c0_1] : memref<36x256xf32, #tpu.memory_space<vmem>>, vector<1x256xf32>
    tpu.vector_store %arg10[%c17, %c0_1], %0 {strides = array<i32>} : memref<36x256xf32, #tpu.memory_space<vmem>>, vector<1x256xf32>,
    %c0_2 = arith.constant 0 : index
    %c0_3 = arith.constant 0 : index
    %c0_4 = arith.constant 0 : index
    %3 = vector.load %arg1[%c0_2, %c0_3, %c0_4] : memref<2x16x256xf32, #tpu.memory_space<vmem>>, vector<1x16x256xf32>
    %4 = vector.shape_cast %3 : vector<1x16x256xf32> to vector<16x256xf32>
    %c1 = arith.constant 1 : index
    %c0_5 = arith.constant 0 : index
    %5 = vector.load %arg10[%c1, %c0_5] : memref<36x256xf32, #tpu.memory_space<vmem>>, vector<16x256xf32>
    tpu.vector_store %arg10[%c1, %c0_5], %4 {strides = array<i32>} : memref<36x256xf32, #tpu.memory_space<vmem>>, vector<16x256xf32>,
    %c18 = arith.constant 18 : index
    %c0_6 = arith.constant 0 : index
    %6 = vector.load %arg10[%c18, %c0_6] : memref<36x256xf32, #tpu.memory_space<vmem>>, vector<1x256xf32>
    tpu.vector_store %arg10[%c18, %c0_6], %0 {strides = array<i32>} : memref<36x256xf32, #tpu.memory_space<vmem>>, vector<1x256xf32>,
    %c35 = arith.constant 35 : index
    %c0_7 = arith.constant 0 : index
    %7 = vector.load %arg10[%c35, %c0_7] : memref<36x256xf32, #tpu.memory_space<vmem>>, vector<1x256xf32>
    tpu.vector_store %arg10[%c35, %c0_7], %0 {strides = array<i32>} : memref<36x256xf32, #tpu.memory_space<vmem>>, vector<1x256xf32>,
    %c1_8 = arith.constant 1 : index
    %c0_9 = arith.constant 0 : index
    %c0_10 = arith.constant 0 : index
    %8 = vector.load %arg1[%c1_8, %c0_9, %c0_10] : memref<2x16x256xf32, #tpu.memory_space<vmem>>, vector<1x16x256xf32>
    %9 = vector.shape_cast %8 : vector<1x16x256xf32> to vector<16x256xf32>
    %c19 = arith.constant 19 : index
    %c0_11 = arith.constant 0 : index
    %10 = vector.load %arg10[%c19, %c0_11] : memref<36x256xf32, #tpu.memory_space<vmem>>, vector<16x256xf32>
    tpu.vector_store %arg10[%c19, %c0_11], %9 {strides = array<i32>} : memref<36x256xf32, #tpu.memory_space<vmem>>, vector<16x256xf32>,
    %c0_12 = arith.constant 0 : index
    %c0_13 = arith.constant 0 : index
    %11 = vector.load %arg10[%c0_12, %c0_13] : memref<36x256xf32, #tpu.memory_space<vmem>>, vector<34x256xf32>
    %12 = arith.truncf %11 : vector<34x256xf32> to vector<34x256xbf16>
    %c0_14 = arith.constant 0 : index
    %c0_15 = arith.constant 0 : index
    %c0_16 = arith.constant 0 : index
    %13 = vector.load %arg2[%c0_14, %c0_15, %c0_16] : memref<3x256x512xbf16, #tpu.memory_space<vmem>>, vector<1x256x512xbf16>
    %14 = vector.shape_cast %13 : vector<1x256x512xbf16> to vector<256x512xbf16>
    %cst_17 = arith.constant dense<0.000000e+00> : vector<34x512xf32>
    %15 = tpu.matmul %12, %14, %cst_17 {dimension_numbers = #tpu.dot_dimension_numbers<[1], [0], [0], [1], [0, 0, 1, 1], [], []>} : vector<34x256xbf16>, vector<256x512xbf16>, vector<34x512xf32> -> vector<34x512xf32>
    %c1_18 = arith.constant 1 : index
    %c0_19 = arith.constant 0 : index
    %16 = vector.load %arg10[%c1_18, %c0_19] : memref<36x256xf32, #tpu.memory_space<vmem>>, vector<34x256xf32>
    %17 = arith.truncf %16 : vector<34x256xf32> to vector<34x256xbf16>
    %c1_20 = arith.constant 1 : index
    %c0_21 = arith.constant 0 : index
    %c0_22 = arith.constant 0 : index
    %18 = vector.load %arg2[%c1_20, %c0_21, %c0_22] : memref<3x256x512xbf16, #tpu.memory_space<vmem>>, vector<1x256x512xbf16>
    %19 = vector.shape_cast %18 : vector<1x256x512xbf16> to vector<256x512xbf16>
    %cst_23 = arith.constant dense<0.000000e+00> : vector<34x512xf32>
    %20 = tpu.matmul %17, %19, %cst_23 {dimension_numbers = #tpu.dot_dimension_numbers<[1], [0], [0], [1], [0, 0, 1, 1], [], []>} : vector<34x256xbf16>, vector<256x512xbf16>, vector<34x512xf32> -> vector<34x512xf32>
    %21 = arith.addf %15, %20 : vector<34x512xf32>
    %c2 = arith.constant 2 : index
    %c0_24 = arith.constant 0 : index
    %22 = vector.load %arg10[%c2, %c0_24] : memref<36x256xf32, #tpu.memory_space<vmem>>, vector<34x256xf32>
    %23 = arith.truncf %22 : vector<34x256xf32> to vector<34x256xbf16>
    %c2_25 = arith.constant 2 : index
    %c0_26 = arith.constant 0 : index
    %c0_27 = arith.constant 0 : index
    %24 = vector.load %arg2[%c2_25, %c0_26, %c0_27] : memref<3x256x512xbf16, #tpu.memory_space<vmem>>, vector<1x256x512xbf16>
    %25 = vector.shape_cast %24 : vector<1x256x512xbf16> to vector<256x512xbf16>
    %cst_28 = arith.constant dense<0.000000e+00> : vector<34x512xf32>
    %26 = tpu.matmul %23, %25, %cst_28 {dimension_numbers = #tpu.dot_dimension_numbers<[1], [0], [0], [1], [0, 0, 1, 1], [], []>} : vector<34x256xbf16>, vector<256x512xbf16>, vector<34x512xf32> -> vector<34x512xf32>
    %27 = arith.addf %21, %26 : vector<34x512xf32>
    %c0_29 = arith.constant 0 : index
    %c0_30 = arith.constant 0 : index
    %28 = vector.load %arg4[%c0_29, %c0_30] : memref<6x512xf32, #tpu.memory_space<vmem>>, vector<1x512xf32>
    %c1_31 = arith.constant 1 : index
    %c0_32 = arith.constant 0 : index
    %29 = vector.load %arg4[%c1_31, %c0_32] : memref<6x512xf32, #tpu.memory_space<vmem>>, vector<1x512xf32>
    %c2_33 = arith.constant 2 : index
    %c0_34 = arith.constant 0 : index
    %30 = vector.load %arg4[%c2_33, %c0_34] : memref<6x512xf32, #tpu.memory_space<vmem>>, vector<1x512xf32>
    %31 = vector.broadcast %28 : vector<1x512xf32> to vector<34x512xf32>
    %32 = arith.addf %27, %31 : vector<34x512xf32>
    %c0_35 = arith.constant 0 : index
    %c0_36 = arith.constant 0 : index
    %33 = vector.load %arg7[%c0_35, %c0_36] : memref<2x34xf32, #tpu.memory_space<vmem>>, vector<2x34xf32>
    %c0_37 = arith.constant 0 : index
    %c0_38 = arith.constant 0 : index
    %34 = vector.load %arg8[%c0_37, %c0_38] : memref<34x2xf32, #tpu.memory_space<vmem>>, vector<34x2xf32>
    %cst_39 = arith.constant dense<0.000000e+00> : vector<2x512xf32>
    %35 = tpu.matmul %33, %32, %cst_39 {dimension_numbers = #tpu.dot_dimension_numbers<[1], [0], [0], [1], [0, 0, 1, 1], [], []>} : vector<2x34xf32>, vector<34x512xf32>, vector<2x512xf32> -> vector<2x512xf32>
    %c0_40 = arith.constant 0 : index
    %c0_41 = arith.constant 0 : index
    %36 = vector.load %arg5[%c0_40, %c0_41] : memref<512x4xf32, #tpu.memory_space<vmem>>, vector<512x4xf32>
    %cst_42 = arith.constant dense<0.000000e+00> : vector<2x4xf32>
    %37 = tpu.matmul %35, %36, %cst_42 {dimension_numbers = #tpu.dot_dimension_numbers<[1], [0], [0], [1], [0, 0, 1, 1], [], []>} : vector<2x512xf32>, vector<512x4xf32>, vector<2x4xf32> -> vector<2x4xf32>
    %cst_43 = arith.constant 4.8828125E-4 : f32
    %38 = vector.broadcast %cst_43 : f32 to vector<2x4xf32>
    %39 = arith.mulf %37, %38 : vector<2x4xf32>
    %c0_44 = arith.constant 0 : index
    %c0_45 = arith.constant 0 : index
    %40 = vector.load %arg6[%c0_44, %c0_45] : memref<4x512xf32, #tpu.memory_space<vmem>>, vector<4x512xf32>
    %cst_46 = arith.constant dense<0.000000e+00> : vector<2x512xf32>
    %41 = tpu.matmul %39, %40, %cst_46 {dimension_numbers = #tpu.dot_dimension_numbers<[1], [0], [0], [1], [0, 0, 1, 1], [], []>} : vector<2x4xf32>, vector<4x512xf32>, vector<2x512xf32> -> vector<2x512xf32>
    %cst_47 = arith.constant dense<0.000000e+00> : vector<34x512xf32>
    %42 = tpu.matmul %34, %41, %cst_47 {dimension_numbers = #tpu.dot_dimension_numbers<[1], [0], [0], [1], [0, 0, 1, 1], [], []>} : vector<34x2xf32>, vector<2x512xf32>, vector<34x512xf32> -> vector<34x512xf32>
    %43 = arith.subf %32, %42 : vector<34x512xf32>
    %44 = arith.mulf %43, %43 : vector<34x512xf32>
    %cst_48 = arith.constant dense<0.000000e+00> : vector<2x512xf32>
    %45 = tpu.matmul %33, %44, %cst_48 {dimension_numbers = #tpu.dot_dimension_numbers<[1], [0], [0], [1], [0, 0, 1, 1], [], []>} : vector<2x34xf32>, vector<34x512xf32>, vector<2x512xf32> -> vector<2x512xf32>
    %c0_49 = arith.constant 0 : index
    %c0_50 = arith.constant 0 : index
    %46 = vector.load %arg5[%c0_49, %c0_50] : memref<512x4xf32, #tpu.memory_space<vmem>>, vector<512x4xf32>
    %cst_51 = arith.constant dense<0.000000e+00> : vector<2x4xf32>
    %47 = tpu.matmul %45, %46, %cst_51 {dimension_numbers = #tpu.dot_dimension_numbers<[1], [0], [0], [1], [0, 0, 1, 1], [], []>} : vector<2x512xf32>, vector<512x4xf32>, vector<2x4xf32> -> vector<2x4xf32>
    %cst_52 = arith.constant 4.8828125E-4 : f32
    %48 = vector.broadcast %cst_52 : f32 to vector<2x4xf32>
    %49 = arith.mulf %47, %48 : vector<2x4xf32>
    %cst_53 = arith.constant 9.99999974E-6 : f32
    %50 = vector.broadcast %cst_53 : f32 to vector<2x4xf32>
    %51 = arith.addf %49, %50 : vector<2x4xf32>
    %52 = math.rsqrt %51 : vector<2x4xf32>
    %c0_54 = arith.constant 0 : index
    %c0_55 = arith.constant 0 : index
    %53 = vector.load %arg6[%c0_54, %c0_55] : memref<4x512xf32, #tpu.memory_space<vmem>>, vector<4x512xf32>
    %cst_56 = arith.constant dense<0.000000e+00> : vector<2x512xf32>
    %54 = tpu.matmul %52, %53, %cst_56 {dimension_numbers = #tpu.dot_dimension_numbers<[1], [0], [0], [1], [0, 0, 1, 1], [], []>} : vector<2x4xf32>, vector<4x512xf32>, vector<2x512xf32> -> vector<2x512xf32>
    %cst_57 = arith.constant dense<0.000000e+00> : vector<34x512xf32>
    %55 = tpu.matmul %34, %54, %cst_57 {dimension_numbers = #tpu.dot_dimension_numbers<[1], [0], [0], [1], [0, 0, 1, 1], [], []>} : vector<34x2xf32>, vector<2x512xf32>, vector<34x512xf32> -> vector<34x512xf32>
    %56 = vector.broadcast %29 : vector<1x512xf32> to vector<34x512xf32>
    %57 = arith.mulf %55, %56 : vector<34x512xf32>
    %58 = arith.mulf %43, %57 : vector<34x512xf32>
    %59 = vector.broadcast %30 : vector<1x512xf32> to vector<34x512xf32>
    %60 = arith.addf %58, %59 : vector<34x512xf32>
    %cst_58 = arith.constant 0.000000e+00 : f32
    %61 = vector.broadcast %cst_58 : f32 to vector<34x512xf32>
    %62 = arith.maximumf %60, %61 : vector<34x512xf32>
    %cst_59 = arith.constant 0.000000e+00 : f32
    %63 = vector.broadcast %cst_59 : f32 to vector<1x512xf32>
    %c0_60 = arith.constant 0 : index
    %c0_61 = arith.constant 0 : index
    %64 = vector.load %arg11[%c0_60, %c0_61] : memref<36x512xf32, #tpu.memory_space<vmem>>, vector<1x512xf32>
    tpu.vector_store %arg11[%c0_60, %c0_61], %63 {strides = array<i32>} : memref<36x512xf32, #tpu.memory_space<vmem>>, vector<1x512xf32>,
    %c17_62 = arith.constant 17 : index
    %c0_63 = arith.constant 0 : index
    %65 = vector.load %arg11[%c17_62, %c0_63] : memref<36x512xf32, #tpu.memory_space<vmem>>, vector<1x512xf32>
    tpu.vector_store %arg11[%c17_62, %c0_63], %63 {strides = array<i32>} : memref<36x512xf32, #tpu.memory_space<vmem>>, vector<1x512xf32>,
    %66 = vector.extract_strided_slice %62 {offsets = [0, 0], sizes = [16, 512], strides = [1, 1]} : vector<34x512xf32> to vector<16x512xf32>
    %c1_64 = arith.constant 1 : index
    %c0_65 = arith.constant 0 : index
    %67 = vector.load %arg11[%c1_64, %c0_65] : memref<36x512xf32, #tpu.memory_space<vmem>>, vector<16x512xf32>
    tpu.vector_store %arg11[%c1_64, %c0_65], %66 {strides = array<i32>} : memref<36x512xf32, #tpu.memory_space<vmem>>, vector<16x512xf32>,
    %c18_66 = arith.constant 18 : index
    %c0_67 = arith.constant 0 : index
    %68 = vector.load %arg11[%c18_66, %c0_67] : memref<36x512xf32, #tpu.memory_space<vmem>>, vector<1x512xf32>
    tpu.vector_store %arg11[%c18_66, %c0_67], %63 {strides = array<i32>} : memref<36x512xf32, #tpu.memory_space<vmem>>, vector<1x512xf32>,
    %c35_68 = arith.constant 35 : index
    %c0_69 = arith.constant 0 : index
    %69 = vector.load %arg11[%c35_68, %c0_69] : memref<36x512xf32, #tpu.memory_space<vmem>>, vector<1x512xf32>
    tpu.vector_store %arg11[%c35_68, %c0_69], %63 {strides = array<i32>} : memref<36x512xf32, #tpu.memory_space<vmem>>, vector<1x512xf32>,
    %70 = vector.extract_strided_slice %62 {offsets = [18, 0], sizes = [16, 512], strides = [1, 1]} : vector<34x512xf32> to vector<16x512xf32>
    %c19_70 = arith.constant 19 : index
    %c0_71 = arith.constant 0 : index
    %71 = vector.load %arg11[%c19_70, %c0_71] : memref<36x512xf32, #tpu.memory_space<vmem>>, vector<16x512xf32>
    tpu.vector_store %arg11[%c19_70, %c0_71], %70 {strides = array<i32>} : memref<36x512xf32, #tpu.memory_space<vmem>>, vector<16x512xf32>,
    %c0_72 = arith.constant 0 : index
    %c0_73 = arith.constant 0 : index
    %72 = vector.load %arg11[%c0_72, %c0_73] : memref<36x512xf32, #tpu.memory_space<vmem>>, vector<34x512xf32>
    %73 = arith.truncf %72 : vector<34x512xf32> to vector<34x512xbf16>
    %c0_74 = arith.constant 0 : index
    %c0_75 = arith.constant 0 : index
    %c0_76 = arith.constant 0 : index
    %74 = vector.load %arg3[%c0_74, %c0_75, %c0_76] : memref<3x512x512xbf16, #tpu.memory_space<vmem>>, vector<1x512x512xbf16>
    %75 = vector.shape_cast %74 : vector<1x512x512xbf16> to vector<512x512xbf16>
    %cst_77 = arith.constant dense<0.000000e+00> : vector<34x512xf32>
    %76 = tpu.matmul %73, %75, %cst_77 {dimension_numbers = #tpu.dot_dimension_numbers<[1], [0], [0], [1], [0, 0, 1, 1], [], []>} : vector<34x512xbf16>, vector<512x512xbf16>, vector<34x512xf32> -> vector<34x512xf32>
    %c1_78 = arith.constant 1 : index
    %c0_79 = arith.constant 0 : index
    %77 = vector.load %arg11[%c1_78, %c0_79] : memref<36x512xf32, #tpu.memory_space<vmem>>, vector<34x512xf32>
    %78 = arith.truncf %77 : vector<34x512xf32> to vector<34x512xbf16>
    %c1_80 = arith.constant 1 : index
    %c0_81 = arith.constant 0 : index
    %c0_82 = arith.constant 0 : index
    %79 = vector.load %arg3[%c1_80, %c0_81, %c0_82] : memref<3x512x512xbf16, #tpu.memory_space<vmem>>, vector<1x512x512xbf16>
    %80 = vector.shape_cast %79 : vector<1x512x512xbf16> to vector<512x512xbf16>
    %cst_83 = arith.constant dense<0.000000e+00> : vector<34x512xf32>
    %81 = tpu.matmul %78, %80, %cst_83 {dimension_numbers = #tpu.dot_dimension_numbers<[1], [0], [0], [1], [0, 0, 1, 1], [], []>} : vector<34x512xbf16>, vector<512x512xbf16>, vector<34x512xf32> -> vector<34x512xf32>
    %82 = arith.addf %76, %81 : vector<34x512xf32>
    %c2_84 = arith.constant 2 : index
    %c0_85 = arith.constant 0 : index
    %83 = vector.load %arg11[%c2_84, %c0_85] : memref<36x512xf32, #tpu.memory_space<vmem>>, vector<34x512xf32>
    %84 = arith.truncf %83 : vector<34x512xf32> to vector<34x512xbf16>
    %c2_86 = arith.constant 2 : index
    %c0_87 = arith.constant 0 : index
    %c0_88 = arith.constant 0 : index
    %85 = vector.load %arg3[%c2_86, %c0_87, %c0_88] : memref<3x512x512xbf16, #tpu.memory_space<vmem>>, vector<1x512x512xbf16>
    %86 = vector.shape_cast %85 : vector<1x512x512xbf16> to vector<512x512xbf16>
    %cst_89 = arith.constant dense<0.000000e+00> : vector<34x512xf32>
    %87 = tpu.matmul %84, %86, %cst_89 {dimension_numbers = #tpu.dot_dimension_numbers<[1], [0], [0], [1], [0, 0, 1, 1], [], []>} : vector<34x512xbf16>, vector<512x512xbf16>, vector<34x512xf32> -> vector<34x512xf32>
    %88 = arith.addf %82, %87 : vector<34x512xf32>
    %c3 = arith.constant 3 : index
    %c0_90 = arith.constant 0 : index
    %89 = vector.load %arg4[%c3, %c0_90] : memref<6x512xf32, #tpu.memory_space<vmem>>, vector<1x512xf32>
    %c4 = arith.constant 4 : index
    %c0_91 = arith.constant 0 : index
    %90 = vector.load %arg4[%c4, %c0_91] : memref<6x512xf32, #tpu.memory_space<vmem>>, vector<1x512xf32>
    %c5 = arith.constant 5 : index
    %c0_92 = arith.constant 0 : index
    %91 = vector.load %arg4[%c5, %c0_92] : memref<6x512xf32, #tpu.memory_space<vmem>>, vector<1x512xf32>
    %92 = vector.broadcast %89 : vector<1x512xf32> to vector<34x512xf32>
    %93 = arith.addf %88, %92 : vector<34x512xf32>
    %c0_93 = arith.constant 0 : index
    %c0_94 = arith.constant 0 : index
    %94 = vector.load %arg7[%c0_93, %c0_94] : memref<2x34xf32, #tpu.memory_space<vmem>>, vector<2x34xf32>
    %c0_95 = arith.constant 0 : index
    %c0_96 = arith.constant 0 : index
    %95 = vector.load %arg8[%c0_95, %c0_96] : memref<34x2xf32, #tpu.memory_space<vmem>>, vector<34x2xf32>
    %cst_97 = arith.constant dense<0.000000e+00> : vector<2x512xf32>
    %96 = tpu.matmul %94, %93, %cst_97 {dimension_numbers = #tpu.dot_dimension_numbers<[1], [0], [0], [1], [0, 0, 1, 1], [], []>} : vector<2x34xf32>, vector<34x512xf32>, vector<2x512xf32> -> vector<2x512xf32>
    %c0_98 = arith.constant 0 : index
    %c0_99 = arith.constant 0 : index
    %97 = vector.load %arg5[%c0_98, %c0_99] : memref<512x4xf32, #tpu.memory_space<vmem>>, vector<512x4xf32>
    %cst_100 = arith.constant dense<0.000000e+00> : vector<2x4xf32>
    %98 = tpu.matmul %96, %97, %cst_100 {dimension_numbers = #tpu.dot_dimension_numbers<[1], [0], [0], [1], [0, 0, 1, 1], [], []>} : vector<2x512xf32>, vector<512x4xf32>, vector<2x4xf32> -> vector<2x4xf32>
    %cst_101 = arith.constant 4.8828125E-4 : f32
    %99 = vector.broadcast %cst_101 : f32 to vector<2x4xf32>
    %100 = arith.mulf %98, %99 : vector<2x4xf32>
    %c0_102 = arith.constant 0 : index
    %c0_103 = arith.constant 0 : index
    %101 = vector.load %arg6[%c0_102, %c0_103] : memref<4x512xf32, #tpu.memory_space<vmem>>, vector<4x512xf32>
    %cst_104 = arith.constant dense<0.000000e+00> : vector<2x512xf32>
    %102 = tpu.matmul %100, %101, %cst_104 {dimension_numbers = #tpu.dot_dimension_numbers<[1], [0], [0], [1], [0, 0, 1, 1], [], []>} : vector<2x4xf32>, vector<4x512xf32>, vector<2x512xf32> -> vector<2x512xf32>
    %cst_105 = arith.constant dense<0.000000e+00> : vector<34x512xf32>
    %103 = tpu.matmul %95, %102, %cst_105 {dimension_numbers = #tpu.dot_dimension_numbers<[1], [0], [0], [1], [0, 0, 1, 1], [], []>} : vector<34x2xf32>, vector<2x512xf32>, vector<34x512xf32> -> vector<34x512xf32>
    %104 = arith.subf %93, %103 : vector<34x512xf32>
    %105 = arith.mulf %104, %104 : vector<34x512xf32>
    %cst_106 = arith.constant dense<0.000000e+00> : vector<2x512xf32>
    %106 = tpu.matmul %94, %105, %cst_106 {dimension_numbers = #tpu.dot_dimension_numbers<[1], [0], [0], [1], [0, 0, 1, 1], [], []>} : vector<2x34xf32>, vector<34x512xf32>, vector<2x512xf32> -> vector<2x512xf32>
    %c0_107 = arith.constant 0 : index
    %c0_108 = arith.constant 0 : index
    %107 = vector.load %arg5[%c0_107, %c0_108] : memref<512x4xf32, #tpu.memory_space<vmem>>, vector<512x4xf32>
    %cst_109 = arith.constant dense<0.000000e+00> : vector<2x4xf32>
    %108 = tpu.matmul %106, %107, %cst_109 {dimension_numbers = #tpu.dot_dimension_numbers<[1], [0], [0], [1], [0, 0, 1, 1], [], []>} : vector<2x512xf32>, vector<512x4xf32>, vector<2x4xf32> -> vector<2x4xf32>
    %cst_110 = arith.constant 4.8828125E-4 : f32
    %109 = vector.broadcast %cst_110 : f32 to vector<2x4xf32>
    %110 = arith.mulf %108, %109 : vector<2x4xf32>
    %cst_111 = arith.constant 9.99999974E-6 : f32
    %111 = vector.broadcast %cst_111 : f32 to vector<2x4xf32>
    %112 = arith.addf %110, %111 : vector<2x4xf32>
    %113 = math.rsqrt %112 : vector<2x4xf32>
    %c0_112 = arith.constant 0 : index
    %c0_113 = arith.constant 0 : index
    %114 = vector.load %arg6[%c0_112, %c0_113] : memref<4x512xf32, #tpu.memory_space<vmem>>, vector<4x512xf32>
    %cst_114 = arith.constant dense<0.000000e+00> : vector<2x512xf32>
    %115 = tpu.matmul %113, %114, %cst_114 {dimension_numbers = #tpu.dot_dimension_numbers<[1], [0], [0], [1], [0, 0, 1, 1], [], []>} : vector<2x4xf32>, vector<4x512xf32>, vector<2x512xf32> -> vector<2x512xf32>
    %cst_115 = arith.constant dense<0.000000e+00> : vector<34x512xf32>
    %116 = tpu.matmul %95, %115, %cst_115 {dimension_numbers = #tpu.dot_dimension_numbers<[1], [0], [0], [1], [0, 0, 1, 1], [], []>} : vector<34x2xf32>, vector<2x512xf32>, vector<34x512xf32> -> vector<34x512xf32>
    %117 = vector.broadcast %90 : vector<1x512xf32> to vector<34x512xf32>
    %118 = arith.mulf %116, %117 : vector<34x512xf32>
    %119 = arith.mulf %104, %118 : vector<34x512xf32>
    %120 = vector.broadcast %91 : vector<1x512xf32> to vector<34x512xf32>
    %121 = arith.addf %119, %120 : vector<34x512xf32>
    %cst_116 = arith.constant 0.000000e+00 : f32
    %122 = vector.broadcast %cst_116 : f32 to vector<34x512xf32>
    %123 = arith.maximumf %121, %122 : vector<34x512xf32>
    %124 = vector.extract_strided_slice %123 {offsets = [0, 0], sizes = [16, 512], strides = [1, 1]} : vector<34x512xf32> to vector<16x512xf32>
    %c0_117 = arith.constant 0 : index
    %c0_118 = arith.constant 0 : index
    %c0_119 = arith.constant 0 : index
    %125 = vector.load %arg9[%c0_117, %c0_118, %c0_119] : memref<2x16x512xf32, #tpu.memory_space<vmem>>, vector<1x16x512xf32>
    %126 = vector.shape_cast %125 : vector<1x16x512xf32> to vector<16x512xf32>
    %127 = vector.shape_cast %124 : vector<16x512xf32> to vector<1x16x512xf32>
    tpu.vector_store %arg9[%c0_117, %c0_118, %c0_119], %127 {strides = array<i32>} : memref<2x16x512xf32, #tpu.memory_space<vmem>>, vector<1x16x512xf32>,
    %128 = vector.extract_strided_slice %123 {offsets = [18, 0], sizes = [16, 512], strides = [1, 1]} : vector<34x512xf32> to vector<16x512xf32>
    %c1_120 = arith.constant 1 : index
    %c0_121 = arith.constant 0 : index
    %c0_122 = arith.constant 0 : index
    %129 = vector.load %arg9[%c1_120, %c0_121, %c0_122] : memref<2x16x512xf32, #tpu.memory_space<vmem>>, vector<1x16x512xf32>
    %130 = vector.shape_cast %129 : vector<1x16x512xf32> to vector<16x512xf32>
    %131 = vector.shape_cast %128 : vector<16x512xf32> to vector<1x16x512xf32>
    tpu.vector_store %arg9[%c1_120, %c0_121, %c0_122], %131 {strides = array<i32>} : memref<2x16x512xf32, #tpu.memory_space<vmem>>, vector<1x16x512xf32>,
    return
  }
  func.func @transform_0(%arg0: i32) -> (i32, i32, i32) {
    %c0_i32 = arith.constant 0 : i32
    %c0_i32_0 = arith.constant 0 : i32
    %c0_i32_1 = arith.constant 0 : i32
    return %arg0, %c0_i32, %c0_i32_0 : i32, i32, i32
  }
  func.func @transform_1(%arg0: i32) -> (i32, i32, i32) {
    %c0_i32 = arith.constant 0 : i32
    %c0_i32_0 = arith.constant 0 : i32
    %c0_i32_1 = arith.constant 0 : i32
    %c0_i32_2 = arith.constant 0 : i32
    return %c0_i32, %c0_i32_0, %c0_i32_1 : i32, i32, i32
  }
  func.func @transform_2(%arg0: i32) -> (i32, i32, i32) {
    %c0_i32 = arith.constant 0 : i32
    %c0_i32_0 = arith.constant 0 : i32
    %c0_i32_1 = arith.constant 0 : i32
    %c0_i32_2 = arith.constant 0 : i32
    return %c0_i32, %c0_i32_0, %c0_i32_1 : i32, i32, i32
  }
  func.func @transform_3(%arg0: i32) -> (i32, i32) {
    %c0_i32 = arith.constant 0 : i32
    %c0_i32_0 = arith.constant 0 : i32
    %c0_i32_1 = arith.constant 0 : i32
    return %c0_i32, %c0_i32_0 : i32, i32
  }
  func.func @transform_4(%arg0: i32) -> (i32, i32) {
    %c0_i32 = arith.constant 0 : i32
    %c0_i32_0 = arith.constant 0 : i32
    %c0_i32_1 = arith.constant 0 : i32
    return %c0_i32, %c0_i32_0 : i32, i32
  }
  func.func @transform_5(%arg0: i32) -> (i32, i32) {
    %c0_i32 = arith.constant 0 : i32
    %c0_i32_0 = arith.constant 0 : i32
    %c0_i32_1 = arith.constant 0 : i32
    return %c0_i32, %c0_i32_0 : i32, i32
  }
  func.func @transform_6(%arg0: i32) -> (i32, i32) {
    %c0_i32 = arith.constant 0 : i32
    %c0_i32_0 = arith.constant 0 : i32
    %c0_i32_1 = arith.constant 0 : i32
    return %c0_i32, %c0_i32_0 : i32, i32
  }
  func.func @transform_7(%arg0: i32) -> (i32, i32) {
    %c0_i32 = arith.constant 0 : i32
    %c0_i32_0 = arith.constant 0 : i32
    %c0_i32_1 = arith.constant 0 : i32
    return %c0_i32, %c0_i32_0 : i32, i32
  }
  func.func @transform_8(%arg0: i32) -> (i32, i32, i32) {
    %c0_i32 = arith.constant 0 : i32
    %c0_i32_0 = arith.constant 0 : i32
    %c0_i32_1 = arith.constant 0 : i32
    return %arg0, %c0_i32, %c0_i32_0 : i32, i32, i32
  }
}

</mosaic_0001>

<bundles_post_ra>
// kernel: tpu_custom_call.1
= control target key start
LH: loop header
LB: loop body
LE: loop exit
PB: predicated region body
PF: predicated region fallthrough
CT: control target
= control target key end

     0   :  { %13 = vsyncpa [#allocation5], 0  ;;  %s12808_s0 = inlined_call_operand.hbm [shape: f32[2,16,256], index: 0, kind: input, shape index: {}]   ;;  %s12809_s1 = inlined_call_operand.hbm [shape: bf16[3,256,512], index: 1, kind: input, shape index: {}]   ;;  %s12810_s2 = inlined_call_operand.hbm [shape: bf16[3,512,512], index: 2, kind: input, shape index: {}]   ;;  %s12811_s3 = inlined_call_operand.hbm [shape: f32[6,512], index: 3, kind: input, shape index: {}]   ;;  %s12812_s4 = inlined_call_operand.vmem [shape: f32[512,4], index: 4, kind: input, shape index: {}]   ;;  %s12813_s5 = inlined_call_operand.hbm [shape: f32[4,512], index: 5, kind: input, shape index: {}]   ;;  %s12814_s6 = inlined_call_operand.hbm [shape: f32[2,34], index: 6, kind: input, shape index: {}]   ;;  %s12815_s7 = inlined_call_operand.vmem [shape: f32[34,2], index: 7, kind: input, shape index: {}]   ;;  %s12816_s8 = inlined_call_operand.hbm [shape: f32[2,16,512], index: 8, kind: output, shape index: {}]  }
   0x1   :  { %14 = vsyncpa [#allocation8], 0 }
   0x2   :  { %15 = vsyncpa [#allocation11], 0 }
   0x3   :  { %16 = vsyncpa [#allocation14], 0 }
   0x4   :  { %17 = vsyncpa [#allocation6], 0  ;;  %s10928_s27 = smov [#allocation7]   ;;  %s10929_s29 = smov [#allocation10]  }
   0x5   :  { %s35_s28 = sshll.u32 %s10928_s27, 4  ;;  %s60_s30 = sshll.u32 %s10929_s29, 4  ;;  %s36_s28 = int_to_ptr.vmem [resolvable:$true] %s35_s28  ;;  %s61_s30 = int_to_ptr.vmem [resolvable:$true] %s60_s30 }
   0x6   :  { %s10764_s11 = scalar_lea.hbm %s12809_s1, 24576 }
   0x7   :  { %p10765_p0 = scmp.ne.s32.totalorder %s12809_s1, %s10764_s11  ;;  %p10768_p1 = scmp.lt.u32.totalorder %s10764_s11, %s12809_s1 }
   0x9   :  { %p10770_p2 = pnand %p10768_p1, %p10765_p0 }
   0xb   :  { %10773 = shalt.err (!%p10770_p2)
}
   0xc   :  { %s10774_s16 = scalar_lea.vmem %s36_s28, 24576  ;;  %p10779_p4 = scmp.lt.s32.totalorder %s36_s28, %s36_s28 }
   0xd   :  { %p10775_p3 = scmp.ne.s32.totalorder %s36_s28, %s10774_s16  ;;  %p10780_p5 = scmp.lt.s32.totalorder %s10774_s16, %s10774_s16 }
   0xf   :  { %p10781_p6 = por %p10780_p5, %p10779_p4 }
  0x11   :  { %p10782_p7 = pnand %p10781_p6, %p10775_p3 }
  0x13   :  { %10785 = shalt.err (!%p10782_p7)
}
  0x14   :  { %s10930_s17 = smov 256   ;;  %s10931_s18 = smov 16  }
  0x15   :  { %41 = dma.hbm_to_vmem [thread:$0]  %s12809_s1, 24576, %s36_s28, [#allocation8], %s10930_s17, %s10930_s17, %s10931_s18  }
  0x16   :  { %s10786_s23 = scalar_lea.hbm %s12811_s3, 512 }
  0x17   :  { %p10787_p8 = scmp.ne.s32.totalorder %s12811_s3, %s10786_s23  ;;  %p10790_p9 = scmp.lt.u32.totalorder %s10786_s23, %s12811_s3 }
  0x19   :  { %p10792_p10 = pnand %p10790_p9, %p10787_p8 }
  0x1b   :  { %10795 = shalt.err (!%p10792_p10)
}
  0x1c   :  { %s10796_s29 = scalar_lea.vmem %s61_s30, 512  ;;  %p10801_p12 = scmp.lt.s32.totalorder %s61_s30, %s61_s30 }
  0x1d   :  { %p10797_p11 = scmp.ne.s32.totalorder %s61_s30, %s10796_s29  ;;  %p10802_p13 = scmp.lt.s32.totalorder %s10796_s29, %s10796_s29 }
  0x1f   :  { %p10803_p0 = por %p10802_p13, %p10801_p12 }
  0x21   :  { %p10804_p1 = pnand %p10803_p0, %p10797_p11 }
  0x23   :  { %10807 = shalt.err (!%p10804_p1)
}
  0x24   :  { %63 = dma.hbm_to_vmem [thread:$0]  %s12811_s3, 512, %s61_s30, [#allocation11]  }
  0x25   :  { %s10932_s9 = smov [#allocation4]   ;;  %s10933_s11 = smov [#allocation9]  }
  0x26   :  { %s23_s10 = sshll.u32 %s10932_s9, 4  ;;  %s47_s12 = sshll.u32 %s10933_s11, 4  ;;  %s24_s10 = int_to_ptr.vmem [resolvable:$true] %s23_s10  ;;  %s11012_s12 = int_to_ptr.vmem [resolvable:$true] %s47_s12 }
  0x27   :  { %s10808_s15 = scalar_lea.hbm %s12808_s0, 1024 }
  0x28   :  { %p10809_p2 = scmp.ne.s32.totalorder %s12808_s0, %s10808_s15  ;;  %p10812_p3 = scmp.lt.u32.totalorder %s10808_s15, %s12808_s0 }
  0x2a   :  { %p10814_p4 = pnand %p10812_p3, %p10809_p2 }
  0x2c   :  { %10817 = shalt.err (!%p10814_p4)
}
  0x2d   :  { %s10818_s3 = scalar_lea.vmem %s24_s10, 1024  ;;  %p10823_p6 = scmp.lt.s32.totalorder %s24_s10, %s24_s10 }
  0x2e   :  { %p10819_p5 = scmp.ne.s32.totalorder %s24_s10, %s10818_s3  ;;  %p10824_p7 = scmp.lt.s32.totalorder %s10818_s3, %s10818_s3 }
  0x30   :  { %p10825_p8 = por %p10824_p7, %p10823_p6 }
  0x32   :  { %p10826_p9 = pnand %p10825_p8, %p10819_p5 }
  0x34   :  { %10829 = shalt.err (!%p10826_p9)
}
  0x35   :  { %29 = dma.hbm_to_vmem [thread:$0]  %s12808_s0, 1024, %s24_s10, [#allocation5], %s10930_s17, %s10930_s17, %s10931_s18  }
  0x36   :  { %s10830_s25 = scalar_lea.hbm %s12810_s2, 49152 }
  0x37   :  { %p10831_p10 = scmp.ne.s32.totalorder %s12810_s2, %s10830_s25  ;;  %p10834_p11 = scmp.lt.u32.totalorder %s10830_s25, %s12810_s2 }
  0x39   :  { %p10836_p12 = pnand %p10834_p11, %p10831_p10 }
  0x3b   :  { %10839 = shalt.err (!%p10836_p12)
}
  0x3c   :  { %s10840_s28 = scalar_lea.vmem %s11012_s12, 49152  ;;  %p10845_p0 = scmp.lt.s32.totalorder %s11012_s12, %s11012_s12 }
  0x3d   :  { %p10841_p13 = scmp.ne.s32.totalorder %s11012_s12, %s10840_s28  ;;  %p10846_p1 = scmp.lt.s32.totalorder %s10840_s28, %s10840_s28 }
  0x3f   :  { %p10847_p2 = por %p10846_p1, %p10845_p0 }
  0x41   :  { %p10848_p3 = pnand %p10847_p2, %p10841_p13 }
  0x43   :  { %10851 = shalt.err (!%p10848_p3)
}
  0x44   :  { %53 = dma.hbm_to_vmem [thread:$0]  %s12810_s2, 49152, %s11012_s12, [#allocation8], %s10930_s17, %s10930_s17, %s10931_s18  }
  0x45   :  { %s10934_s10 = smov [#allocation12]   ;;  %s10935_s13 = smov [#allocation13]  }
  0x46   :  { %s72_s11 = sshll.u32 %s10934_s10, 4  ;;  %s82_s14 = sshll.u32 %s10935_s13, 4  ;;  %s73_s11 = int_to_ptr.vmem [resolvable:$true] %s72_s11  ;;  %s83_s14 = int_to_ptr.vmem [resolvable:$true] %s82_s14 }
  0x47   :  { %s10852_s19 = scalar_lea.hbm %s12813_s5, 256 }
  0x48   :  { %p10853_p4 = scmp.ne.s32.totalorder %s12813_s5, %s10852_s19  ;;  %p10856_p5 = scmp.lt.u32.totalorder %s10852_s19, %s12813_s5 }
  0x4a   :  { %p10858_p6 = pnand %p10856_p5, %p10853_p4 }
  0x4c   :  { %10861 = shalt.err (!%p10858_p6)
}
  0x4d   :  { %s10862_s2 = scalar_lea.vmem %s73_s11, 256  ;;  %p10867_p8 = scmp.lt.s32.totalorder %s73_s11, %s73_s11 }
  0x4e   :  { %p10863_p7 = scmp.ne.s32.totalorder %s73_s11, %s10862_s2  ;;  %p10868_p9 = scmp.lt.s32.totalorder %s10862_s2, %s10862_s2 }
  0x50   :  { %p10869_p10 = por %p10868_p9, %p10867_p8 }
  0x52   :  { %p10870_p11 = pnand %p10869_p10, %p10863_p7 }
  0x54   :  { %10873 = shalt.err (!%p10870_p11)
}
  0x55   :  { %75 = dma.hbm_to_vmem [thread:$0]  %s12813_s5, 256, %s73_s11, [#allocation11]  }
  0x56   :  { %s10874_s23 = scalar_lea.hbm %s12814_s6, 32 }
  0x57   :  { %p10875_p12 = scmp.ne.s32.totalorder %s12814_s6, %s10874_s23  ;;  %p10878_p13 = scmp.lt.u32.totalorder %s10874_s23, %s12814_s6 }
  0x59   :  { %p10880_p0 = pnand %p10878_p13, %p10875_p12 }
  0x5b   :  { %10883 = shalt.err (!%p10880_p0)
}
  0x5c   :  { %s10884_s29 = scalar_lea.vmem %s83_s14, 32  ;;  %p10889_p2 = scmp.lt.s32.totalorder %s83_s14, %s83_s14 }
  0x5d   :  { %p10885_p1 = scmp.ne.s32.totalorder %s83_s14, %s10884_s29  ;;  %p10890_p3 = scmp.lt.s32.totalorder %s10884_s29, %s10884_s29 }
  0x5f   :  { %p10891_p4 = por %p10890_p3, %p10889_p2 }
  0x61   :  { %p10892_p5 = pnand %p10891_p4, %p10885_p1 }
  0x63   :  { %10895 = shalt.err (!%p10892_p5)
}
  0x64   :  { %85 = dma.hbm_to_vmem [thread:$0]  %s12814_s6, 32, %s83_s14, [#allocation14]  }
  0x65   :  { %10918 = dma.done.wait [#allocation5], 1024  }
  0x66   :  { %10919 = vsyncadd [#allocation5], 4294966272 }
  0x67   :  { %10920 = dma.done.wait [#allocation8], 73728  }
  0x68   :  { %10921 = vsyncadd [#allocation8], 4294893568 }
  0x69   :  { %10922 = dma.done.wait [#allocation11], 768  }
  0x6a   :  { %10923 = vsyncadd [#allocation11], 4294966528 }
  0x6b   :  { %10924 = dma.done.wait [#allocation14], 32  }
  0x6c   :  { %10925 = vsyncadd [#allocation14], 4294967264  ;;  %v12817_v0 = vlaneseq  ;;  %v12818_v1 = vmov 0.0   ;;  %v9887_v2 = vld [vmem:[#allocation7 + $0x204] ss:$16 sps:$4 sm:$0xff]   ;;  %v116_v50 = vld [vmem:[#allocation4 + $0x8] sm:$0xff] }
  0x6d   :  { %v9889_v3 = vld [vmem:[#allocation7 + $0x20c] ss:$16 sps:$4 sm:$0xff]   ;;  %702 = vmatprep.subr.bf16.mxu0 %v9887_v2  ;;  %v9891_v4 = vld [vmem:[#allocation7 + $0x200] ss:$16 sps:$4 sm:$0xff]   ;;  %v9892_v5 = vld [vmem:[#allocation7 + $0x208] ss:$16 sps:$4 sm:$0xff]  }
  0x6e   :  { %vm108_vm0 = vcmp.lt.s32.totalorder %v12817_v0, 256  ;;  %763 = vmatprep.subr.bf16.mxu1 %v9889_v3  ;;  %v9893_v6 = vld [vmem:[#allocation7 + $0x224] ss:$16 sps:$4 sm:$0xff]   ;;  %703 = vmatpush1.bf16.msra.mxu0 %v9891_v4  ;;  %v9895_v7 = vld [vmem:[#allocation7 + $0x22c] ss:$16 sps:$4 sm:$0xff]   ;;  %vm123_vm1 = vcmask 1040384  }
  0x6f   :  { %113 = vst.msk [vmem:[#allocation2 + $0x21] ss:$8 sm:$0x3] %vm108_vm0, %v12818_v1  ;;  %143 = vst.msk [vmem:[#allocation2 + $0x22] ss:$8 sm:$0x3] %vm108_vm0, %v12818_v1  ;;  %764 = vmatpush1.bf16.msra.mxu1 %v9892_v5  ;;  %704 = vmatprep.subr.bf16.mxu0 %v9893_v6 }
  0x70   :  { %110 = vst.msk [vmem:[#allocation2] ss:$8 sm:$0x3] %vm108_vm0, %v12818_v1  ;;  %146 = vst.msk [vmem:[#allocation2 + $0x43] ss:$8 sm:$0x3] %vm108_vm0, %v12818_v1  ;;  %765 = vmatprep.subr.bf16.mxu1 %v9895_v7 }
  0x71   :  { %v9897_v8 = vld [vmem:[#allocation7 + $0x220] ss:$16 sps:$4 sm:$0xff]   ;;  %v9898_v9 = vld [vmem:[#allocation7 + $0x228] ss:$16 sps:$4 sm:$0xff]   ;;  %v9899_v10 = vld [vmem:[#allocation7 + $0x244] ss:$16 sps:$4 sm:$0xff]  }
  0x72   :  { %v9901_v11 = vld [vmem:[#allocation7 + $0x24c] ss:$16 sps:$4 sm:$0xff]   ;;  %v9903_v12 = vld [vmem:[#allocation7 + $0x240] ss:$16 sps:$4 sm:$0xff]   ;;  %v9904_v13 = vld [vmem:[#allocation7 + $0x248] ss:$16 sps:$4 sm:$0xff]   ;;  %705 = vmatpush1.bf16.msra.mxu0 %v9897_v8 }
  0x73   :  { %766 = vmatpush1.bf16.msra.mxu1 %v9898_v9  ;;  %v9905_v14 = vld [vmem:[#allocation7 + $0x264] ss:$16 sps:$4 sm:$0xff]   ;;  %706 = vmatprep.subr.bf16.mxu0 %v9899_v10  ;;  %v9907_v15 = vld [vmem:[#allocation7 + $0x26c] ss:$16 sps:$4 sm:$0xff]   ;;  %v9909_v16 = vld [vmem:[#allocation7 + $0x260] ss:$16 sps:$4 sm:$0xff]  }
  0x74   :  { %767 = vmatprep.subr.bf16.mxu1 %v9901_v11  ;;  %v9910_v17 = vld [vmem:[#allocation7 + $0x268] ss:$16 sps:$4 sm:$0xff]   ;;  %v9911_v18 = vld [vmem:[#allocation7 + $0x284] ss:$16 sps:$4 sm:$0xff]   ;;  %v9913_v19 = vld [vmem:[#allocation7 + $0x28c] ss:$16 sps:$4 sm:$0xff]  }
  0x75   :  { %v9915_v20 = vld [vmem:[#allocation7 + $0x280] ss:$16 sps:$4 sm:$0xff]   ;;  %v9916_v21 = vld [vmem:[#allocation7 + $0x288] ss:$16 sps:$4 sm:$0xff]   ;;  %v9917_v22 = vld [vmem:[#allocation7 + $0x2a4] ss:$16 sps:$4 sm:$0xff]  }
  0x76   :  { %707 = vmatpush1.bf16.msra.mxu0 %v9903_v12  ;;  %v9919_v23 = vld [vmem:[#allocation7 + $0x2ac] ss:$16 sps:$4 sm:$0xff]   ;;  %v9921_v24 = vld [vmem:[#allocation7 + $0x2a0] ss:$16 sps:$4 sm:$0xff]   ;;  %v9922_v25 = vld [vmem:[#allocation7 + $0x2a8] ss:$16 sps:$4 sm:$0xff]  }
  0x77   :  { %768 = vmatpush1.bf16.msra.mxu1 %v9904_v13  ;;  %708 = vmatprep.subr.bf16.mxu0 %v9905_v14  ;;  %v9923_v26 = vld [vmem:[#allocation7 + $0x2c4] ss:$16 sps:$4 sm:$0xff]   ;;  %v9925_v27 = vld [vmem:[#allocation7 + $0x2cc] ss:$16 sps:$4 sm:$0xff]   ;;  %v9927_v28 = vld [vmem:[#allocation7 + $0x2c0] ss:$16 sps:$4 sm:$0xff]  }
  0x78   :  { %769 = vmatprep.subr.bf16.mxu1 %v9907_v15  ;;  %v9928_v29 = vld [vmem:[#allocation7 + $0x2c8] ss:$16 sps:$4 sm:$0xff]   ;;  %v9929_v30 = vld [vmem:[#allocation7 + $0x2e4] ss:$16 sps:$4 sm:$0xff]   ;;  %v9931_v31 = vld [vmem:[#allocation7 + $0x2ec] ss:$16 sps:$4 sm:$0xff]  }
  0x79   :  { %v9933_v32 = vld [vmem:[#allocation7 + $0x2e0] ss:$16 sps:$4 sm:$0xff]   ;;  %v9934_v33 = vld [vmem:[#allocation7 + $0x2e8] ss:$16 sps:$4 sm:$0xff]   ;;  %v9935_v34 = vld [vmem:[#allocation7 + $0x304] ss:$16 sps:$4 sm:$0xff]  }
  0x7a   :  { %709 = vmatpush1.bf16.msra.mxu0 %v9909_v16  ;;  %v9937_v35 = vld [vmem:[#allocation7 + $0x30c] ss:$16 sps:$4 sm:$0xff]   ;;  %v9939_v36 = vld [vmem:[#allocation7 + $0x300] ss:$16 sps:$4 sm:$0xff]   ;;  %v9940_v37 = vld [vmem:[#allocation7 + $0x308] ss:$16 sps:$4 sm:$0xff]  }
  0x7b   :  { %770 = vmatpush1.bf16.msra.mxu1 %v9910_v17  ;;  %710 = vmatprep.subr.bf16.mxu0 %v9911_v18  ;;  %v9941_v38 = vld [vmem:[#allocation7 + $0x324] ss:$16 sps:$4 sm:$0xff]   ;;  %v9943_v39 = vld [vmem:[#allocation7 + $0x32c] ss:$16 sps:$4 sm:$0xff]   ;;  %v9945_v40 = vld [vmem:[#allocation7 + $0x320] ss:$16 sps:$4 sm:$0xff]  }
  0x7c   :  { %771 = vmatprep.subr.bf16.mxu1 %v9913_v19  ;;  %v9946_v41 = vld [vmem:[#allocation7 + $0x328] ss:$16 sps:$4 sm:$0xff]   ;;  %v9947_v42 = vld [vmem:[#allocation7 + $0x344] ss:$16 sps:$4 sm:$0xff]   ;;  %v9949_v43 = vld [vmem:[#allocation7 + $0x34c] ss:$16 sps:$4 sm:$0xff]  }
  0x7d   :  { %v9951_v44 = vld [vmem:[#allocation7 + $0x340] ss:$16 sps:$4 sm:$0xff]   ;;  %v9952_v45 = vld [vmem:[#allocation7 + $0x348] ss:$16 sps:$4 sm:$0xff]   ;;  %v9953_v46 = vld [vmem:[#allocation7 + $0x364] ss:$16 sps:$4 sm:$0xff]  }
  0x7e   :  { %711 = vmatpush1.bf16.msra.mxu0 %v9915_v20  ;;  %v9955_v47 = vld [vmem:[#allocation7 + $0x36c] ss:$16 sps:$4 sm:$0xff]   ;;  %v9957_v48 = vld [vmem:[#allocation7 + $0x360] ss:$16 sps:$4 sm:$0xff]   ;;  %v9958_v49 = vld [vmem:[#allocation7 + $0x368] ss:$16 sps:$4 sm:$0xff]  }
  0x7f   :  { %772 = vmatpush1.bf16.msra.mxu1 %v9916_v21  ;;  %712 = vmatprep.subr.bf16.mxu0 %v9917_v22  ;;  %v118_v51 = vld [vmem:[#allocation4 + $0x18] sm:$0xff]  ;;  %v125_v52 = vrot.slane %v116_v50, 7  ;;  %v150_v53 = vld [vmem:[#allocation4 + $0x28] sm:$0xff]  ;;  %vm157_vm2 = vcmask 1042432   ;;  %v9959_v58 = vld [vmem:[#allocation7 + $0x384] ss:$16 sps:$4 sm:$0xff]  }
  0x80   :  { %773 = vmatprep.subr.bf16.mxu1 %v9919_v23  ;;  %v152_v54 = vld [vmem:[#allocation4 + $0x38] sm:$0xff]  ;;  %v128_v55 = vrot.slane %v118_v51, 7  ;;  %v159_v56 = vrot.slane %v150_v53, 5  ;;  %v9963_v60 = vld [vmem:[#allocation7 + $0x380] ss:$16 sps:$4 sm:$0xff]   ;;  %vm1345_vm4 = vcmask 1046528  }
  0x81   :  { %v162_v57 = vrot.slane %v152_v54, 5  ;;  %v9961_v59 = vld [vmem:[#allocation7 + $0x38c] ss:$16 sps:$4 sm:$0xff]   ;;  %137 = vst [vmem:[#allocation2 + $0x8] sm:$0xfe] %v125_v52  ;;  %v115_v2 = vld [vmem:[#allocation4] sm:$0xff] }
  0x82   :  { %713 = vmatpush1.bf16.msra.mxu0 %v9921_v24  ;;  %v9964_v61 = vld [vmem:[#allocation7 + $0x388] ss:$16 sps:$4 sm:$0xff]   ;;  %v11079_v62 = vsel %vm123_vm1, %v125_v52, %v128_v55  ;;  %141 = vst [vmem:[#allocation2 + $0x28] sm:$0x1] %v128_v55  ;;  %171 = vst [vmem:[#allocation2 + $0x28] sm:$0xf8] %v159_v56 }
  0x83   :  { %774 = vmatpush1.bf16.msra.mxu1 %v9922_v25  ;;  %714 = vmatprep.subr.bf16.mxu0 %v9923_v26  ;;  %v163_v63 = vsel %vm157_vm2, %v159_v56, %v162_v57  ;;  %175 = vst [vmem:[#allocation2 + $0x48] sm:$0x7] %v162_v57  ;;  %v117_v3 = vld [vmem:[#allocation4 + $0x10] sm:$0xff]  ;;  %v124_v4 = vrot.slane %v115_v2, 7  ;;  %v149_v5 = vld [vmem:[#allocation4 + $0x20] sm:$0xff]  ;;  %vm1880_vm5 = vcmask 1041408  }
  0x84   :  { %775 = vmatprep.subr.bf16.mxu1 %v9925_v27  ;;  %v151_v6 = vld [vmem:[#allocation4 + $0x30] sm:$0xff]  ;;  %v126_v7 = vrot.slane %v117_v3, 7  ;;  %v158_v8 = vrot.slane %v149_v5, 5  ;;  %v9967_v11 = vld [vmem:[#allocation7 + $0x3ac] ss:$16 sps:$4 sm:$0xff]   ;;  %vm1876_vm6 = vcmask 277504  }
  0x85   :  { %v160_v9 = vrot.slane %v151_v6, 5  ;;  %v9965_v10 = vld [vmem:[#allocation7 + $0x3a4] ss:$16 sps:$4 sm:$0xff]   ;;  %136 = vst [vmem:[#allocation2] sm:$0xfe] %v124_v4  ;;  %vm2250_vm7 = vcmask 1043456  }
  0x86   :  { %715 = vmatpush1.bf16.msra.mxu0 %v9927_v28  ;;  %v11083_v12 = vsel %vm123_vm1, %v124_v4, %v126_v7  ;;  %140 = vst [vmem:[#allocation2 + $0x20] sm:$0x1] %v126_v7  ;;  %170 = vst [vmem:[#allocation2 + $0x20] sm:$0xf8] %v158_v8  ;;  %v9969_v14 = vld [vmem:[#allocation7 + $0x3a0] ss:$16 sps:$4 sm:$0xff]  }
  0x87   :  { %776 = vmatpush1.bf16.msra.mxu1 %v9928_v29  ;;  %716 = vmatprep.subr.bf16.mxu0 %v9929_v30  ;;  %v161_v13 = vsel %vm157_vm2, %v158_v8, %v160_v9  ;;  %174 = vst [vmem:[#allocation2 + $0x40] sm:$0x7] %v160_v9  ;;  %v9970_v15 = vld [vmem:[#allocation7 + $0x3a8] ss:$16 sps:$4 sm:$0xff]   ;;  %138 = vst [vmem:[#allocation2 + $0x10] sm:$0xff] %v11083_v12  ;;  %vm2246_vm8 = vcmask 31744  }
  0x88   :  { %777 = vmatprep.subr.bf16.mxu1 %v9931_v31  ;;  %v257_v16 = vld [vmem:[#allocation2 + $0x8] sm:$0xfe]  ;;  %v9971_v17 = vld [vmem:[#allocation7 + $0x3c4] ss:$16 sps:$4 sm:$0xff]   ;;  %v9975_v21 = vld [vmem:[#allocation7 + $0x3c0] ss:$16 sps:$4 sm:$0xff]  }
  0x89   :  { %v9973_v18 = vld [vmem:[#allocation7 + $0x3cc] ss:$16 sps:$4 sm:$0xff]   ;;  %v261_v20 = vpack.c.bf16 %v11079_v62, %v257_v16  ;;  %v9976_v23 = vld [vmem:[#allocation7 + $0x3c8] ss:$16 sps:$4 sm:$0xff]   ;;  %v9977_v26 = vld [vmem:[#allocation7 + $0x3e4] ss:$16 sps:$4 sm:$0xff]  }
  0x8a   :  { %717 = vmatpush1.bf16.msra.mxu0 %v9933_v32  ;;  %v181_v19 = vld [vmem:[#allocation2 + $0x28] sm:$0xff]  ;;  %vm329_vm3 = vsmask.f32 7424  ;;  %v9989_v52 = vld [vmem:[#allocation7 + $0x20] ss:$16 sps:$4 sm:$0xff]   ;;  %vm2401_vm9 = vcmask 15360  }
  0x8b   :  { %778 = vmatpush1.bf16.msra.mxu1 %v9934_v33  ;;  %718 = vmatprep.subr.bf16.mxu0 %v9935_v34  ;;  %v11088_v22 = vpack.c.bf16 %v163_v63, %v181_v19  ;;  %v343_v24 = vshrl.u32 %v261_v20, 16  ;;  %v345_v25 = vshll.u32 %v261_v20, 16  ;;  %v9979_v29 = vld [vmem:[#allocation7 + $0x3ec] ss:$16 sps:$4 sm:$0xff]   ;;  %v9992_v53 = vld [vmem:[#allocation7 + $0x28] ss:$16 sps:$4 sm:$0xff]  }
  0x8c   :  { %779 = vmatprep.subr.bf16.mxu1 %v9937_v35  ;;  %v256_v28 = vld [vmem:[#allocation2] sm:$0xfe]  ;;  %v9994_v51 = vld [vmem:[#allocation7 + $0x2c] ss:$16 sps:$4 sm:$0xff]   ;;  %v9998_v57 = vld [vmem:[#allocation7 + $0x48] ss:$16 sps:$4 sm:$0xff]  }
  0x8d   :  { %v350_v27 = vshll.u32 %v11088_v22, 16  ;;  %v347_v30 = vrot.slane %v345_v25, 1  ;;  %v180_v31 = vld [vmem:[#allocation2 + $0x20] sm:$0xff]  ;;  %v260_v32 = vpack.c.bf16 %v11083_v12, %v256_v28  ;;  %v10000_v55 = vld [vmem:[#allocation7 + $0x4c] ss:$16 sps:$4 sm:$0xff]   ;;  %v362_v3 = vshrl.u32 %v11088_v22, 16 }
  0x8e   :  { %719 = vmatpush1.bf16.msra.mxu0 %v9939_v36  ;;  %v11094_v34 = vpack.c.bf16 %v161_v13, %v180_v31  ;;  %v9981_v35 = vld [vmem:[#allocation7 + $0x3e0] ss:$16 sps:$4 sm:$0xff]   ;;  %v9997_v54 = vld [vmem:[#allocation7 + $0x44] ss:$16 sps:$4 sm:$0xff]   ;;  %v10012_v2 = vld [vmem:[#allocation7 + $0x8c] ss:$16 sps:$4 sm:$0xff]  }
  0x8f   :  { %780 = vmatpush1.bf16.msra.mxu1 %v9940_v37  ;;  %720 = vmatprep.subr.bf16.mxu0 %v9941_v38  ;;  %v11092_v33 = vrot.slane %v350_v27, 1  ;;  %v348_v36 = vor.u32 %v347_v30, %v343_v24  ;;  %v331_v37 = vshrl.u32 %v260_v32, 16  ;;  %v333_v38 = vshll.u32 %v260_v32, 16  ;;  %v9995_v56 = vld [vmem:[#allocation7 + $0x40] ss:$16 sps:$4 sm:$0xff]  }
  0x90   :  { %781 = vmatprep.subr.bf16.mxu1 %v9943_v39  ;;  %v9982_v39 = vld [vmem:[#allocation7 + $0x3e8] ss:$16 sps:$4 sm:$0xff]   ;;  %v10009_v63 = vld [vmem:[#allocation7 + $0x84] ss:$16 sps:$4 sm:$0xff]   ;;  %v354_v5 = vshrl.u32 %v11094_v34, 16  ;;  %vm8425_vm11 = vcmask 1045504  }
  0x91   :  { %v259_v4 = vld [vmem:[#allocation2 + $0x48] sm:$0x7]  ;;  %v258_v7 = vld [vmem:[#allocation2 + $0x40] sm:$0x7]  ;;  %v10018_v13 = vld [vmem:[#allocation7 + $0xac] ss:$16 sps:$4 sm:$0xff]  }
  0x92   :  { %721 = vmatpush1.bf16.msra.mxu0 %v9945_v40  ;;  %v9985_v40 = vld [vmem:[#allocation7 + $0x4] ss:$16 sps:$4 sm:$0xff]   ;;  %v263_v6 = vpack.c.bf16 %v259_v4, %v259_v4  ;;  %v10007_v8 = vld [vmem:[#allocation7 + $0x80] ss:$16 sps:$4 sm:$0xff]   ;;  %v10010_v9 = vld [vmem:[#allocation7 + $0x88] ss:$16 sps:$4 sm:$0xff]  }
  0x93   :  { %782 = vmatpush1.bf16.msra.mxu1 %v9946_v41  ;;  %722 = vmatprep.subr.bf16.mxu0 %v9947_v42  ;;  %v338_v41 = vshll.u32 %v11094_v34, 16  ;;  %v353_v42 = vsel %vm329_vm3, %v348_v36, %v11092_v33  ;;  %v10013_v20 = vld [vmem:[#allocation7 + $0xa0] ss:$16 sps:$4 sm:$0xff]   ;;  %v10021_v24 = vld [vmem:[#allocation7 + $0xc4] ss:$16 sps:$4 sm:$0xff]  }
  0x94   :  { %783 = vmatprep.subr.bf16.mxu1 %v9949_v43  ;;  %v9988_v43 = vld [vmem:[#allocation7 + $0xc] ss:$16 sps:$4 sm:$0xff]   ;;  %734 = vmatprep.mubr.bf16.mxu0 %v353_v42  ;;  %v10019_v30 = vld [vmem:[#allocation7 + $0xc0] ss:$16 sps:$4 sm:$0xff]   ;;  %v10022_v31 = vld [vmem:[#allocation7 + $0xc8] ss:$16 sps:$4 sm:$0xff]  }
  0x95   :  { %795 = vmatprep.mubr.bf16.mxu1 %v353_v42  ;;  %v10024_v25 = vld [vmem:[#allocation7 + $0xcc] ss:$16 sps:$4 sm:$0xff]   ;;  %v10027_v32 = vld [vmem:[#allocation7 + $0xe4] ss:$16 sps:$4 sm:$0xff]   ;;  %v10028_v36 = vld [vmem:[#allocation7 + $0xe8] ss:$16 sps:$4 sm:$0xff]  }
  0x96   :  { %723 = vmatpush1.bf16.msra.mxu0 %v9951_v44  ;;  %v335_v44 = vrot.slane %v333_v38, 1  ;;  %v177_v38 = vld [vmem:[#allocation2 + $0x8] sm:$0xff]  ;;  %v10031_v42 = vld [vmem:[#allocation7 + $0x100] ss:$16 sps:$4 sm:$0xff]  }
  0x97   :  { %784 = vmatpush1.bf16.msra.mxu1 %v9952_v45  ;;  %724 = vmatprep.subr.bf16.mxu0 %v9953_v46  ;;  %v340_v45 = vrot.slane %v338_v41, 1  ;;  %v9983_v46 = vld [vmem:[#allocation7] ss:$16 sps:$4 sm:$0xff]   ;;  %v187_v41 = vpack.c.bf16 %v11079_v62, %v177_v38  ;;  %v10072_v4 = vld [vmem:[#allocation7 + $0x1cc] ss:$16 sps:$4 sm:$0xff]  }
  0x98   :  { %785 = vmatprep.subr.bf16.mxu1 %v9955_v47  ;;  %v9986_v47 = vld [vmem:[#allocation7 + $0x8] ss:$16 sps:$4 sm:$0xff]   ;;  %v10103_v38 = vld [vmem:[#allocation7 + $0x480] ss:$16 sps:$4 sm:$0xff]  }
  0x99   :  { %v356_v16 = vor.u32 %v354_v5, %v340_v45  ;;  %v10067_v5 = vld [vmem:[#allocation7 + $0x1c0] ss:$16 sps:$4 sm:$0xff]  }
  0x9a   :  { %725 = vmatpush1.bf16.msra.mxu0 %v9957_v48  ;;  %v336_v48 = vor.u32 %v335_v44, %v331_v37  ;;  %v10039_v44 = vld [vmem:[#allocation7 + $0x124] ss:$16 sps:$4 sm:$0xff]  }
  0x9b   :  { %786 = vmatpush1.bf16.msra.mxu1 %v9958_v49  ;;  %726 = vmatprep.subr.bf16.mxu0 %v9959_v58  ;;  %v9991_v49 = vld [vmem:[#allocation7 + $0x24] ss:$16 sps:$4 sm:$0xff]  }
  0x9c   :  { %787 = vmatprep.subr.bf16.mxu1 %v9961_v59  ;;  %v341_v50 = vsel %vm329_vm3, %v336_v48, %v340_v45  ;;  %v10003_v58 = vld [vmem:[#allocation7 + $0x64] ss:$16 sps:$4 sm:$0xff]   ;;  %v10006_v59 = vld [vmem:[#allocation7 + $0x6c] ss:$16 sps:$4 sm:$0xff]  }
  0x9d   :  { %v10042_v45 = vld [vmem:[#allocation7 + $0x12c] ss:$16 sps:$4 sm:$0xff]   ;;  %v10045_v48 = vld [vmem:[#allocation7 + $0x144] ss:$16 sps:$4 sm:$0xff]  }
  0x9e   :  { %727 = vmatpush1.bf16.msra.mxu0 %v9963_v60  ;;  %v10001_v60 = vld [vmem:[#allocation7 + $0x60] ss:$16 sps:$4 sm:$0xff]  }
  0x9f   :  { %788 = vmatpush1.bf16.msra.mxu1 %v9964_v61  ;;  %728 = vmatprep.subr.bf16.mxu0 %v9965_v10  ;;  %v10004_v61 = vld [vmem:[#allocation7 + $0x68] ss:$16 sps:$4 sm:$0xff]   ;;  %v262_v10 = vpack.c.bf16 %v258_v7, %v258_v7  ;;  %v10075_v7 = vld [vmem:[#allocation7 + $0x1e4] ss:$16 sps:$4 sm:$0xff]  }
  0xa0   :  { %789 = vmatprep.subr.bf16.mxu1 %v9967_v11  ;;  %v10015_v11 = vld [vmem:[#allocation7 + $0xa4] ss:$16 sps:$4 sm:$0xff]  }
  0xa2   :  { %729 = vmatpush1.bf16.msra.mxu0 %v9969_v14  ;;  %v364_v14 = vor.u32 %v362_v3, %v11092_v33  ;;  %v10030_v33 = vld [vmem:[#allocation7 + $0xec] ss:$16 sps:$4 sm:$0xff]   ;;  %v10069_v3 = vld [vmem:[#allocation7 + $0x1c4] ss:$16 sps:$4 sm:$0xff]  }
  0xa3   :  { %790 = vmatpush1.bf16.msra.mxu1 %v9970_v15  ;;  %730 = vmatprep.subr.bf16.mxu0 %v9971_v17  ;;  %v366_v15 = vshll.u32 %v263_v6, 16  ;;  %v358_v17 = vshll.u32 %v262_v10, 16 }
  0xa4   :  { %791 = vmatprep.subr.bf16.mxu1 %v9973_v18  ;;  %v373_v18 = vshrl.u32 %v263_v6, 16  ;;  %v10070_v6 = vld [vmem:[#allocation7 + $0x1c8] ss:$16 sps:$4 sm:$0xff]  }
  0xa5   :  { %v368_v19 = vrot.slane %v366_v15, 1 }
  0xa6   :  { %731 = vmatpush1.bf16.msra.mxu0 %v9975_v21  ;;  %v10016_v21 = vld [vmem:[#allocation7 + $0xa8] ss:$16 sps:$4 sm:$0xff]  }
  0xa7   :  { %792 = vmatpush1.bf16.msra.mxu1 %v9976_v23  ;;  %732 = vmatprep.subr.bf16.mxu0 %v9977_v26  ;;  %v360_v23 = vrot.slane %v358_v17, 1  ;;  %v369_v26 = vsel %vm329_vm3, %v364_v14, %v368_v19  ;;  %v375_v28 = vor.u32 %v373_v18, %v368_v19  ;;  %v10084_v14 = vld [vmem:[#allocation7 + $0x40c] ss:$16 sps:$4 sm:$0xff]   ;;  %v10082_v17 = vld [vmem:[#allocation7 + $0x408] ss:$16 sps:$4 sm:$0xff]  }
  0xa8   :  { %793 = vmatprep.subr.bf16.mxu1 %v9979_v29  ;;  %v370_v29 = vshrl.u32 %v262_v10, 16  ;;  %v10076_v10 = vld [vmem:[#allocation7 + $0x1e8] ss:$16 sps:$4 sm:$0xff]   ;;  %v10087_v18 = vld [vmem:[#allocation7 + $0x424] ss:$16 sps:$4 sm:$0xff]  }
  0xa9   :  { %v361_v27 = vsel %vm329_vm3, %v356_v16, %v360_v23  ;;  %v10079_v16 = vld [vmem:[#allocation7 + $0x400] ss:$16 sps:$4 sm:$0xff]   ;;  %v10090_v19 = vld [vmem:[#allocation7 + $0x42c] ss:$16 sps:$4 sm:$0xff]  }
  0xaa   :  { %733 = vmatpush1.bf16.msra.mxu0 %v9981_v35  ;;  %v10025_v35 = vld [vmem:[#allocation7 + $0xe0] ss:$16 sps:$4 sm:$0xff]   ;;  %v372_v37 = vor.u32 %v370_v29, %v360_v23  ;;  %v10093_v23 = vld [vmem:[#allocation7 + $0x444] ss:$16 sps:$4 sm:$0xff]   ;;  %v1267_v29 = vld [vmem:[#allocation2 + $0x8] sm:$0xfc] }
  0xab   :  { %794 = vmatpush1.bf16.msra.mxu1 %v9982_v39  ;;  %1144 = vmatprep.subr.bf16.mxu0 %v9985_v40  ;;  %v10033_v39 = vld [vmem:[#allocation7 + $0x104] ss:$16 sps:$4 sm:$0xff]   ;;  %v10036_v40 = vld [vmem:[#allocation7 + $0x10c] ss:$16 sps:$4 sm:$0xff]  }
  0xac   :  { %1205 = vmatprep.subr.bf16.mxu1 %v9988_v43  ;;  %v10034_v43 = vld [vmem:[#allocation7 + $0x108] ss:$16 sps:$4 sm:$0xff]  }
  0xad   :  { %735 = vmatmul.mubr.bf16.vlgmr.msra.gmra.mrb[0].mxu0 %v341_v50 }
  0xae   :  { %796 = vmatmul.mubr.bf16.vlgmr.msra.gmra.mrb[0].mxu1 %v341_v50  ;;  %1145 = vmatpush1.bf16.msra.mxu0 %v9983_v46  ;;  %v10037_v46 = vld [vmem:[#allocation7 + $0x120] ss:$16 sps:$4 sm:$0xff]  }
  0xaf   :  { %1206 = vmatpush1.bf16.msra.mxu1 %v9986_v47  ;;  %1146 = vmatprep.subr.bf16.mxu0 %v9991_v49  ;;  %v10040_v47 = vld [vmem:[#allocation7 + $0x128] ss:$16 sps:$4 sm:$0xff]   ;;  %v10048_v49 = vld [vmem:[#allocation7 + $0x14c] ss:$16 sps:$4 sm:$0xff]   ;;  %v10043_v50 = vld [vmem:[#allocation7 + $0x140] ss:$16 sps:$4 sm:$0xff]  }
  0xb0   :  { %1207 = vmatprep.subr.bf16.mxu1 %v9994_v51  ;;  %744 = vmatprep.mubr.bf16.mxu0 %v369_v26  ;;  %v10046_v51 = vld [vmem:[#allocation7 + $0x148] ss:$16 sps:$4 sm:$0xff]  }
  0xb1   :  { %805 = vmatprep.mubr.bf16.mxu1 %v369_v26  ;;  %v185_v26 = vld [vmem:[#allocation2 + $0x48] sm:$0x3] }
  0xb2   :  { %1147 = vmatpush1.bf16.msra.mxu0 %v9989_v52  ;;  %v10051_v52 = vld [vmem:[#allocation7 + $0x164] ss:$16 sps:$4 sm:$0xff]  }
  0xb3   :  { %1208 = vmatpush1.bf16.msra.mxu1 %v9992_v53  ;;  %1148 = vmatprep.subr.bf16.mxu0 %v9997_v54  ;;  %v10054_v53 = vld [vmem:[#allocation7 + $0x16c] ss:$16 sps:$4 sm:$0xff]   ;;  %v10049_v54 = vld [vmem:[#allocation7 + $0x160] ss:$16 sps:$4 sm:$0xff]  }
  0xb4   :  { %1209 = vmatprep.subr.bf16.mxu1 %v10000_v55  ;;  %v10052_v55 = vld [vmem:[#allocation7 + $0x168] ss:$16 sps:$4 sm:$0xff]  }
  0xb5   :  { %745 = vmatmul.mubr.bf16.gmra.mrb[4].mxu0 %v361_v27 }
  0xb6   :  { %1149 = vmatpush1.bf16.msra.mxu0 %v9995_v56  ;;  %806 = vmatmul.mubr.bf16.gmra.mrb[4].mxu1 %v361_v27  ;;  %v10057_v56 = vld [vmem:[#allocation7 + $0x184] ss:$16 sps:$4 sm:$0xff]  }
  0xb7   :  { %1210 = vmatpush1.bf16.msra.mxu1 %v9998_v57  ;;  %1150 = vmatprep.subr.bf16.mxu0 %v10003_v58  ;;  %v10060_v57 = vld [vmem:[#allocation7 + $0x18c] ss:$16 sps:$4 sm:$0xff]   ;;  %v10055_v58 = vld [vmem:[#allocation7 + $0x180] ss:$16 sps:$4 sm:$0xff]   ;;  %v10099_v27 = vld [vmem:[#allocation7 + $0x464] ss:$16 sps:$4 sm:$0xff]  }
  0xb8   :  { %1211 = vmatprep.subr.bf16.mxu1 %v10006_v59  ;;  %754 = vmatprep.mubr.bf16.mxu0 %v375_v28  ;;  %v10058_v59 = vld [vmem:[#allocation7 + $0x188] ss:$16 sps:$4 sm:$0xff]  }
  0xb9   :  { %815 = vmatprep.mubr.bf16.mxu1 %v375_v28  ;;  %v10102_v28 = vld [vmem:[#allocation7 + $0x46c] ss:$16 sps:$4 sm:$0xff]  }
  0xba   :  { %1151 = vmatpush1.bf16.msra.mxu0 %v10001_v60  ;;  %v10063_v60 = vld [vmem:[#allocation7 + $0x1a4] ss:$16 sps:$4 sm:$0xff]  }
  0xbb   :  { %1212 = vmatpush1.bf16.msra.mxu1 %v10004_v61  ;;  %1152 = vmatprep.subr.bf16.mxu0 %v10009_v63  ;;  %v10066_v61 = vld [vmem:[#allocation7 + $0x1ac] ss:$16 sps:$4 sm:$0xff]   ;;  %v10061_v63 = vld [vmem:[#allocation7 + $0x1a0] ss:$16 sps:$4 sm:$0xff]  }
  0xbc   :  { %1213 = vmatprep.subr.bf16.mxu1 %v10012_v2  ;;  %v10064_v2 = vld [vmem:[#allocation7 + $0x1a8] ss:$16 sps:$4 sm:$0xff]  }
  0xbd   :  { %755 = vmatmul.mubr.bf16.gmra.mrb[8].mxu0 %v372_v37 }
  0xbe   :  { %1153 = vmatpush1.bf16.msra.mxu0 %v10007_v8  ;;  %816 = vmatmul.mubr.bf16.gmra.mrb[8].mxu1 %v372_v37  ;;  %v10078_v8 = vld [vmem:[#allocation7 + $0x1ec] ss:$16 sps:$4 sm:$0xff]   ;;  %v1271_v37 = vpack.c.bf16 %v11079_v62, %v1267_v29  ;;  %v10109_v62 = vld [vmem:[#allocation7 + $0x4a0] ss:$16 sps:$4 sm:$0xff]  }
  0xbf   :  { %1214 = vmatpush1.bf16.msra.mxu1 %v10010_v9  ;;  %1154 = vmatprep.subr.bf16.mxu0 %v10015_v11  ;;  %v10073_v9 = vld [vmem:[#allocation7 + $0x1e0] ss:$16 sps:$4 sm:$0xff]  }
  0xc0   :  { %1215 = vmatprep.subr.bf16.mxu1 %v10018_v13  ;;  %1176 = vmatprep.mubr.bf16.mxu0 %v187_v41  ;;  %v176_v11 = vld [vmem:[#allocation2] sm:$0xff] }
  0xc1   :  { %1237 = vmatprep.mubr.bf16.mxu1 %v187_v41  ;;  %v10081_v13 = vld [vmem:[#allocation7 + $0x404] ss:$16 sps:$4 sm:$0xff]   ;;  %v186_v15 = vpack.c.bf16 %v11083_v12, %v176_v11  ;;  %v10091_v12 = vld [vmem:[#allocation7 + $0x440] ss:$16 sps:$4 sm:$0xff]   ;;  %v10156_v11 = vld [vmem:[#allocation7 + $0x58c] ss:$16 sps:$4 sm:$0xff]  }
  0xc2   :  { %1155 = vmatpush1.bf16.msra.mxu0 %v10013_v20  ;;  %v10085_v20 = vld [vmem:[#allocation7 + $0x420] ss:$16 sps:$4 sm:$0xff]   ;;  %v10111_v41 = vld [vmem:[#allocation7 + $0x4a4] ss:$16 sps:$4 sm:$0xff]  }
  0xc3   :  { %1216 = vmatpush1.bf16.msra.mxu1 %v10016_v21  ;;  %1156 = vmatprep.subr.bf16.mxu0 %v10021_v24  ;;  %v10088_v21 = vld [vmem:[#allocation7 + $0x428] ss:$16 sps:$4 sm:$0xff]   ;;  %v10096_v24 = vld [vmem:[#allocation7 + $0x44c] ss:$16 sps:$4 sm:$0xff]  }
  0xc4   :  { %1217 = vmatprep.subr.bf16.mxu1 %v10024_v25  ;;  %v10094_v25 = vld [vmem:[#allocation7 + $0x448] ss:$16 sps:$4 sm:$0xff]  }
  0xc6   :  { %1157 = vmatpush1.bf16.msra.mxu0 %v10019_v30  ;;  %v10097_v30 = vld [vmem:[#allocation7 + $0x460] ss:$16 sps:$4 sm:$0xff]  }
  0xc7   :  { %1218 = vmatpush1.bf16.msra.mxu1 %v10022_v31  ;;  %1158 = vmatprep.subr.bf16.mxu0 %v10027_v32  ;;  %v10100_v31 = vld [vmem:[#allocation7 + $0x468] ss:$16 sps:$4 sm:$0xff]   ;;  %v191_v32 = vpack.c.bf16 %v185_v26, %v185_v26  ;;  %v10174_v26 = vld [vmem:[#allocation7 + $0x5ec] ss:$16 sps:$4 sm:$0xff]  }
  0xc8   :  { %1219 = vmatprep.subr.bf16.mxu1 %v10030_v33  ;;  %v184_v33 = vld [vmem:[#allocation2 + $0x40] sm:$0x3] }
  0xca   :  { %1159 = vmatpush1.bf16.msra.mxu0 %v10025_v35  ;;  %v10105_v35 = vld [vmem:[#allocation7 + $0x484] ss:$16 sps:$4 sm:$0xff]  }
  0xcb   :  { %1220 = vmatpush1.bf16.msra.mxu1 %v10028_v36  ;;  %1160 = vmatprep.subr.bf16.mxu0 %v10033_v39  ;;  %v10108_v36 = vld [vmem:[#allocation7 + $0x48c] ss:$16 sps:$4 sm:$0xff]   ;;  %v10106_v39 = vld [vmem:[#allocation7 + $0x488] ss:$16 sps:$4 sm:$0xff]  }
  0xcc   :  { %1221 = vmatprep.subr.bf16.mxu1 %v10036_v40  ;;  %v190_v40 = vpack.c.bf16 %v184_v33, %v184_v33 }
  0xce   :  { %1161 = vmatpush1.bf16.msra.mxu0 %v10031_v42  ;;  %v10114_v42 = vld [vmem:[#allocation7 + $0x4ac] ss:$16 sps:$4 sm:$0xff]  }
  0xcf   :  { %1222 = vmatpush1.bf16.msra.mxu1 %v10034_v43  ;;  %1162 = vmatprep.subr.bf16.mxu0 %v10039_v44  ;;  %v1349_v43 = vrot.slane %v1271_v37, 1  ;;  %v1350_v44 = vrot.slane %v11088_v22, 1 }
  0xd0   :  { %1223 = vmatprep.subr.bf16.mxu1 %v10042_v45  ;;  %v10112_v45 = vld [vmem:[#allocation7 + $0x4a8] ss:$16 sps:$4 sm:$0xff]  }
  0xd2   :  { %1163 = vmatpush1.bf16.msra.mxu0 %v10037_v46  ;;  %v10117_v46 = vld [vmem:[#allocation7 + $0x4c4] ss:$16 sps:$4 sm:$0xff]  }
  0xd3   :  { %1224 = vmatpush1.bf16.msra.mxu1 %v10040_v47  ;;  %1164 = vmatprep.subr.bf16.mxu0 %v10045_v48  ;;  %v10120_v47 = vld [vmem:[#allocation7 + $0x4cc] ss:$16 sps:$4 sm:$0xff]   ;;  %v1351_v48 = vsel %vm1345_vm4, %v1349_v43, %v1350_v44 }
  0xd4   :  { %1225 = vmatprep.subr.bf16.mxu1 %v10048_v49  ;;  %v10115_v49 = vld [vmem:[#allocation7 + $0x4c0] ss:$16 sps:$4 sm:$0xff]  }
  0xd6   :  { %1165 = vmatpush1.bf16.msra.mxu0 %v10043_v50  ;;  %v10118_v50 = vld [vmem:[#allocation7 + $0x4c8] ss:$16 sps:$4 sm:$0xff]  }
  0xd7   :  { %1226 = vmatpush1.bf16.msra.mxu1 %v10046_v51  ;;  %1166 = vmatprep.subr.bf16.mxu0 %v10051_v52  ;;  %v10123_v51 = vld [vmem:[#allocation7 + $0x4e4] ss:$16 sps:$4 sm:$0xff]   ;;  %v10126_v52 = vld [vmem:[#allocation7 + $0x4ec] ss:$16 sps:$4 sm:$0xff]  }
  0xd8   :  { %1227 = vmatprep.subr.bf16.mxu1 %v10054_v53  ;;  %v10121_v53 = vld [vmem:[#allocation7 + $0x4e0] ss:$16 sps:$4 sm:$0xff]  }
  0xda   :  { %1167 = vmatpush1.bf16.msra.mxu0 %v10049_v54  ;;  %v10124_v54 = vld [vmem:[#allocation7 + $0x4e8] ss:$16 sps:$4 sm:$0xff]  }
  0xdb   :  { %1228 = vmatpush1.bf16.msra.mxu1 %v10052_v55  ;;  %1168 = vmatprep.subr.bf16.mxu0 %v10057_v56  ;;  %v10129_v55 = vld [vmem:[#allocation7 + $0x504] ss:$16 sps:$4 sm:$0xff]   ;;  %v10132_v56 = vld [vmem:[#allocation7 + $0x50c] ss:$16 sps:$4 sm:$0xff]  }
  0xdc   :  { %1229 = vmatprep.subr.bf16.mxu1 %v10060_v57  ;;  %v10127_v57 = vld [vmem:[#allocation7 + $0x500] ss:$16 sps:$4 sm:$0xff]  }
  0xde   :  { %1169 = vmatpush1.bf16.msra.mxu0 %v10055_v58  ;;  %v10130_v58 = vld [vmem:[#allocation7 + $0x508] ss:$16 sps:$4 sm:$0xff]  }
  0xdf   :  { %1230 = vmatpush1.bf16.msra.mxu1 %v10058_v59  ;;  %1170 = vmatprep.subr.bf16.mxu0 %v10063_v60  ;;  %v10135_v59 = vld [vmem:[#allocation7 + $0x524] ss:$16 sps:$4 sm:$0xff]   ;;  %v10138_v60 = vld [vmem:[#allocation7 + $0x52c] ss:$16 sps:$4 sm:$0xff]  }
  0xe0   :  { %1231 = vmatprep.subr.bf16.mxu1 %v10066_v61  ;;  %v10133_v61 = vld [vmem:[#allocation7 + $0x520] ss:$16 sps:$4 sm:$0xff]  }
  0xe2   :  { %1171 = vmatpush1.bf16.msra.mxu0 %v10061_v63  ;;  %v10136_v63 = vld [vmem:[#allocation7 + $0x528] ss:$16 sps:$4 sm:$0xff]  }
  0xe3   :  { %1232 = vmatpush1.bf16.msra.mxu1 %v10064_v2  ;;  %1172 = vmatprep.subr.bf16.mxu0 %v10069_v3  ;;  %v10141_v2 = vld [vmem:[#allocation7 + $0x544] ss:$16 sps:$4 sm:$0xff]   ;;  %v10144_v3 = vld [vmem:[#allocation7 + $0x54c] ss:$16 sps:$4 sm:$0xff]  }
  0xe4   :  { %1233 = vmatprep.subr.bf16.mxu1 %v10072_v4  ;;  %v10139_v4 = vld [vmem:[#allocation7 + $0x540] ss:$16 sps:$4 sm:$0xff]  }
  0xe6   :  { %1173 = vmatpush1.bf16.msra.mxu0 %v10067_v5  ;;  %v10142_v5 = vld [vmem:[#allocation7 + $0x548] ss:$16 sps:$4 sm:$0xff]  }
  0xe7   :  { %1234 = vmatpush1.bf16.msra.mxu1 %v10070_v6  ;;  %1174 = vmatprep.subr.bf16.mxu0 %v10075_v7  ;;  %v10147_v6 = vld [vmem:[#allocation7 + $0x564] ss:$16 sps:$4 sm:$0xff]   ;;  %v10150_v7 = vld [vmem:[#allocation7 + $0x56c] ss:$16 sps:$4 sm:$0xff]  }
  0xe8   :  { %1235 = vmatprep.subr.bf16.mxu1 %v10078_v8  ;;  %v10145_v8 = vld [vmem:[#allocation7 + $0x560] ss:$16 sps:$4 sm:$0xff]  }
  0xea   :  { %1175 = vmatpush1.bf16.msra.mxu0 %v10073_v9  ;;  %v10148_v9 = vld [vmem:[#allocation7 + $0x568] ss:$16 sps:$4 sm:$0xff]  }
  0xeb   :  { %1236 = vmatpush1.bf16.msra.mxu1 %v10076_v10  ;;  %1682 = vmatprep.subr.bf16.mxu0 %v10081_v13  ;;  %v10153_v10 = vld [vmem:[#allocation7 + $0x584] ss:$16 sps:$4 sm:$0xff]   ;;  %v10151_v13 = vld [vmem:[#allocation7 + $0x580] ss:$16 sps:$4 sm:$0xff]  }
  0xec   :  { %1743 = vmatprep.subr.bf16.mxu1 %v10084_v14  ;;  %v10154_v14 = vld [vmem:[#allocation7 + $0x588] ss:$16 sps:$4 sm:$0xff]  }
  0xed   :  { %1177 = vmatmul.mubr.bf16.vlgmr.msra.gmra.mrb[0].mxu0 %v186_v15 }
  0xee   :  { %1238 = vmatmul.mubr.bf16.vlgmr.msra.gmra.mrb[0].mxu1 %v186_v15  ;;  %1683 = vmatpush1.bf16.msra.mxu0 %v10079_v16  ;;  %v10159_v15 = vld [vmem:[#allocation7 + $0x5a4] ss:$16 sps:$4 sm:$0xff]   ;;  %v10162_v16 = vld [vmem:[#allocation7 + $0x5ac] ss:$16 sps:$4 sm:$0xff]  }
  0xef   :  { %1744 = vmatpush1.bf16.msra.mxu1 %v10082_v17  ;;  %1684 = vmatprep.subr.bf16.mxu0 %v10087_v18  ;;  %v10157_v17 = vld [vmem:[#allocation7 + $0x5a0] ss:$16 sps:$4 sm:$0xff]   ;;  %v10160_v18 = vld [vmem:[#allocation7 + $0x5a8] ss:$16 sps:$4 sm:$0xff]  }
  0xf0   :  { %1745 = vmatprep.subr.bf16.mxu1 %v10090_v19  ;;  %1186 = vmatprep.mubr.bf16.mxu0 %v11088_v22  ;;  %v10165_v19 = vld [vmem:[#allocation7 + $0x5c4] ss:$16 sps:$4 sm:$0xff]  }
  0xf1   :  { %1247 = vmatprep.mubr.bf16.mxu1 %v11088_v22 }
  0xf2   :  { %1685 = vmatpush1.bf16.msra.mxu0 %v10085_v20  ;;  %v10168_v20 = vld [vmem:[#allocation7 + $0x5cc] ss:$16 sps:$4 sm:$0xff]  }
  0xf3   :  { %1746 = vmatpush1.bf16.msra.mxu1 %v10088_v21  ;;  %1686 = vmatprep.subr.bf16.mxu0 %v10093_v23  ;;  %v1266_v21 = vld [vmem:[#allocation2] sm:$0xfc]  ;;  %v1269_v23 = vld [vmem:[#allocation2 + $0x48] sm:$0xf] }
  0xf4   :  { %1747 = vmatprep.subr.bf16.mxu1 %v10096_v24  ;;  %v10163_v24 = vld [vmem:[#allocation7 + $0x5c0] ss:$16 sps:$4 sm:$0xff]   ;;  %v1273_v29 = vpack.c.bf16 %v1269_v23, %v1269_v23 }
  0xf5   :  { %1187 = vmatmul.mubr.bf16.gmra.mrb[4].mxu0 %v11094_v34 }
  0xf6   :  { %1248 = vmatmul.mubr.bf16.gmra.mrb[4].mxu1 %v11094_v34  ;;  %1687 = vmatpush1.bf16.msra.mxu0 %v10091_v12  ;;  %v10166_v12 = vld [vmem:[#allocation7 + $0x5c8] ss:$16 sps:$4 sm:$0xff]  }
  0xf7   :  { %1748 = vmatpush1.bf16.msra.mxu1 %v10094_v25  ;;  %1688 = vmatprep.subr.bf16.mxu0 %v10099_v27  ;;  %v10171_v25 = vld [vmem:[#allocation7 + $0x5e4] ss:$16 sps:$4 sm:$0xff]  }
  0xf8   :  { %1749 = vmatprep.subr.bf16.mxu1 %v10102_v28  ;;  %1196 = vmatprep.mubr.bf16.mxu0 %v191_v32  ;;  %v10759_v27 = vld [vmem:[#allocation2 + $0x10] sm:$0xff] }
  0xf9   :  { %1257 = vmatprep.mubr.bf16.mxu1 %v191_v32  ;;  %v1270_v28 = vpack.c.bf16 %v10759_v27, %v1266_v21  ;;  %v1268_v32 = vld [vmem:[#allocation2 + $0x40] sm:$0xf] }
  0xfa   :  { %1689 = vmatpush1.bf16.msra.mxu0 %v10097_v30  ;;  %v10169_v30 = vld [vmem:[#allocation7 + $0x5e0] ss:$16 sps:$4 sm:$0xff]  }
  0xfb   :  { %1750 = vmatpush1.bf16.msra.mxu1 %v10100_v31  ;;  %1690 = vmatprep.subr.bf16.mxu0 %v10105_v35  ;;  %v10172_v31 = vld [vmem:[#allocation7 + $0x5e8] ss:$16 sps:$4 sm:$0xff]   ;;  %v1346_v33 = vrot.slane %v1270_v28, 1  ;;  %v1347_v35 = vrot.slane %v11094_v34, 1 }
  0xfc   :  { %1751 = vmatprep.subr.bf16.mxu1 %v10108_v36  ;;  %v1354_v36 = vrot.slane %v1273_v29, 1 }
  0xfd   :  { %1197 = vmatmul.mubr.bf16.gmra.mrb[12].mxu0 %v190_v40  ;;  %v1348_v37 = vsel %vm1345_vm4, %v1346_v33, %v1347_v35 }
  0xfe   :  { %1258 = vmatmul.mubr.bf16.gmra.mrb[12].mxu1 %v190_v40  ;;  %1691 = vmatpush1.bf16.msra.mxu0 %v10103_v38  ;;  %v1272_v38 = vpack.c.bf16 %v1268_v32, %v1268_v32 }
  0xff   :  { %1752 = vmatpush1.bf16.msra.mxu1 %v10106_v39  ;;  %1692 = vmatprep.subr.bf16.mxu0 %v10111_v41  ;;  %v1355_v39 = vsel %vm1345_vm4, %v1350_v44, %v1354_v36 }
 0x100   :  { %1753 = vmatprep.subr.bf16.mxu1 %v10114_v42  ;;  %1714 = vmatprep.mubr.bf16.mxu0 %v1351_v48  ;;  %v1352_v40 = vrot.slane %v1272_v38, 1 }
 0x101   :  { %1775 = vmatprep.mubr.bf16.mxu1 %v1351_v48 }
 0x102   :  { %1693 = vmatpush1.bf16.msra.mxu0 %v10109_v62  ;;  %v1353_v41 = vsel %vm1345_vm4, %v1347_v35, %v1352_v40 }
 0x103   :  { %1754 = vmatpush1.bf16.msra.mxu1 %v10112_v45  ;;  %1694 = vmatprep.subr.bf16.mxu0 %v10117_v46 }
 0x104   :  { %1755 = vmatprep.subr.bf16.mxu1 %v10120_v47 }
 0x106   :  { %1695 = vmatpush1.bf16.msra.mxu0 %v10115_v49 }
 0x107   :  { %1756 = vmatpush1.bf16.msra.mxu1 %v10118_v50  ;;  %1696 = vmatprep.subr.bf16.mxu0 %v10123_v51 }
 0x108   :  { %1757 = vmatprep.subr.bf16.mxu1 %v10126_v52 }
 0x10a   :  { %1697 = vmatpush1.bf16.msra.mxu0 %v10121_v53 }
 0x10b   :  { %1758 = vmatpush1.bf16.msra.mxu1 %v10124_v54  ;;  %1698 = vmatprep.subr.bf16.mxu0 %v10129_v55 }
 0x10c   :  { %1759 = vmatprep.subr.bf16.mxu1 %v10132_v56 }
 0x10e   :  { %1699 = vmatpush1.bf16.msra.mxu0 %v10127_v57 }
 0x10f   :  { %1760 = vmatpush1.bf16.msra.mxu1 %v10130_v58  ;;  %1700 = vmatprep.subr.bf16.mxu0 %v10135_v59  ;;  %v1831_v59 = vshrl.u32 %v12817_v0, 7 }
 0x110   :  { %1761 = vmatprep.subr.bf16.mxu1 %v10138_v60 }
 0x111   :  { %v11133_v60 = vsub.s32 1, %v1831_v59 }
 0x112   :  { %1701 = vmatpush1.bf16.msra.mxu0 %v10133_v61  ;;  %v11135_v61 = vsub.s32 3, %v1831_v59 }
 0x113   :  { %1762 = vmatpush1.bf16.msra.mxu1 %v10136_v63  ;;  %1702 = vmatprep.subr.bf16.mxu0 %v10141_v2  ;;  %12884 = vst [vmem:[#allocation21_spill] sm:$0xff] %v11133_v60  ;;  %v1824_v63 = vld [vmem:[#allocation10] ss:$8 sm:$0xf]  ;;  %v11137_v2 = vsub.s32 0, %v1831_v59 }
 0x114   :  { %1763 = vmatprep.subr.bf16.mxu1 %v10144_v3  ;;  %12885 = vst [vmem:[#allocation22_spill] sm:$0xff] %v11135_v61  ;;  %v11139_v3 = vsub.s32 2, %v1831_v59  ;;  %v2083_v59 = vld [vmem:[%s12812_s4 + $0x180] sm:$0xff] }
 0x115   :  { %12886 = vst [vmem:[#allocation23_spill] sm:$0xff] %v11137_v2 }
 0x116   :  { %1703 = vmatpush1.bf16.msra.mxu0 %v10139_v4  ;;  %12887 = vst [vmem:[#allocation24_spill] sm:$0xff] %v11139_v3 }
 0x117   :  { %1764 = vmatpush1.bf16.msra.mxu1 %v10142_v5  ;;  %1704 = vmatprep.subr.bf16.mxu0 %v10147_v6  ;;  %v11142_v6 = vrot.slane %v1824_v63, %v11133_v60 }
 0x118   :  { %1765 = vmatprep.subr.bf16.mxu1 %v10150_v7  ;;  %v11145_v7 = vrot.slane %v1824_v63, %v11135_v61 }
 0x11a   :  { %1705 = vmatpush1.bf16.msra.mxu0 %v10145_v8  ;;  %v11148_v8 = vrot.slane %v1824_v63, %v11137_v2 }
 0x11b   :  { %1766 = vmatpush1.bf16.msra.mxu1 %v10148_v9  ;;  %1706 = vmatprep.subr.bf16.mxu0 %v10153_v10  ;;  %v11151_v9 = vrot.slane %v1824_v63, %v11139_v3 }
 0x11c   :  { %1767 = vmatprep.subr.bf16.mxu1 %v10156_v11 }
 0x11e   :  { %1707 = vmatpush1.bf16.msra.mxu0 %v10151_v13 }
 0x11f   :  { %1768 = vmatpush1.bf16.msra.mxu1 %v10154_v14  ;;  %1708 = vmatprep.subr.bf16.mxu0 %v10159_v15 }
 0x120   :  { %1769 = vmatprep.subr.bf16.mxu1 %v10162_v16 }
 0x122   :  { %1709 = vmatpush1.bf16.msra.mxu0 %v10157_v17 }
 0x123   :  { %1770 = vmatpush1.bf16.msra.mxu1 %v10160_v18  ;;  %1710 = vmatprep.subr.bf16.mxu0 %v10165_v19 }
 0x124   :  { %1771 = vmatprep.subr.bf16.mxu1 %v10168_v20 }
 0x126   :  { %1711 = vmatpush1.bf16.msra.mxu0 %v10163_v24 }
 0x127   :  { %1772 = vmatpush1.bf16.msra.mxu1 %v10166_v12  ;;  %1712 = vmatprep.subr.bf16.mxu0 %v10171_v25 }
 0x128   :  { %1773 = vmatprep.subr.bf16.mxu1 %v10174_v26 }
 0x12a   :  { %1713 = vmatpush1.bf16.msra.mxu0 %v10169_v30 }
 0x12b   :  { %1774 = vmatpush1.bf16.msra.mxu1 %v10172_v31 }
 0x12d   :  { %1715 = vmatmul.mubr.bf16.vlgmr.msra.gmra.mrb[0].mxu0 %v1348_v37 }
 0x12e   :  { %1776 = vmatmul.mubr.bf16.vlgmr.msra.gmra.mrb[0].mxu1 %v1348_v37  ;;  %1724 = vmatprep.mubr.bf16.mxu0 %v1355_v39 }
 0x12f   :  { %1785 = vmatprep.mubr.bf16.mxu1 %v1355_v39 }
 0x135   :  { %1725 = vmatmul.mubr.bf16.gmra.mrb[4].mxu0 %v1353_v41 }
 0x136   :  { %1786 = vmatmul.mubr.bf16.gmra.mrb[4].mxu1 %v1353_v41  ;;  %1734 = vmatprep.mubr.bf16.mxu0 %v1354_v36 }
 0x137   :  { %1795 = vmatprep.mubr.bf16.mxu1 %v1354_v36 }
 0x13d   :  { %1735 = vmatmul.mubr.bf16.gmra.mrb[16].mxu0 %v1352_v40 }
 0x13e   :  { %1796 = vmatmul.mubr.bf16.gmra.mrb[16].mxu1 %v1352_v40  ;;  %1957 = vmatprep.mubr.f32.mxu0 %v12818_v1 }
 0x13f   :  { %2028 = vmatprep.mubr.f32.mxu1 %v12818_v1 }
 0x190   :  { %v756_v22 = vpop.f32.mrb[8].mxu0 }
 0x191   :  { %v817_v34 = vpop.f32.mrb[8].mxu1  ;;  %v758_v42 = vpop.f32.mrb[9].mxu0 }
 0x192   :  { %v819_v43 = vpop.f32.mrb[9].mxu1  ;;  %v760_v44 = vpop.f32.mrb[10].mxu0 }
 0x193   :  { %v821_v62 = vpop.f32.mrb[10].mxu1  ;;  %v761_v45 = vpop.f32.mrb[11].mxu0 }
 0x194   :  { %v822_v46 = vpop.f32.mrb[11].mxu1 }
 0x1d0   :  { %v1198_v47 = vpop.f32.mrb[12].mxu0 }
 0x1d1   :  { %v1259_v48 = vpop.f32.mrb[12].mxu1  ;;  %v11124_v49 = vadd.f32 %v1198_v47, %v756_v22  ;;  %v1200_v51 = vpop.f32.mrb[13].mxu0 }
 0x1d2   :  { %v11126_v50 = vadd.f32 %v1259_v48, %v817_v34  ;;  %v1261_v52 = vpop.f32.mrb[13].mxu1  ;;  %v11128_v53 = vadd.f32 %v1200_v51, %v758_v42  ;;  %v1202_v55 = vpop.f32.mrb[14].mxu0 }
 0x1d3   :  { %v11130_v54 = vadd.f32 %v1261_v52, %v819_v43  ;;  %v1263_v56 = vpop.f32.mrb[14].mxu1  ;;  %v1203_v57 = vpop.f32.mrb[15].mxu0 }
 0x1d4   :  { %v1264_v58 = vpop.f32.mrb[15].mxu1  ;;  %v2051_v57 = vld [vmem:[%s12812_s4 + $0x80] sm:$0xff] }
 0x1d5   :  { %v2052_v58 = vld [vmem:[%s12812_s4 + $0x88] sm:$0xff] }
 0x200   :  { %v1716_v4 = vpop.f32.mrb[0].mxu0 }
 0x201   :  { %v1777_v5 = vpop.f32.mrb[0].mxu1  ;;  %v1718_v10 = vpop.f32.mrb[1].mxu0  ;;  %v11172_v24 = vadd.f32 %v11148_v8, %v1716_v4 }
 0x202   :  { %v1779_v11 = vpop.f32.mrb[1].mxu1  ;;  %v1720_v13 = vpop.f32.mrb[2].mxu0  ;;  %v11160_v19 = vadd.f32 %v11142_v6, %v1718_v10  ;;  %v11175_v12 = vadd.f32 %v11151_v9, %v1777_v5  ;;  %v2084_v5 = vld [vmem:[%s12812_s4 + $0x188] sm:$0xff]  ;;  %v2035_v10 = vld [vmem:[%s12812_s4] sm:$0xff] }
 0x203   :  { %v1781_v14 = vpop.f32.mrb[2].mxu1  ;;  %v11154_v15 = vadd.f32 %v11148_v8, %v1720_v13  ;;  %v1722_v17 = vpop.f32.mrb[3].mxu0  ;;  %v11163_v20 = vadd.f32 %v11145_v7, %v1779_v11  ;;  %v2036_v11 = vld [vmem:[%s12812_s4 + $0x8] sm:$0xff] }
 0x204   :  { %v11157_v16 = vadd.f32 %v11151_v9, %v1781_v14  ;;  %v1783_v18 = vpop.f32.mrb[3].mxu1  ;;  %v11166_v21 = vadd.f32 %v11142_v6, %v1722_v17  ;;  %v2053_v17 = vld [vmem:[%s12812_s4 + $0x90] sm:$0xff] }
 0x205   :  { %v11169_v23 = vadd.f32 %v11145_v7, %v1783_v18  ;;  %v9445_v27 = vpack.c.bf16 %v11154_v15, %v11172_v24 }
 0x206   :  { %v9443_v25 = vpack.c.bf16 %v11166_v21, %v11160_v19  ;;  %v9453_v28 = vpack.c.bf16 %v11157_v16, %v11175_v12 }
 0x207   :  { %v9451_v26 = vpack.c.bf16 %v11169_v23, %v11163_v20 }
 0x208   :  { %v1726_v29 = vpop.f32.mrb[4].mxu0  ;;  %9444 = vmatprep.subr.bf16.mxu0 %v9443_v25 }
 0x209   :  { %v1787_v30 = vpop.f32.mrb[4].mxu1  ;;  %9452 = vmatprep.subr.bf16.mxu1 %v9451_v26  ;;  %v1728_v31 = vpop.f32.mrb[5].mxu0  ;;  %9446 = vmatpush1.bf16.msra.mxu0 %v9445_v27  ;;  %v11204_v42 = vadd.f32 %v11148_v8, %v1726_v29  ;;  %v2054_v26 = vld [vmem:[%s12812_s4 + $0x98] sm:$0xff]  ;;  %v2085_v27 = vld [vmem:[%s12812_s4 + $0x190] sm:$0xff] }
 0x20a   :  { %v1789_v32 = vpop.f32.mrb[5].mxu1  ;;  %9454 = vmatpush1.bf16.msra.mxu1 %v9453_v28  ;;  %v1730_v33 = vpop.f32.mrb[6].mxu0  ;;  %v11192_v40 = vadd.f32 %v11142_v6, %v1728_v31  ;;  %v11207_v43 = vadd.f32 %v11151_v9, %v1787_v30  ;;  %v2086_v28 = vld [vmem:[%s12812_s4 + $0x198] sm:$0xff]  ;;  %v11271_v30 = vpack.c.bf16 %v2052_v58, %v2051_v57  ;;  %v11273_v31 = vpack.c.bf16 %v2084_v5, %v2083_v59  ;;  %v2071_v58 = vld [vmem:[%s12812_s4 + $0x120] sm:$0xff]  ;;  %v2072_v59 = vld [vmem:[%s12812_s4 + $0x128] sm:$0xff] }
 0x20b   :  { %v1791_v35 = vpop.f32.mrb[6].mxu1  ;;  %v11186_v36 = vadd.f32 %v11148_v8, %v1730_v33  ;;  %v1732_v38 = vpop.f32.mrb[7].mxu0  ;;  %v11195_v41 = vadd.f32 %v11145_v7, %v1789_v32  ;;  %v11279_v32 = vpack.c.bf16 %v2036_v11, %v2035_v10  ;;  %v11361_v10 = vpack.c.bf16 %v2072_v59, %v2071_v58  ;;  %v2041_v11 = vld [vmem:[%s12812_s4 + $0x30] sm:$0xff]  ;;  %v2062_v58 = vld [vmem:[%s12812_s4 + $0xd8] sm:$0xff] }
 0x20c   :  { %v11189_v37 = vadd.f32 %v11151_v9, %v1791_v35  ;;  %v1793_v39 = vpop.f32.mrb[7].mxu1  ;;  %v11198_v22 = vadd.f32 %v11142_v6, %v1732_v38  ;;  %v11293_v35 = vpack.c.bf16 %v2054_v26, %v2053_v17  ;;  %v11295_v38 = vpack.c.bf16 %v2086_v28, %v2085_v27  ;;  %v2074_v17 = vld [vmem:[%s12812_s4 + $0x138] sm:$0xff]  ;;  %v2059_v26 = vld [vmem:[%s12812_s4 + $0xc0] sm:$0xff]  ;;  %v2060_v27 = vld [vmem:[%s12812_s4 + $0xc8] sm:$0xff] }
 0x20d   :  { %v11201_v34 = vadd.f32 %v11145_v7, %v1793_v39  ;;  %v9449_v45 = vpack.c.bf16 %v11186_v36, %v11204_v42  ;;  %v2069_v39 = vld [vmem:[%s12812_s4 + $0x110] sm:$0xff]  ;;  %v2091_v28 = vld [vmem:[%s12812_s4 + $0x1c0] sm:$0xff] }
 0x20e   :  { %v9447_v44 = vpack.c.bf16 %v11198_v22, %v11192_v40  ;;  %v9457_v46 = vpack.c.bf16 %v11189_v37, %v11207_v43  ;;  %v2093_v59 = vld [vmem:[%s12812_s4 + $0x1d0] sm:$0xff] }
 0x20f   :  { %v9455_v62 = vpack.c.bf16 %v11201_v34, %v11195_v41 }
 0x210   :  { %v1736_v47 = vpop.f32.mrb[16].mxu0  ;;  %9448 = vmatprep.subr.bf16.mxu0 %v9447_v44  ;;  %v2070_v44 = vld [vmem:[%s12812_s4 + $0x118] sm:$0xff] }
 0x211   :  { %v1797_v48 = vpop.f32.mrb[16].mxu1  ;;  %9456 = vmatprep.subr.bf16.mxu1 %v9455_v62  ;;  %v1820_v51 = vadd.f32 %v1736_v47, %v11124_v49  ;;  %v1738_v55 = vpop.f32.mrb[17].mxu0  ;;  %9450 = vmatpush1.bf16.msra.mxu0 %v9449_v45  ;;  %v2055_v62 = vld [vmem:[%s12812_s4 + $0xa0] sm:$0xff]  ;;  %v2056_v45 = vld [vmem:[%s12812_s4 + $0xa8] sm:$0xff] }
 0x212   :  { %v1822_v52 = vadd.f32 %v1797_v48, %v11126_v50  ;;  %v1799_v56 = vpop.f32.mrb[17].mxu1  ;;  %9458 = vmatpush1.bf16.msra.mxu1 %v9457_v46  ;;  %v1821_v49 = vadd.f32 %v1738_v55, %v11128_v53  ;;  %v1740_v63 = vpop.f32.mrb[18].mxu0  ;;  %v2067_v53 = vld [vmem:[%s12812_s4 + $0x100] sm:$0xff]  ;;  %v2088_v47 = vld [vmem:[%s12812_s4 + $0x1a8] sm:$0xff] }
 0x213   :  { %v1823_v50 = vadd.f32 %v1799_v56, %v11130_v54  ;;  %v1801_v4 = vpop.f32.mrb[18].mxu1  ;;  %v1741_v13 = vpop.f32.mrb[19].mxu0  ;;  %v2068_v54 = vld [vmem:[%s12812_s4 + $0x108] sm:$0xff]  ;;  %v11264_v29 = vadd.f32 %v11148_v8, %v1820_v51  ;;  %v2037_v8 = vld [vmem:[%s12812_s4 + $0x10] sm:$0xff]  ;;  %v2087_v46 = vld [vmem:[%s12812_s4 + $0x1a0] sm:$0xff]  ;;  %v11325_v51 = vpack.c.bf16 %v2070_v44, %v2069_v39  ;;  %v11335_v56 = vpack.c.bf16 %v2056_v45, %v2055_v62 }
 0x214   :  { %v1802_v14 = vpop.f32.mrb[19].mxu1  ;;  %v11249_v18 = vadd.f32 %v11142_v6, %v1821_v49  ;;  %v11267_v6 = vadd.f32 %v11151_v9, %v1822_v52  ;;  %v11281_v33 = vpack.c.bf16 %v2068_v54, %v2067_v53  ;;  %v2038_v9 = vld [vmem:[%s12812_s4 + $0x18] sm:$0xff]  ;;  %v2039_v52 = vld [vmem:[%s12812_s4 + $0x20] sm:$0xff]  ;;  %v2040_v55 = vld [vmem:[%s12812_s4 + $0x28] sm:$0xff]  ;;  %v11337_v57 = vpack.c.bf16 %v2088_v47, %v2087_v46 }
 0x215   :  { %v11252_v25 = vadd.f32 %v11145_v7, %v1823_v50  ;;  %v11269_v7 = vld [vmem:[#allocation13] sm:$0x3]  ;;  %v11323_v48 = vpack.c.bf16 %v2038_v9, %v2037_v8  ;;  %v2057_v49 = vld [vmem:[%s12812_s4 + $0xb0] sm:$0xff]  ;;  %v2058_v50 = vld [vmem:[%s12812_s4 + $0xb8] sm:$0xff]  ;;  %v11359_v5 = vpack.c.bf16 %v2040_v55, %v2039_v52  ;;  %v11407_v45 = vpack.c.bf16 %v2060_v27, %v2059_v26 }
 0x216   :  { %8675 = vmatprep.subr.msk.mxu0 %vm1880_vm5, %v11249_v18  ;;  %v2089_v63 = vld [vmem:[%s12812_s4 + $0x1b0] sm:$0xff]  ;;  %v2090_v4 = vld [vmem:[%s12812_s4 + $0x1b8] sm:$0xff]  ;;  %v11371_v14 = vpack.c.bf16 %v2058_v50, %v2057_v49  ;;  %v2092_v8 = vld [vmem:[%s12812_s4 + $0x1c8] sm:$0xff] }
 0x217   :  { %8678 = vmatprep.subr.msk.mxu1 %vm1880_vm5, %v11252_v25  ;;  %8676 = vmatpush1.msk.msra.mxu0 %vm1880_vm5, %v11264_v29  ;;  %v2042_v13 = vld [vmem:[%s12812_s4 + $0x38] sm:$0xff]  ;;  %v11373_v53 = vpack.c.bf16 %v2090_v4, %v2089_v63  ;;  %v2073_v54 = vld [vmem:[%s12812_s4 + $0x130] sm:$0xff]  ;;  %v2043_v44 = vld [vmem:[%s12812_s4 + $0x40] sm:$0xff]  ;;  %v11409_v46 = vpack.c.bf16 %v2092_v8, %v2091_v28 }
 0x218   :  { %8679 = vmatpush1.msk.msra.mxu1 %vm1880_vm5, %v11267_v6  ;;  %8677 = vmatmul.mubr.msk.f32.vlgmr.msra.gmra.mrb[20].mxu0 %vm1876_vm6, %v11269_v7  ;;  %v11395_v9 = vpack.c.bf16 %v2042_v13, %v2041_v11  ;;  %v11397_v39 = vpack.c.bf16 %v2074_v17, %v2073_v54  ;;  %v2044_v62 = vld [vmem:[%s12812_s4 + $0x48] sm:$0xff]  ;;  %v2075_v47 = vld [vmem:[%s12812_s4 + $0x140] sm:$0xff]  ;;  %v2061_v55 = vld [vmem:[%s12812_s4 + $0xd0] sm:$0xff] }
 0x219   :  { %8680 = vmatmul.mubr.msk.f32.vlgmr.msra.gmra.mrb[20].mxu1 %vm1876_vm6, %v11269_v7  ;;  %9460 = vmatprep.subr.bf16.mxu0 %v11271_v30  ;;  %v2076_v52 = vld [vmem:[%s12812_s4 + $0x148] sm:$0xff]  ;;  %v2094_v49 = vld [vmem:[%s12812_s4 + $0x1d8] sm:$0xff]  ;;  %v11431_v50 = vpack.c.bf16 %v2044_v62, %v2043_v44  ;;  %v2045_v4 = vld [vmem:[%s12812_s4 + $0x50] sm:$0xff]  ;;  %v11443_v13 = vpack.c.bf16 %v2062_v58, %v2061_v55 }
 0x21a   :  { %9492 = vmatprep.subr.bf16.mxu1 %v11273_v31  ;;  %9462 = vmatpush3.bf16.msra.mxu0 %v11279_v32  ;;  %v11433_v63 = vpack.c.bf16 %v2076_v52, %v2075_v47  ;;  %v2046_v11 = vld [vmem:[%s12812_s4 + $0x58] sm:$0xff]  ;;  %v11445_v54 = vpack.c.bf16 %v2094_v49, %v2093_v59  ;;  %v2077_v17 = vld [vmem:[%s12812_s4 + $0x150] sm:$0xff]  ;;  %v2063_v27 = vld [vmem:[%s12812_s4 + $0xe0] sm:$0xff] }
 0x21b   :  { %9494 = vmatpush3.bf16.msra.mxu1 %v11281_v33  ;;  %9464 = vmatprep.subr.bf16.mxu0 %v11293_v35  ;;  %v2078_v26 = vld [vmem:[%s12812_s4 + $0x158] sm:$0xff]  ;;  %v2064_v28 = vld [vmem:[%s12812_s4 + $0xe8] sm:$0xff]  ;;  %v2095_v8 = vld [vmem:[%s12812_s4 + $0x1e0] sm:$0xff]  ;;  %v11467_v62 = vpack.c.bf16 %v2046_v11, %v2045_v4 }
 0x21c   :  { %9496 = vmatprep.subr.bf16.mxu1 %v11295_v38  ;;  %v2096_v44 = vld [vmem:[%s12812_s4 + $0x1e8] sm:$0xff]  ;;  %v11469_v47 = vpack.c.bf16 %v2078_v26, %v2077_v17  ;;  %v2047_v52 = vld [vmem:[%s12812_s4 + $0x60] sm:$0xff]  ;;  %v11479_v58 = vpack.c.bf16 %v2064_v28, %v2063_v27  ;;  %v2065_v11 = vld [vmem:[%s12812_s4 + $0xf0] sm:$0xff] }
 0x21d   :  { %v2048_v55 = vld [vmem:[%s12812_s4 + $0x68] sm:$0xff]  ;;  %v11481_v59 = vpack.c.bf16 %v2096_v44, %v2095_v8  ;;  %v2079_v49 = vld [vmem:[%s12812_s4 + $0x160] sm:$0xff]  ;;  %v2066_v17 = vld [vmem:[%s12812_s4 + $0xf8] sm:$0xff] }
 0x21e   :  { %9466 = vmatpush3.bf16.msra.mxu0 %v11323_v48  ;;  %v2080_v4 = vld [vmem:[%s12812_s4 + $0x168] sm:$0xff]  ;;  %v2097_v26 = vld [vmem:[%s12812_s4 + $0x1f0] sm:$0xff]  ;;  %v2098_v27 = vld [vmem:[%s12812_s4 + $0x1f8] sm:$0xff]  ;;  %v11503_v28 = vpack.c.bf16 %v2048_v55, %v2047_v52  ;;  %v11509_v44 = vpack.c.bf16 %v2066_v17, %v2065_v11 }
 0x21f   :  { %9498 = vmatpush3.bf16.msra.mxu1 %v11325_v51  ;;  %9468 = vmatprep.subr.bf16.mxu0 %v11335_v56  ;;  %v11505_v8 = vpack.c.bf16 %v2080_v4, %v2079_v49  ;;  %v11511_v0 = vpack.c.bf16 %v2098_v27, %v2097_v26  ;;  %v2049_v52 = vld [vmem:[%s12812_s4 + $0x70] sm:$0xff]  ;;  %v2050_v55 = vld [vmem:[%s12812_s4 + $0x78] sm:$0xff] }
 0x220   :  { %9500 = vmatprep.subr.bf16.mxu1 %v11337_v57  ;;  %v2081_v49 = vld [vmem:[%s12812_s4 + $0x170] sm:$0xff]  ;;  %v11526_v4 = vpack.c.bf16 %v2050_v55, %v2049_v52  ;;  %v2082_v11 = vld [vmem:[%s12812_s4 + $0x178] sm:$0xff]  ;;  %v12891_v52 = vmov 0.0  }
 0x221   :  { %12888 = vst [vmem:[#allocation25_spill] sm:$0xff] %v11511_v0  ;;  %v11531_v17 = vpack.c.bf16 %v2082_v11, %v2081_v49  ;;  %v11537_v55 = vld [vmem:[#allocation12] sm:$0xff]  ;;  %v11539_v49 = vld [vmem:[#allocation12 + $0x8] sm:$0xff] }
 0x222   :  { %9470 = vmatpush3.bf16.msra.mxu0 %v11359_v5  ;;  %12889 = vst [vmem:[#allocation26_spill] sm:$0xff] %v11526_v4  ;;  %12892 = vst [vmem:[#allocation28_spill] sm:$0xff] %v11537_v55  ;;  %v11543_v11 = vcombine.high %v11537_v55, %v11537_v55  ;;  %v11547_v60 = vcombine.high %v11539_v49, %v11539_v49 }
 0x223   :  { %9502 = vmatpush3.bf16.msra.mxu1 %v11361_v10  ;;  %9472 = vmatprep.subr.bf16.mxu0 %v11371_v14  ;;  %12890 = vst [vmem:[#allocation27_spill] sm:$0xff] %v11531_v17  ;;  %12893 = vst [vmem:[#allocation29_spill] sm:$0xff] %v11539_v49 }
 0x224   :  { %9504 = vmatprep.subr.bf16.mxu1 %v11373_v53  ;;  %12894 = vst [vmem:[#allocation30_spill] sm:$0xff] %v11543_v11  ;;  %12895 = vst [vmem:[#allocation31_spill] sm:$0xff] %v11547_v60 }
 0x226   :  { %9474 = vmatpush3.bf16.msra.mxu0 %v11395_v9 }
 0x227   :  { %9506 = vmatpush3.bf16.msra.mxu1 %v11397_v39  ;;  %9476 = vmatprep.subr.bf16.mxu0 %v11407_v45 }
 0x228   :  { %9508 = vmatprep.subr.bf16.mxu1 %v11409_v46 }
 0x22a   :  { %9478 = vmatpush3.bf16.msra.mxu0 %v11431_v50 }
 0x22b   :  { %9510 = vmatpush3.bf16.msra.mxu1 %v11433_v63  ;;  %9480 = vmatprep.subr.bf16.mxu0 %v11443_v13 }
 0x22c   :  { %9512 = vmatprep.subr.bf16.mxu1 %v11445_v54 }
 0x22e   :  { %9482 = vmatpush3.bf16.msra.mxu0 %v11467_v62 }
 0x22f   :  { %9514 = vmatpush3.bf16.msra.mxu1 %v11469_v47  ;;  %9484 = vmatprep.subr.bf16.mxu0 %v11479_v58 }
 0x230   :  { %9516 = vmatprep.subr.bf16.mxu1 %v11481_v59 }
 0x232   :  { %9486 = vmatpush3.bf16.msra.mxu0 %v11503_v28 }
 0x233   :  { %9518 = vmatpush3.bf16.msra.mxu1 %v11505_v8  ;;  %9488 = vmatprep.subr.bf16.mxu0 %v11509_v44 }
 0x234   :  { %9520 = vmatprep.subr.bf16.mxu1 %v11511_v0 }
 0x236   :  { %9490 = vmatpush3.bf16.msra.mxu0 %v11526_v4 }
 0x237   :  { %9522 = vmatpush3.bf16.msra.mxu1 %v11531_v17  ;;  %8681 = vmatprep.subr.msk.mxu0 %vm2250_vm7, %v11543_v11 }
 0x238   :  { %8684 = vmatprep.subr.msk.mxu1 %vm2250_vm7, %v11547_v60 }
 0x2eb   :  { %v1959_v26 = vpop.f32.mrb[20].mxu0 }
 0x2ec   :  { %v2030_v27 = vpop.f32.mrb[20].mxu1  ;;  %v1961_v1 = vpop.f32.mrb[21].mxu0 }
 0x2ed   :  { %v2032_v61 = vpop.f32.mrb[21].mxu1  ;;  %2163 = vmatprep.mubr.f32.mxu0 %v1961_v1 }
 0x2ee   :  { %2233 = vmatprep.mubr.f32.mxu1 %v2032_v61  ;;  %2164 = vmatmul.mubr.f32.vlgmr.msra.gmra.mrb[22].mxu0 %v1959_v26 }
 0x2ef   :  { %2234 = vmatmul.mubr.f32.vlgmr.msra.gmra.mrb[22].mxu1 %v2030_v27  ;;  %2323 = vmatprep.mubr.f32.mxu0 %v12891_v52 }
 0x2f0   :  { %2394 = vmatprep.mubr.f32.mxu1 %v12891_v52  ;;  %8682 = vmatpush1.msk.msra.mxu0 %vm2250_vm7, %v11537_v55 }
 0x2f1   :  { %8685 = vmatpush1.msk.msra.mxu1 %vm2250_vm7, %v11539_v49 }
 0x3c1   :  { %v9195_v1 = vpop.f32.mrb[22].mxu0 }
 0x3c2   :  { %v9230_v61 = vpop.f32.mrb[22].mxu1  ;;  %v9196_v26 = vpop.f32.mrb[23].mxu0 }
 0x3c3   :  { %v9231_v27 = vpop.f32.mrb[23].mxu1  ;;  %v9197_v3 = vadd.f32 %v9196_v26, %v9195_v1  ;;  %v11564_v1 = vld [vmem:[%s12815_s7] sm:$0xff] }
 0x3c4   :  { %v9232_v2 = vadd.f32 %v9231_v27, %v9230_v61  ;;  %12896 = vst [vmem:[#allocation32_spill] sm:$0xff] %v11564_v1 }
 0x3c6   :  { %v2236_v17 = vadd.f32 %v9232_v2, %v9197_v3  ;;  %v11579_v2 = vld [vmem:[%s12815_s7 + $0x8] sm:$0xff]  ;;  %v11601_v3 = vld [vmem:[%s12815_s7 + $0x18] sm:$0xff] }
 0x3c7   :  { %12897 = vst [vmem:[#allocation33_spill] sm:$0xff] %v11579_v2  ;;  %12899 = vst [vmem:[#allocation35_spill] sm:$0xff] %v11601_v3 }
 0x3c8   :  { %v2239_v4 = vmul.f32 0.00048828125, %v2236_v17 }
 0x3ca   :  { %8683 = vmatmul.mubr.msk.f32.vlgmr.msra.gmra.mrb[24].mxu0 %vm2246_vm8, %v2239_v4  ;;  %8686 = vmatmul.mubr.msk.f32.vlgmr.msra.gmra.mrb[24].mxu1 %vm2246_vm8, %v2239_v4  ;;  %v11612_v4 = vld [vmem:[%s12815_s7 + $0x20] sm:$0x3] }
 0x3cb   :  { %2493 = vmatprep.mubr.f32.mxu0 %v12891_v52  ;;  %2588 = vmatprep.mubr.f32.mxu1 %v12891_v52  ;;  %12900 = vst [vmem:[#allocation36_spill] sm:$0xff] %v11612_v4 }
 0x49d   :  { %v2325_v55 = vpop.f32.mrb[24].mxu0  ;;  %v2396_v60 = vpop.f32.mrb[24].mxu1 }
 0x49e   :  { %v2327_v49 = vpop.f32.mrb[25].mxu0  ;;  %v2398_v11 = vpop.f32.mrb[25].mxu1 }
 0x49f   :  { %8687 = vmatprep.subr.msk.mxu0 %vm1880_vm5, %v2327_v49  ;;  %8694 = vmatprep.subr.msk.mxu1 %vm1880_vm5, %v2398_v11 }
 0x4a0   :  { %8688 = vmatpush1.msk.msra.mxu0 %vm1880_vm5, %v2325_v55  ;;  %8695 = vmatpush1.msk.msra.mxu1 %vm1880_vm5, %v2396_v60  ;;  %v11590_v60 = vld [vmem:[%s12815_s7 + $0x10] sm:$0xff] }
 0x4a1   :  { %8689 = vmatmul.mubr.msk.f32.vlgmr.msra.gmra.mrb[26].mxu0 %vm2401_vm9, %v11564_v1  ;;  %8696 = vmatmul.mubr.msk.f32.vlgmr.msra.gmra.mrb[26].mxu1 %vm2401_vm9, %v11564_v1  ;;  %12898 = vst [vmem:[#allocation34_spill] sm:$0xff] %v11590_v60 }
 0x4a2   :  { %2499 = vmatprep.mubr.f32.mxu0 %v12891_v52  ;;  %2594 = vmatprep.mubr.f32.mxu1 %v12891_v52 }
 0x4a5   :  { %8690 = vmatmul.mubr.msk.f32.gmra.mrb[28].mxu0 %vm2401_vm9, %v11579_v2  ;;  %8697 = vmatmul.mubr.msk.f32.gmra.mrb[28].mxu1 %vm2401_vm9, %v11579_v2 }
 0x4a6   :  { %2505 = vmatprep.mubr.f32.mxu0 %v12891_v52  ;;  %2600 = vmatprep.mubr.f32.mxu1 %v12891_v52 }
 0x4a9   :  { %8691 = vmatmul.mubr.msk.f32.gmra.mrb[30].mxu0 %vm2401_vm9, %v11590_v60  ;;  %8698 = vmatmul.mubr.msk.f32.gmra.mrb[30].mxu1 %vm2401_vm9, %v11590_v60 }
 0x4aa   :  { %2511 = vmatprep.mubr.f32.mxu0 %v12891_v52  ;;  %2606 = vmatprep.mubr.f32.mxu1 %v12891_v52 }
 0x4ad   :  { %8692 = vmatmul.mubr.msk.f32.gmra.mrb[32].mxu0 %vm2401_vm9, %v11601_v3  ;;  %8699 = vmatmul.mubr.msk.f32.gmra.mrb[32].mxu1 %vm2401_vm9, %v11601_v3 }
 0x4ae   :  { %2517 = vmatprep.mubr.f32.mxu0 %v12891_v52  ;;  %2612 = vmatprep.mubr.f32.mxu1 %v12891_v52 }
 0x4b1   :  { %8693 = vmatmul.mubr.msk.f32.gmra.mrb[34].mxu0 %vm2401_vm9, %v11612_v4  ;;  %8700 = vmatmul.mubr.msk.f32.gmra.mrb[34].mxu1 %vm2401_vm9, %v11612_v4 }
 0x4b2   :  { %2735 = vmatprep.mubr.f32.mxu0 %v12891_v52  ;;  %2806 = vmatprep.mubr.f32.mxu1 %v12891_v52 }
 0x574   :  { %v2495_v17 = vpop.f32.mrb[26].mxu0  ;;  %v2590_v55 = vpop.f32.mrb[26].mxu1 }
 0x575   :  { %v2497_v49 = vpop.f32.mrb[27].mxu0  ;;  %v2592_v11 = vpop.f32.mrb[27].mxu1  ;;  %v11627_v60 = vsub.f32 %v11172_v24, %v2495_v17  ;;  %v11630_v4 = vsub.f32 %v11175_v12, %v2590_v55 }
 0x576   :  { %v11621_v61 = vsub.f32 %v11160_v19, %v2497_v49  ;;  %v11624_v26 = vsub.f32 %v11163_v20, %v2592_v11 }
 0x577   :  { %12903 = vst [vmem:[#allocation39_spill] sm:$0xff] %v11627_v60  ;;  %12904 = vst [vmem:[#allocation40_spill] sm:$0xff] %v11630_v4  ;;  %v2639_v17 = vmul.f32 %v11627_v60, %v11627_v60  ;;  %v2641_v55 = vmul.f32 %v11630_v4, %v11630_v4 }
 0x578   :  { %12901 = vst [vmem:[#allocation37_spill] sm:$0xff] %v11621_v61  ;;  %12902 = vst [vmem:[#allocation38_spill] sm:$0xff] %v11624_v26  ;;  %v2501_v27 = vpop.f32.mrb[28].mxu0  ;;  %v2596_v3 = vpop.f32.mrb[28].mxu1 }
 0x579   :  { %v11633_v2 = vsub.f32 %v11154_v15, %v2501_v27  ;;  %v11636_v1 = vsub.f32 %v11157_v16, %v2596_v3  ;;  %v2503_v52 = vpop.f32.mrb[29].mxu0  ;;  %v2598_v19 = vpop.f32.mrb[29].mxu1  ;;  %v2640_v15 = vmul.f32 %v11621_v61, %v11621_v61  ;;  %v2642_v16 = vmul.f32 %v11624_v26, %v11624_v26 }
 0x57a   :  { %v11639_v49 = vsub.f32 %v11166_v21, %v2503_v52  ;;  %v11642_v20 = vsub.f32 %v11169_v23, %v2598_v19 }
 0x57b   :  { %12905 = vst [vmem:[#allocation41_spill] sm:$0xff] %v11633_v2  ;;  %12906 = vst [vmem:[#allocation42_spill] sm:$0xff] %v11636_v1  ;;  %v2643_v24 = vmul.f32 %v11633_v2, %v11633_v2  ;;  %v2645_v12 = vmul.f32 %v11636_v1, %v11636_v1 }
 0x57c   :  { %12907 = vst [vmem:[#allocation43_spill] sm:$0xff] %v11639_v49  ;;  %12908 = vst [vmem:[#allocation44_spill] sm:$0xff] %v11642_v20  ;;  %v2644_v3 = vmul.f32 %v11639_v49, %v11639_v49  ;;  %v2646_v21 = vmul.f32 %v11642_v20, %v11642_v20  ;;  %v2507_v23 = vpop.f32.mrb[30].mxu0  ;;  %v2602_v52 = vpop.f32.mrb[30].mxu1 }
 0x57d   :  { %v2509_v11 = vpop.f32.mrb[31].mxu0  ;;  %v2604_v27 = vpop.f32.mrb[31].mxu1  ;;  %v9525_v2 = vpack.c.bf16 %v2643_v24, %v2639_v17  ;;  %v9533_v26 = vpack.c.bf16 %v2645_v12, %v2641_v55  ;;  %v11661_v61 = vsub.f32 %v11204_v42, %v2507_v23  ;;  %v11670_v4 = vsub.f32 %v11207_v43, %v2602_v52 }
 0x57e   :  { %v9523_v19 = vpack.c.bf16 %v2644_v3, %v2640_v15  ;;  %v9531_v1 = vpack.c.bf16 %v2646_v21, %v2642_v16  ;;  %v11664_v49 = vsub.f32 %v11192_v40, %v2509_v11  ;;  %v11667_v20 = vsub.f32 %v11195_v41, %v2604_v27 }
 0x580   :  { %v2513_v0 = vpop.f32.mrb[32].mxu0  ;;  %v2608_v60 = vpop.f32.mrb[32].mxu1  ;;  %9524 = vmatprep.subr.bf16.mxu0 %v9523_v19  ;;  %9532 = vmatprep.subr.bf16.mxu1 %v9531_v1 }
 0x581   :  { %v11673_v15 = vsub.f32 %v11186_v36, %v2513_v0  ;;  %v11676_v24 = vsub.f32 %v11189_v37, %v2608_v60  ;;  %v2515_v42 = vpop.f32.mrb[33].mxu0  ;;  %v2610_v12 = vpop.f32.mrb[33].mxu1  ;;  %9526 = vmatpush1.bf16.msra.mxu0 %v9525_v2  ;;  %9534 = vmatpush1.bf16.msra.mxu1 %v9533_v26  ;;  %v2648_v36 = vmul.f32 %v11664_v49, %v11664_v49 }
 0x582   :  { %v11679_v40 = vsub.f32 %v11198_v22, %v2515_v42  ;;  %v11682_v41 = vsub.f32 %v11201_v34, %v2610_v12  ;;  %v2650_v37 = vmul.f32 %v11667_v20, %v11667_v20  ;;  %v2647_v60 = vmul.f32 %v11661_v61, %v11661_v61  ;;  %v10185_v12 = vld [vmem:[#allocation9 + $0x424] ss:$16 sps:$4 sm:$0xff]  }
 0x583   :  { %v2651_v43 = vmul.f32 %v11673_v15, %v11673_v15  ;;  %v2653_v0 = vmul.f32 %v11676_v24, %v11676_v24  ;;  %v2649_v26 = vmul.f32 %v11670_v4, %v11670_v4 }
 0x584   :  { %v2652_v1 = vmul.f32 %v11679_v40, %v11679_v40  ;;  %v2654_v22 = vmul.f32 %v11682_v41, %v11682_v41  ;;  %v2519_v34 = vpop.f32.mrb[34].mxu0  ;;  %v2614_v2 = vpop.f32.mrb[34].mxu1 }
 0x585   :  { %v2521_v16 = vpop.f32.mrb[35].mxu0  ;;  %v2616_v3 = vpop.f32.mrb[35].mxu1  ;;  %v9529_v55 = vpack.c.bf16 %v2651_v43, %v2647_v60  ;;  %v9537_v11 = vpack.c.bf16 %v2653_v0, %v2649_v26  ;;  %v11707_v27 = vsub.f32 %v11264_v29, %v2519_v34  ;;  %v11710_v19 = vsub.f32 %v11267_v6, %v2614_v2  ;;  %v12909_v6 = vld [vmem:[#allocation25_spill] sm:$0xff]  ;;  %v10188_v43 = vld [vmem:[#allocation9 + $0x42c] ss:$16 sps:$4 sm:$0xff]  }
 0x586   :  { %v11701_v21 = vsub.f32 %v11249_v18, %v2521_v16  ;;  %v11704_v23 = vsub.f32 %v11252_v25, %v2616_v3  ;;  %v9527_v52 = vpack.c.bf16 %v2652_v1, %v2648_v36  ;;  %v9535_v17 = vpack.c.bf16 %v2654_v22, %v2650_v37  ;;  %v10183_v0 = vld [vmem:[#allocation9 + $0x420] ss:$16 sps:$4 sm:$0xff]   ;;  %v10186_v36 = vld [vmem:[#allocation9 + $0x428] ss:$16 sps:$4 sm:$0xff]   ;;  %v10191_v1 = vld [vmem:[#allocation9 + $0x444] ss:$16 sps:$4 sm:$0xff]  }
 0x587   :  { %v2655_v25 = vmul.f32 %v11707_v27, %v11707_v27  ;;  %v2657_v29 = vmul.f32 %v11710_v19, %v11710_v19  ;;  %v12918_v37 = vld [vmem:[#allocation33_spill] sm:$0xff]  ;;  %v10194_v22 = vld [vmem:[#allocation9 + $0x44c] ss:$16 sps:$4 sm:$0xff]  }
 0x588   :  { %v2656_v42 = vmul.f32 %v11701_v21, %v11701_v21  ;;  %v2658_v18 = vmul.f32 %v11704_v23, %v11704_v23  ;;  %9528 = vmatprep.subr.bf16.mxu0 %v9527_v52  ;;  %9536 = vmatprep.subr.bf16.mxu1 %v9535_v17  ;;  %v10189_v34 = vld [vmem:[#allocation9 + $0x440] ss:$16 sps:$4 sm:$0xff]   ;;  %v10192_v2 = vld [vmem:[#allocation9 + $0x448] ss:$16 sps:$4 sm:$0xff]   ;;  %v10197_v26 = vld [vmem:[#allocation9 + $0x464] ss:$16 sps:$4 sm:$0xff]  }
 0x589   :  { %9530 = vmatpush1.bf16.msra.mxu0 %v9529_v55  ;;  %9538 = vmatpush1.bf16.msra.mxu1 %v9537_v11  ;;  %v12919_v60 = vld [vmem:[#allocation34_spill] sm:$0xff]  ;;  %v12920_v17 = vld [vmem:[#allocation35_spill] sm:$0xff] }
 0x58a   :  { %8701 = vmatprep.subr.msk.mxu0 %vm1880_vm5, %v2656_v42  ;;  %8704 = vmatprep.subr.msk.mxu1 %vm1880_vm5, %v2658_v18  ;;  %v10200_v16 = vld [vmem:[#allocation9 + $0x46c] ss:$16 sps:$4 sm:$0xff]   ;;  %v10195_v3 = vld [vmem:[#allocation9 + $0x460] ss:$16 sps:$4 sm:$0xff]   ;;  %v10198_v52 = vld [vmem:[#allocation9 + $0x468] ss:$16 sps:$4 sm:$0xff]  }
 0x58b   :  { %v10203_v55 = vld [vmem:[#allocation9 + $0x484] ss:$16 sps:$4 sm:$0xff]   ;;  %v10206_v11 = vld [vmem:[#allocation9 + $0x48c] ss:$16 sps:$4 sm:$0xff]   ;;  %v10201_v42 = vld [vmem:[#allocation9 + $0x480] ss:$16 sps:$4 sm:$0xff]  }
 0x58c   :  { %v10204_v18 = vld [vmem:[#allocation9 + $0x488] ss:$16 sps:$4 sm:$0xff]  }
 0x58d   :  { %8702 = vmatpush1.msk.msra.mxu0 %vm1880_vm5, %v2655_v25  ;;  %8705 = vmatpush1.msk.msra.mxu1 %vm1880_vm5, %v2657_v29  ;;  %v12921_v25 = vld [vmem:[#allocation36_spill] sm:$0xff]  ;;  %v10209_v29 = vld [vmem:[#allocation9 + $0x4a4] ss:$16 sps:$4 sm:$0xff]  }
 0x58e   :  { %8703 = vmatmul.mubr.msk.f32.vlgmr.msra.gmra.mrb[36].mxu0 %vm1876_vm6, %v11269_v7  ;;  %8706 = vmatmul.mubr.msk.f32.vlgmr.msra.gmra.mrb[36].mxu1 %vm1876_vm6, %v11269_v7  ;;  %v12910_v7 = vld [vmem:[#allocation26_spill] sm:$0xff] }
 0x58f   :  { %9540 = vmatprep.subr.bf16.mxu0 %v11271_v30  ;;  %9572 = vmatprep.subr.bf16.mxu1 %v11273_v31  ;;  %v12911_v30 = vld [vmem:[#allocation27_spill] sm:$0xff]  ;;  %v12912_v31 = vld [vmem:[#allocation30_spill] sm:$0xff] }
 0x590   :  { %9542 = vmatpush3.bf16.msra.mxu0 %v11279_v32  ;;  %9574 = vmatpush3.bf16.msra.mxu1 %v11281_v33  ;;  %v12913_v32 = vld [vmem:[#allocation31_spill] sm:$0xff] }
 0x591   :  { %9544 = vmatprep.subr.bf16.mxu0 %v11293_v35  ;;  %9576 = vmatprep.subr.bf16.mxu1 %v11295_v38 }
 0x594   :  { %9546 = vmatpush3.bf16.msra.mxu0 %v11323_v48  ;;  %9578 = vmatpush3.bf16.msra.mxu1 %v11325_v51  ;;  %v12914_v51 = vld [vmem:[#allocation28_spill] sm:$0xff] }
 0x595   :  { %9548 = vmatprep.subr.bf16.mxu0 %v11335_v56  ;;  %9580 = vmatprep.subr.bf16.mxu1 %v11337_v57  ;;  %v12915_v56 = vmov 0.0   ;;  %v12916_v57 = vld [vmem:[#allocation29_spill] sm:$0xff] }
 0x598   :  { %9550 = vmatpush3.bf16.msra.mxu0 %v11359_v5  ;;  %9582 = vmatpush3.bf16.msra.mxu1 %v11361_v10 }
 0x599   :  { %9552 = vmatprep.subr.bf16.mxu0 %v11371_v14  ;;  %9584 = vmatprep.subr.bf16.mxu1 %v11373_v53 }
 0x59c   :  { %9554 = vmatpush3.bf16.msra.mxu0 %v11395_v9  ;;  %9586 = vmatpush3.bf16.msra.mxu1 %v11397_v39 }
 0x59d   :  { %9556 = vmatprep.subr.bf16.mxu0 %v11407_v45  ;;  %9588 = vmatprep.subr.bf16.mxu1 %v11409_v46 }
 0x5a0   :  { %9558 = vmatpush3.bf16.msra.mxu0 %v11431_v50  ;;  %9590 = vmatpush3.bf16.msra.mxu1 %v11433_v63 }
 0x5a1   :  { %9560 = vmatprep.subr.bf16.mxu0 %v11443_v13  ;;  %9592 = vmatprep.subr.bf16.mxu1 %v11445_v54 }
 0x5a4   :  { %9562 = vmatpush3.bf16.msra.mxu0 %v11467_v62  ;;  %9594 = vmatpush3.bf16.msra.mxu1 %v11469_v47 }
 0x5a5   :  { %9564 = vmatprep.subr.bf16.mxu0 %v11479_v58  ;;  %9596 = vmatprep.subr.bf16.mxu1 %v11481_v59  ;;  %v10179_v58 = vld [vmem:[#allocation9 + $0x404] ss:$16 sps:$4 sm:$0xff]   ;;  %v10182_v59 = vld [vmem:[#allocation9 + $0x40c] ss:$16 sps:$4 sm:$0xff]  }
 0x5a8   :  { %9566 = vmatpush3.bf16.msra.mxu0 %v11503_v28  ;;  %9598 = vmatpush3.bf16.msra.mxu1 %v11505_v8  ;;  %v10177_v28 = vld [vmem:[#allocation9 + $0x400] ss:$16 sps:$4 sm:$0xff]   ;;  %v10180_v8 = vld [vmem:[#allocation9 + $0x408] ss:$16 sps:$4 sm:$0xff]  }
 0x5a9   :  { %9568 = vmatprep.subr.bf16.mxu0 %v11509_v44  ;;  %9600 = vmatprep.subr.bf16.mxu1 %v12909_v6  ;;  %v12917_v44 = vld [vmem:[#allocation32_spill] sm:$0xff] }
 0x5aa   :  { %v10212_v6 = vld [vmem:[#allocation9 + $0x4ac] ss:$16 sps:$4 sm:$0xff]  }
 0x5ac   :  { %9570 = vmatpush3.bf16.msra.mxu0 %v12910_v7  ;;  %9602 = vmatpush3.bf16.msra.mxu1 %v12911_v30  ;;  %v10207_v7 = vld [vmem:[#allocation9 + $0x4a0] ss:$16 sps:$4 sm:$0xff]   ;;  %v10210_v30 = vld [vmem:[#allocation9 + $0x4a8] ss:$16 sps:$4 sm:$0xff]  }
 0x5ad   :  { %8707 = vmatprep.subr.msk.mxu0 %vm2250_vm7, %v12912_v31  ;;  %8710 = vmatprep.subr.msk.mxu1 %vm2250_vm7, %v12913_v32  ;;  %v10215_v31 = vld [vmem:[#allocation9 + $0x4c4] ss:$16 sps:$4 sm:$0xff]   ;;  %v10218_v32 = vld [vmem:[#allocation9 + $0x4cc] ss:$16 sps:$4 sm:$0xff]  }
 0x661   :  { %v2737_v33 = vpop.f32.mrb[36].mxu0  ;;  %v2808_v35 = vpop.f32.mrb[36].mxu1 }
 0x662   :  { %v2739_v38 = vpop.f32.mrb[37].mxu0  ;;  %v2810_v48 = vpop.f32.mrb[37].mxu1 }
 0x663   :  { %2877 = vmatprep.mubr.f32.mxu0 %v2739_v38  ;;  %2947 = vmatprep.mubr.f32.mxu1 %v2810_v48  ;;  %v10221_v38 = vld [vmem:[#allocation9 + $0x4e4] ss:$16 sps:$4 sm:$0xff]   ;;  %v10224_v48 = vld [vmem:[#allocation9 + $0x4ec] ss:$16 sps:$4 sm:$0xff]  }
 0x664   :  { %2878 = vmatmul.mubr.f32.vlgmr.msra.gmra.mrb[38].mxu0 %v2737_v33  ;;  %2948 = vmatmul.mubr.f32.vlgmr.msra.gmra.mrb[38].mxu1 %v2808_v35  ;;  %v10213_v33 = vld [vmem:[#allocation9 + $0x4c0] ss:$16 sps:$4 sm:$0xff]   ;;  %v10216_v35 = vld [vmem:[#allocation9 + $0x4c8] ss:$16 sps:$4 sm:$0xff]  }
 0x665   :  { %8708 = vmatpush1.msk.msra.mxu0 %vm2250_vm7, %v12914_v51  ;;  %3023 = vmatprep.mubr.f32.mxu0 %v12915_v56  ;;  %v10219_v51 = vld [vmem:[#allocation9 + $0x4e0] ss:$16 sps:$4 sm:$0xff]  }
 0x666   :  { %8711 = vmatpush1.msk.msra.mxu1 %vm2250_vm7, %v12916_v57  ;;  %3094 = vmatprep.mubr.f32.mxu1 %v12915_v56  ;;  %v10222_v57 = vld [vmem:[#allocation9 + $0x4e8] ss:$16 sps:$4 sm:$0xff]  }
 0x737   :  { %v9265_v5 = vpop.f32.mrb[38].mxu0  ;;  %v9300_v10 = vpop.f32.mrb[38].mxu1 }
 0x738   :  { %v9266_v14 = vpop.f32.mrb[39].mxu0  ;;  %v9301_v53 = vpop.f32.mrb[39].mxu1 }
 0x739   :  { %v9267_v9 = vadd.f32 %v9266_v14, %v9265_v5  ;;  %v9302_v39 = vadd.f32 %v9301_v53, %v9300_v10  ;;  %v10227_v5 = vld [vmem:[#allocation9 + $0x504] ss:$16 sps:$4 sm:$0xff]   ;;  %v10230_v10 = vld [vmem:[#allocation9 + $0x50c] ss:$16 sps:$4 sm:$0xff]   ;;  %v10225_v14 = vld [vmem:[#allocation9 + $0x500] ss:$16 sps:$4 sm:$0xff]  }
 0x73a   :  { %v10228_v53 = vld [vmem:[#allocation9 + $0x508] ss:$16 sps:$4 sm:$0xff]  }
 0x73b   :  { %v2950_v45 = vadd.f32 %v9302_v39, %v9267_v9  ;;  %v10233_v9 = vld [vmem:[#allocation9 + $0x524] ss:$16 sps:$4 sm:$0xff]   ;;  %v10236_v39 = vld [vmem:[#allocation9 + $0x52c] ss:$16 sps:$4 sm:$0xff]  }
 0x73d   :  { %v2953_v46 = vmul.f32 0.00048828125, %v2950_v45  ;;  %v10231_v45 = vld [vmem:[#allocation9 + $0x520] ss:$16 sps:$4 sm:$0xff]  }
 0x73f   :  { %v2954_v50 = vadd.f32 1e-05, %v2953_v46  ;;  %v10234_v46 = vld [vmem:[#allocation9 + $0x528] ss:$16 sps:$4 sm:$0xff]  }
 0x741   :  { %10755 = vrsqrt.f32 %v2954_v50  ;;  %v10239_v50 = vld [vmem:[#allocation9 + $0x544] ss:$16 sps:$4 sm:$0xff]  }
 0x74b   :  { %v10756_v63 = vpop.eup %10755 }
 0x74c   :  { %8709 = vmatmul.mubr.msk.f32.vlgmr.msra.gmra.mrb[40].mxu0 %vm2246_vm8, %v10756_v63  ;;  %8712 = vmatmul.mubr.msk.f32.vlgmr.msra.gmra.mrb[40].mxu1 %vm2246_vm8, %v10756_v63  ;;  %v10242_v63 = vld [vmem:[#allocation9 + $0x54c] ss:$16 sps:$4 sm:$0xff]  }
 0x74d   :  { %3177 = vmatprep.mubr.f32.mxu0 %v12915_v56  ;;  %3272 = vmatprep.mubr.f32.mxu1 %v12915_v56 }
 0x81f   :  { %v3025_v13 = vpop.f32.mrb[40].mxu0  ;;  %v3096_v54 = vpop.f32.mrb[40].mxu1 }
 0x820   :  { %v3027_v62 = vpop.f32.mrb[41].mxu0  ;;  %v3098_v47 = vpop.f32.mrb[41].mxu1 }
 0x821   :  { %8713 = vmatprep.subr.msk.mxu0 %vm1880_vm5, %v3027_v62  ;;  %8720 = vmatprep.subr.msk.mxu1 %vm1880_vm5, %v3098_v47  ;;  %v12922_v62 = vlaneseq  ;;  %v10245_v47 = vld [vmem:[#allocation9 + $0x564] ss:$16 sps:$4 sm:$0xff]  }
 0x822   :  { %8714 = vmatpush1.msk.msra.mxu0 %vm1880_vm5, %v3025_v13  ;;  %8721 = vmatpush1.msk.msra.mxu1 %vm1880_vm5, %v3096_v54  ;;  %v10237_v13 = vld [vmem:[#allocation9 + $0x540] ss:$16 sps:$4 sm:$0xff]   ;;  %v10240_v54 = vld [vmem:[#allocation9 + $0x548] ss:$16 sps:$4 sm:$0xff]  }
 0x823   :  { %8715 = vmatmul.mubr.msk.f32.vlgmr.msra.gmra.mrb[42].mxu0 %vm2401_vm9, %v12917_v44  ;;  %8722 = vmatmul.mubr.msk.f32.vlgmr.msra.gmra.mrb[42].mxu1 %vm2401_vm9, %v12917_v44  ;;  %vm3425_vm10 = vcmp.lt.s32.totalorder %v12922_v62, 512  ;;  %v10254_v44 = vld [vmem:[#allocation9 + $0x58c] ss:$16 sps:$4 sm:$0xff]  }
 0x824   :  { %3183 = vmatprep.mubr.f32.mxu0 %v12915_v56  ;;  %3278 = vmatprep.mubr.f32.mxu1 %v12915_v56  ;;  %3430 = vst.msk [vmem:[#allocation3 + $0x41] ss:$8 sm:$0xf] %vm3425_vm10, %v12915_v56  ;;  %3477 = vst.msk [vmem:[#allocation3 + $0x42] ss:$8 sm:$0xf] %vm3425_vm10, %v12915_v56 }
 0x825   :  { %4587 = vmatprep.subr.bf16.mxu0 %v10179_v58  ;;  %4709 = vmatprep.subr.bf16.mxu1 %v10182_v59  ;;  %3427 = vst.msk [vmem:[#allocation3] ss:$8 sm:$0xf] %vm3425_vm10, %v12915_v56  ;;  %3480 = vst.msk [vmem:[#allocation3 + $0x83] ss:$8 sm:$0xf] %vm3425_vm10, %v12915_v56 }
 0x826   :  { %4588 = vmatpush1.bf16.msra.mxu0 %v10177_v28  ;;  %4710 = vmatpush1.bf16.msra.mxu1 %v10180_v8  ;;  %v10248_v58 = vld [vmem:[#allocation9 + $0x56c] ss:$16 sps:$4 sm:$0xff]   ;;  %v10243_v59 = vld [vmem:[#allocation9 + $0x560] ss:$16 sps:$4 sm:$0xff]   ;;  %v10246_v28 = vld [vmem:[#allocation9 + $0x568] ss:$16 sps:$4 sm:$0xff]  }
 0x827   :  { %8716 = vmatmul.mubr.msk.f32.gmra.mrb[44].mxu0 %vm2401_vm9, %v12918_v37  ;;  %8723 = vmatmul.mubr.msk.f32.gmra.mrb[44].mxu1 %vm2401_vm9, %v12918_v37  ;;  %v10251_v8 = vld [vmem:[#allocation9 + $0x584] ss:$16 sps:$4 sm:$0xff]   ;;  %v10255_v37 = vld [vmem:[#allocation9 + $0x5a0] ss:$16 sps:$4 sm:$0xff]  }
 0x828   :  { %3189 = vmatprep.mubr.f32.mxu0 %v12915_v56  ;;  %3284 = vmatprep.mubr.f32.mxu1 %v12915_v56  ;;  %v12930_v62 = vld [vmem:[#allocation38_spill] sm:$0xff] }
 0x829   :  { %4589 = vmatprep.subr.bf16.mxu0 %v10185_v12  ;;  %4711 = vmatprep.subr.bf16.mxu1 %v10188_v43  ;;  %v10249_v12 = vld [vmem:[#allocation9 + $0x580] ss:$16 sps:$4 sm:$0xff]   ;;  %v10252_v43 = vld [vmem:[#allocation9 + $0x588] ss:$16 sps:$4 sm:$0xff]  }
 0x82a   :  { %4590 = vmatpush1.bf16.msra.mxu0 %v10183_v0  ;;  %4712 = vmatpush1.bf16.msra.mxu1 %v10186_v36  ;;  %v10257_v0 = vld [vmem:[#allocation9 + $0x5a4] ss:$16 sps:$4 sm:$0xff]   ;;  %v10260_v36 = vld [vmem:[#allocation9 + $0x5ac] ss:$16 sps:$4 sm:$0xff]  }
 0x82b   :  { %8717 = vmatmul.mubr.msk.f32.gmra.mrb[46].mxu0 %vm2401_vm9, %v12919_v60  ;;  %8724 = vmatmul.mubr.msk.f32.gmra.mrb[46].mxu1 %vm2401_vm9, %v12919_v60  ;;  %v10264_v60 = vld [vmem:[#allocation9 + $0x5c8] ss:$16 sps:$4 sm:$0xff]  }
 0x82c   :  { %3195 = vmatprep.mubr.f32.mxu0 %v12915_v56  ;;  %3290 = vmatprep.mubr.f32.mxu1 %v12915_v56 }
 0x82d   :  { %4591 = vmatprep.subr.bf16.mxu0 %v10191_v1  ;;  %4713 = vmatprep.subr.bf16.mxu1 %v10194_v22  ;;  %v10258_v1 = vld [vmem:[#allocation9 + $0x5a8] ss:$16 sps:$4 sm:$0xff]   ;;  %v10263_v22 = vld [vmem:[#allocation9 + $0x5c4] ss:$16 sps:$4 sm:$0xff]  }
 0x82e   :  { %4592 = vmatpush1.bf16.msra.mxu0 %v10189_v34  ;;  %4714 = vmatpush1.bf16.msra.mxu1 %v10192_v2  ;;  %v10266_v34 = vld [vmem:[#allocation9 + $0x5cc] ss:$16 sps:$4 sm:$0xff]   ;;  %v10261_v2 = vld [vmem:[#allocation9 + $0x5c0] ss:$16 sps:$4 sm:$0xff]  }
 0x82f   :  { %8718 = vmatmul.mubr.msk.f32.gmra.mrb[48].mxu0 %vm2401_vm9, %v12920_v17  ;;  %8725 = vmatmul.mubr.msk.f32.gmra.mrb[48].mxu1 %vm2401_vm9, %v12920_v17  ;;  %v10275_v17 = vld [vmem:[#allocation9 + $0x604] ss:$16 sps:$4 sm:$0xff]  }
 0x830   :  { %3201 = vmatprep.mubr.f32.mxu0 %v12915_v56  ;;  %3296 = vmatprep.mubr.f32.mxu1 %v12915_v56 }
 0x831   :  { %4593 = vmatprep.subr.bf16.mxu0 %v10197_v26  ;;  %4715 = vmatprep.subr.bf16.mxu1 %v10200_v16  ;;  %v10267_v26 = vld [vmem:[#allocation9 + $0x5e0] ss:$16 sps:$4 sm:$0xff]   ;;  %v10269_v16 = vld [vmem:[#allocation9 + $0x5e4] ss:$16 sps:$4 sm:$0xff]  }
 0x832   :  { %4594 = vmatpush1.bf16.msra.mxu0 %v10195_v3  ;;  %4716 = vmatpush1.bf16.msra.mxu1 %v10198_v52  ;;  %v10270_v3 = vld [vmem:[#allocation9 + $0x5e8] ss:$16 sps:$4 sm:$0xff]   ;;  %v10272_v52 = vld [vmem:[#allocation9 + $0x5ec] ss:$16 sps:$4 sm:$0xff]  }
 0x833   :  { %8719 = vmatmul.mubr.msk.f32.gmra.mrb[50].mxu0 %vm2401_vm9, %v12921_v25  ;;  %8726 = vmatmul.mubr.msk.f32.gmra.mrb[50].mxu1 %vm2401_vm9, %v12921_v25  ;;  %v12924_v25 = vld [vmem:[#allocation24_spill] sm:$0xff] }
 0x834   :  { %4595 = vmatprep.subr.bf16.mxu0 %v10203_v55  ;;  %4717 = vmatprep.subr.bf16.mxu1 %v10206_v11  ;;  %v10278_v55 = vld [vmem:[#allocation9 + $0x60c] ss:$16 sps:$4 sm:$0xff]   ;;  %v1826_v11 = vld [vmem:[#allocation10 + $0x1] ss:$8 sm:$0xf] }
 0x836   :  { %4596 = vmatpush1.bf16.msra.mxu0 %v10201_v42  ;;  %4718 = vmatpush1.bf16.msra.mxu1 %v10204_v18  ;;  %v12923_v42 = vld [vmem:[#allocation23_spill] sm:$0xff] }
 0x837   :  { %4597 = vmatprep.subr.bf16.mxu0 %v10209_v29  ;;  %4719 = vmatprep.subr.bf16.mxu1 %v10212_v6  ;;  %v11812_v18 = vrot.slane %v1826_v11, %v12923_v42  ;;  %v11815_v29 = vrot.slane %v1826_v11, %v12924_v25  ;;  %v1828_v6 = vld [vmem:[#allocation10 + $0x2] ss:$8 sm:$0xf] }
 0x83a   :  { %4598 = vmatpush1.bf16.msra.mxu0 %v10207_v7  ;;  %4720 = vmatpush1.bf16.msra.mxu1 %v10210_v30  ;;  %v12925_v7 = vld [vmem:[#allocation21_spill] sm:$0xff] }
 0x83b   :  { %4599 = vmatprep.subr.bf16.mxu0 %v10215_v31  ;;  %4721 = vmatprep.subr.bf16.mxu1 %v10218_v32  ;;  %v11818_v30 = vrot.slane %v1826_v11, %v12925_v7  ;;  %v12926_v31 = vld [vmem:[#allocation22_spill] sm:$0xff] }
 0x83c   :  { %v11821_v32 = vrot.slane %v1826_v11, %v12926_v31 }
 0x83e   :  { %4600 = vmatpush1.bf16.msra.mxu0 %v10213_v33  ;;  %4722 = vmatpush1.bf16.msra.mxu1 %v10216_v35 }
 0x83f   :  { %4601 = vmatprep.subr.bf16.mxu0 %v10221_v38  ;;  %4723 = vmatprep.subr.bf16.mxu1 %v10224_v48  ;;  %v11825_v48 = vrot.slane %v1828_v6, %v12923_v42 }
 0x842   :  { %4602 = vmatpush1.bf16.msra.mxu0 %v10219_v51  ;;  %4724 = vmatpush1.bf16.msra.mxu1 %v10222_v57  ;;  %v11829_v57 = vrot.slane %v1828_v6, %v12924_v25 }
 0x843   :  { %4603 = vmatprep.subr.bf16.mxu0 %v10227_v5  ;;  %4725 = vmatprep.subr.bf16.mxu1 %v10230_v10 }
 0x846   :  { %4604 = vmatpush1.bf16.msra.mxu0 %v10225_v14  ;;  %4726 = vmatpush1.bf16.msra.mxu1 %v10228_v53  ;;  %v11833_v53 = vrot.slane %v1828_v6, %v12925_v7 }
 0x847   :  { %4605 = vmatprep.subr.bf16.mxu0 %v10233_v9  ;;  %4727 = vmatprep.subr.bf16.mxu1 %v10236_v39  ;;  %v11837_v39 = vrot.slane %v1828_v6, %v12926_v31  ;;  %v12934_v6 = vld [vmem:[#allocation44_spill] sm:$0xff] }
 0x84a   :  { %4606 = vmatpush1.bf16.msra.mxu0 %v10231_v45  ;;  %4728 = vmatpush1.bf16.msra.mxu1 %v10234_v46  ;;  %v12927_v45 = vld [vmem:[#allocation39_spill] sm:$0xff] }
 0x84b   :  { %4607 = vmatprep.subr.bf16.mxu0 %v10239_v50  ;;  %4729 = vmatprep.subr.bf16.mxu1 %v10242_v63  ;;  %v12928_v50 = vld [vmem:[#allocation40_spill] sm:$0xff] }
 0x84e   :  { %4608 = vmatpush1.bf16.msra.mxu0 %v10237_v13  ;;  %4730 = vmatpush1.bf16.msra.mxu1 %v10240_v54  ;;  %v12929_v13 = vld [vmem:[#allocation37_spill] sm:$0xff] }
 0x84f   :  { %4609 = vmatprep.subr.bf16.mxu0 %v10245_v47  ;;  %4731 = vmatprep.subr.bf16.mxu1 %v10248_v58 }
 0x852   :  { %4610 = vmatpush1.bf16.msra.mxu0 %v10243_v59  ;;  %4732 = vmatpush1.bf16.msra.mxu1 %v10246_v28 }
 0x853   :  { %4611 = vmatprep.subr.bf16.mxu0 %v10251_v8  ;;  %4733 = vmatprep.subr.bf16.mxu1 %v10254_v44 }
 0x856   :  { %4612 = vmatpush1.bf16.msra.mxu0 %v10249_v12  ;;  %4734 = vmatpush1.bf16.msra.mxu1 %v10252_v43 }
 0x857   :  { %4613 = vmatprep.subr.bf16.mxu0 %v10257_v0  ;;  %4735 = vmatprep.subr.bf16.mxu1 %v10260_v36 }
 0x85a   :  { %4614 = vmatpush1.bf16.msra.mxu0 %v10255_v37  ;;  %4736 = vmatpush1.bf16.msra.mxu1 %v10258_v1 }
 0x85b   :  { %4615 = vmatprep.subr.bf16.mxu0 %v10263_v22  ;;  %4737 = vmatprep.subr.bf16.mxu1 %v10266_v34 }
 0x85e   :  { %4616 = vmatpush1.bf16.msra.mxu0 %v10261_v2  ;;  %4738 = vmatpush1.bf16.msra.mxu1 %v10264_v60  ;;  %v12931_v60 = vld [vmem:[#allocation41_spill] sm:$0xff] }
 0x85f   :  { %4617 = vmatprep.subr.bf16.mxu0 %v10269_v16  ;;  %4739 = vmatprep.subr.bf16.mxu1 %v10272_v52  ;;  %v12932_v16 = vld [vmem:[#allocation42_spill] sm:$0xff] }
 0x862   :  { %4618 = vmatpush1.bf16.msra.mxu0 %v10267_v26  ;;  %4740 = vmatpush1.bf16.msra.mxu1 %v10270_v3 }
 0x863   :  { %4648 = vmatprep.subr.bf16.mxu0 %v10275_v17  ;;  %4770 = vmatprep.subr.bf16.mxu1 %v10278_v55  ;;  %v12933_v55 = vld [vmem:[#allocation43_spill] sm:$0xff] }
 0x8f6   :  { %v3179_v33 = vpop.f32.mrb[42].mxu0  ;;  %v3274_v35 = vpop.f32.mrb[42].mxu1 }
 0x8f7   :  { %v3324_v38 = vmul.f32 %v11812_v18, %v3179_v33  ;;  %v3326_v51 = vmul.f32 %v11815_v29, %v3274_v35  ;;  %v3181_v5 = vpop.f32.mrb[43].mxu0  ;;  %v3276_v10 = vpop.f32.mrb[43].mxu1 }
 0x8f8   :  { %v3325_v14 = vmul.f32 %v11818_v30, %v3181_v5  ;;  %v3327_v9 = vmul.f32 %v11821_v32, %v3276_v10 }
 0x8f9   :  { %v3344_v46 = vmul.f32 %v3324_v38, %v12927_v45  ;;  %v3346_v63 = vmul.f32 %v3326_v51, %v12928_v50 }
 0x8fa   :  { %v3345_v54 = vmul.f32 %v3325_v14, %v12929_v13  ;;  %v3347_v47 = vmul.f32 %v3327_v9, %v12930_v62  ;;  %v3185_v58 = vpop.f32.mrb[44].mxu0  ;;  %v3280_v59 = vpop.f32.mrb[44].mxu1 }
 0x8fb   :  { %v3385_v28 = vadd.f32 %v11825_v48, %v3344_v46  ;;  %v3387_v8 = vadd.f32 %v11829_v57, %v3346_v63  ;;  %v3328_v44 = vmul.f32 %v11812_v18, %v3185_v58  ;;  %v3330_v12 = vmul.f32 %v11815_v29, %v3280_v59  ;;  %v3187_v43 = vpop.f32.mrb[45].mxu0  ;;  %v3282_v0 = vpop.f32.mrb[45].mxu1 }
 0x8fc   :  { %v3386_v36 = vadd.f32 %v11833_v53, %v3345_v54  ;;  %v3388_v37 = vadd.f32 %v11837_v39, %v3347_v47  ;;  %v3329_v1 = vmul.f32 %v11818_v30, %v3187_v43  ;;  %v3331_v22 = vmul.f32 %v11821_v32, %v3282_v0 }
 0x8fd   :  { %v3405_v34 = vmax.f32 %v3385_v28, 0.0  ;;  %v3407_v2 = vmax.f32 %v3387_v8, 0.0  ;;  %v3348_v26 = vmul.f32 %v3328_v44, %v12931_v60  ;;  %v3350_v3 = vmul.f32 %v3330_v12, %v12932_v16 }
 0x8fe   :  { %v3406_v52 = vmax.f32 %v3386_v36, 0.0  ;;  %v3408_v17 = vmax.f32 %v3388_v37, 0.0  ;;  %v3349_v11 = vmul.f32 %v3329_v1, %v12933_v55  ;;  %v3351_v33 = vmul.f32 %v3331_v22, %v12934_v6  ;;  %v3191_v35 = vpop.f32.mrb[46].mxu0  ;;  %v3286_v38 = vpop.f32.mrb[46].mxu1 }
 0x8ff   :  { %v3440_v51 = vrot.slane %v3405_v34, 7  ;;  %v3442_v5 = vrot.slane %v3407_v2, 7  ;;  %v3389_v10 = vadd.f32 %v11825_v48, %v3348_v26  ;;  %v3391_v14 = vadd.f32 %v11829_v57, %v3350_v3  ;;  %v3193_v9 = vpop.f32.mrb[47].mxu0  ;;  %v3288_v45 = vpop.f32.mrb[47].mxu1 }
 0x900   :  { %v3441_v46 = vrot.slane %v3406_v52, 7  ;;  %v3443_v50 = vrot.slane %v3408_v17, 7  ;;  %v3390_v63 = vadd.f32 %v11833_v53, %v3349_v11  ;;  %v3392_v13 = vadd.f32 %v11837_v39, %v3351_v33 }
 0x901   :  { %3464 = vst [vmem:[#allocation3] sm:$0xfe] %v3440_v51  ;;  %3466 = vst [vmem:[#allocation3 + $0x10] sm:$0xfe] %v3442_v5  ;;  %v3409_v54 = vmax.f32 %v3389_v10, 0.0  ;;  %v3411_v62 = vmax.f32 %v3391_v14, 0.0  ;;  %v3332_v47 = vmul.f32 %v11812_v18, %v3191_v35  ;;  %v3334_v58 = vmul.f32 %v11815_v29, %v3286_v38 }
 0x902   :  { %3465 = vst [vmem:[#allocation3 + $0x8] sm:$0xfe] %v3441_v46  ;;  %3467 = vst [vmem:[#allocation3 + $0x18] sm:$0xfe] %v3443_v50  ;;  %v3410_v59 = vmax.f32 %v3390_v63, 0.0  ;;  %v3412_v28 = vmax.f32 %v3392_v13, 0.0  ;;  %v3333_v8 = vmul.f32 %v11818_v30, %v3193_v9  ;;  %v3335_v44 = vmul.f32 %v11821_v32, %v3288_v45 }
 0x903   :  { %v3197_v12 = vpop.f32.mrb[48].mxu0  ;;  %v3292_v43 = vpop.f32.mrb[48].mxu1  ;;  %v3444_v0 = vrot.slane %v3409_v54, 7  ;;  %v3448_v36 = vrot.slane %v3411_v62, 7  ;;  %v3352_v37 = vmul.f32 %v3332_v47, %v11661_v61  ;;  %v3354_v1 = vmul.f32 %v3334_v58, %v11670_v4 }
 0x904   :  { %v3199_v22 = vpop.f32.mrb[49].mxu0  ;;  %v3294_v34 = vpop.f32.mrb[49].mxu1  ;;  %v3446_v2 = vrot.slane %v3410_v59, 7  ;;  %v3450_v60 = vrot.slane %v3412_v28, 7  ;;  %v3353_v26 = vmul.f32 %v3333_v8, %v11664_v49  ;;  %v3355_v16 = vmul.f32 %v3335_v44, %v11667_v20 }
 0x905   :  { %v11868_v3 = vsel %vm123_vm1, %v3440_v51, %v3444_v0  ;;  %3472 = vst [vmem:[#allocation3 + $0x40] sm:$0x1] %v3444_v0  ;;  %v11871_v52 = vsel %vm123_vm1, %v3442_v5, %v3448_v36  ;;  %3474 = vst [vmem:[#allocation3 + $0x50] sm:$0x1] %v3448_v36  ;;  %v3393_v61 = vadd.f32 %v11825_v48, %v3352_v37 }
 0x906   :  { %v3395_v4 = vadd.f32 %v11829_v57, %v3354_v1  ;;  %3468 = vst [vmem:[#allocation3 + $0x20] sm:$0xff] %v11868_v3  ;;  %3470 = vst [vmem:[#allocation3 + $0x30] sm:$0xff] %v11871_v52  ;;  %v11878_v49 = vsel %vm123_vm1, %v3441_v46, %v3446_v2  ;;  %v11881_v20 = vsel %vm123_vm1, %v3443_v50, %v3450_v60  ;;  %v3203_v11 = vpop.f32.mrb[50].mxu0  ;;  %v3298_v6 = vpop.f32.mrb[50].mxu1 }
 0x907   :  { %3473 = vst [vmem:[#allocation3 + $0x48] sm:$0x1] %v3446_v2  ;;  %3475 = vst [vmem:[#allocation3 + $0x58] sm:$0x1] %v3450_v60  ;;  %v3394_v17 = vadd.f32 %v11833_v53, %v3353_v26  ;;  %v3396_v55 = vadd.f32 %v11837_v39, %v3355_v16  ;;  %v3413_v33 = vmax.f32 %v3393_v61, 0.0  ;;  %v3336_v38 = vmul.f32 %v11812_v18, %v3197_v12  ;;  %v3205_v5 = vpop.f32.mrb[51].mxu0 }
 0x908   :  { %3469 = vst [vmem:[#allocation3 + $0x28] sm:$0xff] %v11878_v49  ;;  %3471 = vst [vmem:[#allocation3 + $0x38] sm:$0xff] %v11881_v20  ;;  %v3415_v35 = vmax.f32 %v3395_v4, 0.0  ;;  %v3338_v51 = vmul.f32 %v11815_v29, %v3292_v43  ;;  %v3300_v10 = vpop.f32.mrb[51].mxu1  ;;  %v3337_v45 = vmul.f32 %v11818_v30, %v3199_v22  ;;  %v3339_v46 = vmul.f32 %v11821_v32, %v3294_v34 }
 0x909   :  { %v3414_v14 = vmax.f32 %v3394_v17, 0.0  ;;  %v3416_v9 = vmax.f32 %v3396_v55, 0.0  ;;  %v3494_v50 = vrot.slane %v3413_v33, 7  ;;  %v3356_v13 = vmul.f32 %v3336_v38, %v11673_v15  ;;  %v3699_v61 = vld [vmem:[#allocation3 + $0x8] sm:$0xfe] }
 0x90a   :  { %v3496_v63 = vrot.slane %v3415_v35, 7  ;;  %v3358_v54 = vmul.f32 %v3338_v51, %v11676_v24  ;;  %v3357_v58 = vmul.f32 %v3337_v45, %v11679_v40  ;;  %v3359_v59 = vmul.f32 %v3339_v46, %v11682_v41  ;;  %v3698_v17 = vld [vmem:[#allocation3] sm:$0xfe] }
 0x90b   :  { %v3495_v62 = vrot.slane %v3414_v14, 7  ;;  %v3497_v47 = vrot.slane %v3416_v9, 7  ;;  %3526 = vst [vmem:[#allocation3 + $0x40] sm:$0xf8] %v3494_v50  ;;  %v3397_v28 = vadd.f32 %v11825_v48, %v3356_v13  ;;  %v3340_v44 = vmul.f32 %v11812_v18, %v3203_v11 }
 0x90c   :  { %3528 = vst [vmem:[#allocation3 + $0x50] sm:$0xf8] %v3496_v63  ;;  %v3399_v8 = vadd.f32 %v11829_v57, %v3358_v54  ;;  %v3342_v12 = vmul.f32 %v11815_v29, %v3298_v6  ;;  %v3398_v15 = vadd.f32 %v11833_v53, %v3357_v58  ;;  %v3400_v24 = vadd.f32 %v11837_v39, %v3359_v59 }
 0x90d   :  { %3527 = vst [vmem:[#allocation3 + $0x48] sm:$0xf8] %v3495_v62  ;;  %3529 = vst [vmem:[#allocation3 + $0x58] sm:$0xf8] %v3497_v47  ;;  %v3341_v40 = vmul.f32 %v11818_v30, %v3205_v5  ;;  %v3343_v41 = vmul.f32 %v11821_v32, %v3300_v10  ;;  %v3417_v43 = vmax.f32 %v3397_v28, 0.0  ;;  %v3360_v36 = vmul.f32 %v3340_v44, %v11707_v27 }
 0x90e   :  { %v3419_v0 = vmax.f32 %v3399_v8, 0.0  ;;  %v3362_v37 = vmul.f32 %v3342_v12, %v11710_v19  ;;  %v3418_v1 = vmax.f32 %v3398_v15, 0.0  ;;  %v3420_v18 = vmax.f32 %v3400_v24, 0.0  ;;  %v10273_v24 = vld [vmem:[#allocation9 + $0x600] ss:$16 sps:$4 sm:$0xff]  }
 0x90f   :  { %v3361_v29 = vmul.f32 %v3341_v40, %v11701_v21  ;;  %v3363_v22 = vmul.f32 %v3343_v41, %v11704_v23  ;;  %v3498_v34 = vrot.slane %v3417_v43, 7  ;;  %v3401_v60 = vadd.f32 %v11825_v48, %v3360_v36  ;;  %v10276_v40 = vld [vmem:[#allocation9 + $0x608] ss:$16 sps:$4 sm:$0xff]   ;;  %v10281_v43 = vld [vmem:[#allocation9 + $0x624] ss:$16 sps:$4 sm:$0xff]  }
 0x910   :  { %v3502_v2 = vrot.slane %v3419_v0, 7  ;;  %v3403_v30 = vadd.f32 %v11829_v57, %v3362_v37  ;;  %v3500_v26 = vrot.slane %v3418_v1, 7  ;;  %v3504_v32 = vrot.slane %v3420_v18, 7  ;;  %v10284_v0 = vld [vmem:[#allocation9 + $0x62c] ss:$16 sps:$4 sm:$0xff]  }
 0x911   :  { %v3402_v16 = vadd.f32 %v11833_v53, %v3361_v29  ;;  %v3404_v27 = vadd.f32 %v11837_v39, %v3363_v22  ;;  %v3499_v19 = vsel %vm123_vm1, %v3494_v50, %v3498_v34  ;;  %v3421_v21 = vmax.f32 %v3401_v60, 0.0  ;;  %v10279_v22 = vld [vmem:[#allocation9 + $0x620] ss:$16 sps:$4 sm:$0xff]   ;;  %v10287_v60 = vld [vmem:[#allocation9 + $0x644] ss:$16 sps:$4 sm:$0xff]  }
 0x912   :  { %v11913_v4 = vsel %vm123_vm1, %v3496_v63, %v3502_v2  ;;  %v3423_v23 = vmax.f32 %v3403_v30, 0.0  ;;  %v3501_v55 = vsel %vm123_vm1, %v3495_v62, %v3500_v26  ;;  %v11917_v48 = vsel %vm123_vm1, %v3497_v47, %v3504_v32  ;;  %v3546_v6 = vld [vmem:[#allocation3 + $0x40] sm:$0xff]  ;;  %v10290_v30 = vld [vmem:[#allocation9 + $0x64c] ss:$16 sps:$4 sm:$0xff]  }
 0x913   :  { %v3422_v57 = vmax.f32 %v3402_v16, 0.0  ;;  %v3424_v11 = vmax.f32 %v3404_v27, 0.0  ;;  %v3506_v53 = vrot.slane %v3421_v21, 7  ;;  %v3707_v35 = vpack.c.bf16 %v11878_v49, %v3699_v61 }
 0x914   :  { %v3510_v33 = vrot.slane %v3423_v23, 7  ;;  %v3547_v39 = vld [vmem:[#allocation3 + $0x48] sm:$0xff]  ;;  %v11920_v38 = vpack.c.bf16 %v3499_v19, %v3546_v6  ;;  %v3706_v14 = vpack.c.bf16 %v11868_v3, %v3698_v17  ;;  %v3549_v27 = vld [vmem:[#allocation3 + $0x58] sm:$0xff] }
 0x915   :  { %v3508_v51 = vrot.slane %v3422_v57, 7  ;;  %v3512_v5 = vrot.slane %v3424_v11, 7  ;;  %v11922_v10 = vpack.c.bf16 %v3501_v55, %v3547_v39  ;;  %v3507_v9 = vsel %vm123_vm1, %v3498_v34, %v3506_v53  ;;  %v10282_v34 = vld [vmem:[#allocation9 + $0x628] ss:$16 sps:$4 sm:$0xff]   ;;  %v10285_v57 = vld [vmem:[#allocation9 + $0x640] ss:$16 sps:$4 sm:$0xff]  }
 0x916   :  { %v3511_v45 = vsel %vm123_vm1, %v3502_v2, %v3510_v33  ;;  %v3858_v46 = vshll.u32 %v3707_v35, 16  ;;  %3534 = vst [vmem:[#allocation3 + $0x80] sm:$0x7] %v3507_v9  ;;  %v3856_v54 = vshrl.u32 %v3707_v35, 16  ;;  %v3846_v47 = vshll.u32 %v3706_v14, 16 }
 0x917   :  { %3536 = vst [vmem:[#allocation3 + $0x90] sm:$0x7] %v3511_v45  ;;  %v3509_v50 = vsel %vm123_vm1, %v3500_v26, %v3508_v51  ;;  %v3513_v63 = vsel %vm123_vm1, %v3504_v32, %v3512_v5  ;;  %v3863_v13 = vshll.u32 %v11922_v10, 16  ;;  %v3851_v58 = vshll.u32 %v11920_v38, 16  ;;  %v3701_v2 = vld [vmem:[#allocation3 + $0x18] sm:$0xfe] }
 0x918   :  { %3535 = vst [vmem:[#allocation3 + $0x88] sm:$0x7] %v3509_v50  ;;  %3537 = vst [vmem:[#allocation3 + $0x98] sm:$0x7] %v3513_v63  ;;  %v3860_v62 = vrot.slane %v3858_v46, 1  ;;  %v3844_v8 = vshrl.u32 %v3706_v14, 16  ;;  %v3709_v21 = vpack.c.bf16 %v11881_v20, %v3701_v2  ;;  %v11937_v53 = vpack.c.bf16 %v11917_v48, %v3549_v27 }
 0x919   :  { %v3865_v59 = vrot.slane %v3863_v13, 1  ;;  %v3848_v44 = vrot.slane %v3846_v47, 1  ;;  %v3853_v12 = vrot.slane %v3851_v58, 1  ;;  %v3899_v32 = vshrl.u32 %v11922_v10, 16  ;;  %v10288_v11 = vld [vmem:[#allocation9 + $0x648] ss:$16 sps:$4 sm:$0xff]  }
 0x91a   :  { %v3861_v28 = vor.u32 %v3860_v62, %v3856_v54  ;;  %v3891_v61 = vshrl.u32 %v11920_v38, 16  ;;  %v10293_v51 = vld [vmem:[#allocation9 + $0x664] ss:$16 sps:$4 sm:$0xff]   ;;  %v10296_v5 = vld [vmem:[#allocation9 + $0x66c] ss:$16 sps:$4 sm:$0xff]   ;;  %v3882_v14 = vshll.u32 %v3709_v21, 16 }
 0x91b   :  { %v3849_v41 = vor.u32 %v3848_v44, %v3844_v8  ;;  %v3901_v23 = vor.u32 %v3899_v32, %v3865_v59  ;;  %v10291_v9 = vld [vmem:[#allocation9 + $0x660] ss:$16 sps:$4 sm:$0xff]   ;;  %v10294_v45 = vld [vmem:[#allocation9 + $0x668] ss:$16 sps:$4 sm:$0xff]   ;;  %v3887_v46 = vshll.u32 %v11937_v53, 16  ;;  %v3880_v47 = vshrl.u32 %v3709_v21, 16 }
 0x91c   :  { %v3866_v15 = vsel %vm329_vm3, %v3861_v28, %v3865_v59  ;;  %v3893_v6 = vor.u32 %v3891_v61, %v3853_v12  ;;  %v10299_v48 = vld [vmem:[#allocation9 + $0x684] ss:$16 sps:$4 sm:$0xff]   ;;  %v10302_v50 = vld [vmem:[#allocation9 + $0x68c] ss:$16 sps:$4 sm:$0xff]   ;;  %v3884_v63 = vrot.slane %v3882_v14, 1 }
 0x91d   :  { %4619 = vmatprep.mubr.bf16.mxu0 %v3866_v15  ;;  %4741 = vmatprep.mubr.bf16.mxu1 %v3866_v15  ;;  %v3854_v36 = vsel %vm329_vm3, %v3849_v41, %v3853_v12  ;;  %v3702_v37 = vld [vmem:[#allocation3 + $0x80] sm:$0x7]  ;;  %v10300_v62 = vld [vmem:[#allocation9 + $0x688] ss:$16 sps:$4 sm:$0xff]   ;;  %v11942_v58 = vrot.slane %v3887_v46, 1 }
 0x91e   :  { %4620 = vmatmul.mubr.bf16.vlgmr.msra.gmra.mrb[52].mxu0 %v3854_v36  ;;  %4742 = vmatmul.mubr.bf16.vlgmr.msra.gmra.mrb[52].mxu1 %v3854_v36  ;;  %v3710_v18 = vpack.c.bf16 %v3702_v37, %v3702_v37  ;;  %v10297_v54 = vld [vmem:[#allocation9 + $0x680] ss:$16 sps:$4 sm:$0xff]   ;;  %v3885_v28 = vor.u32 %v3884_v63, %v3880_v47  ;;  %v10305_v8 = vld [vmem:[#allocation9 + $0x6a4] ss:$16 sps:$4 sm:$0xff]   ;;  %v10308_v44 = vld [vmem:[#allocation9 + $0x6ac] ss:$16 sps:$4 sm:$0xff]  }
 0x91f   :  { %v3703_v1 = vld [vmem:[#allocation3 + $0x88] sm:$0x7]  ;;  %4649 = vmatpush1.bf16.msra.mxu0 %v10273_v24  ;;  %4771 = vmatpush1.bf16.msra.mxu1 %v10276_v40  ;;  %v10303_v15 = vld [vmem:[#allocation9 + $0x6a0] ss:$16 sps:$4 sm:$0xff]   ;;  %v10311_v40 = vld [vmem:[#allocation9 + $0x6c4] ss:$16 sps:$4 sm:$0xff]  }
 0x920   :  { %v3711_v29 = vpack.c.bf16 %v3703_v1, %v3703_v1  ;;  %4650 = vmatprep.subr.bf16.mxu0 %v10281_v43  ;;  %4772 = vmatprep.subr.bf16.mxu1 %v10284_v0  ;;  %v3895_v26 = vshll.u32 %v3710_v18, 16  ;;  %v3923_v13 = vshrl.u32 %v3710_v18, 16  ;;  %v3890_v12 = vsel %vm329_vm3, %v3885_v28, %v11942_v58  ;;  %v10306_v24 = vld [vmem:[#allocation9 + $0x6a8] ss:$16 sps:$4 sm:$0xff]   ;;  %v10314_v41 = vld [vmem:[#allocation9 + $0x6cc] ss:$16 sps:$4 sm:$0xff]  }
 0x921   :  { %v10309_v43 = vld [vmem:[#allocation9 + $0x6c0] ss:$16 sps:$4 sm:$0xff]   ;;  %v10312_v0 = vld [vmem:[#allocation9 + $0x6c8] ss:$16 sps:$4 sm:$0xff]   ;;  %v10317_v36 = vld [vmem:[#allocation9 + $0x6e4] ss:$16 sps:$4 sm:$0xff]  }
 0x922   :  { %v3903_v16 = vshll.u32 %v3711_v29, 16  ;;  %v3897_v19 = vrot.slane %v3895_v26, 1  ;;  %v3926_v55 = vshrl.u32 %v3711_v29, 16  ;;  %v10320_v37 = vld [vmem:[#allocation9 + $0x6ec] ss:$16 sps:$4 sm:$0xff]  }
 0x923   :  { %4651 = vmatpush1.bf16.msra.mxu0 %v10279_v22  ;;  %4773 = vmatpush1.bf16.msra.mxu1 %v10282_v34  ;;  %v10315_v1 = vld [vmem:[#allocation9 + $0x6e0] ss:$16 sps:$4 sm:$0xff]   ;;  %v10318_v18 = vld [vmem:[#allocation9 + $0x6e8] ss:$16 sps:$4 sm:$0xff]   ;;  %v10323_v29 = vld [vmem:[#allocation9 + $0x704] ss:$16 sps:$4 sm:$0xff]  }
 0x924   :  { %v3905_v17 = vrot.slane %v3903_v16, 1  ;;  %4652 = vmatprep.subr.bf16.mxu0 %v10287_v60  ;;  %4774 = vmatprep.subr.bf16.mxu1 %v10290_v30  ;;  %v3898_v35 = vsel %vm329_vm3, %v3893_v6, %v3897_v19  ;;  %v3925_v59 = vor.u32 %v3923_v13, %v3897_v19  ;;  %v10326_v22 = vld [vmem:[#allocation9 + $0x70c] ss:$16 sps:$4 sm:$0xff]   ;;  %v10321_v34 = vld [vmem:[#allocation9 + $0x700] ss:$16 sps:$4 sm:$0xff]  }
 0x925   :  { %v10324_v2 = vld [vmem:[#allocation9 + $0x708] ss:$16 sps:$4 sm:$0xff]   ;;  %v10329_v60 = vld [vmem:[#allocation9 + $0x724] ss:$16 sps:$4 sm:$0xff]   ;;  %v10332_v30 = vld [vmem:[#allocation9 + $0x72c] ss:$16 sps:$4 sm:$0xff]  }
 0x926   :  { %v3906_v33 = vsel %vm329_vm3, %v3901_v23, %v3905_v17  ;;  %v3928_v39 = vor.u32 %v3926_v55, %v3905_v17  ;;  %v10327_v26 = vld [vmem:[#allocation9 + $0x720] ss:$16 sps:$4 sm:$0xff]   ;;  %v10330_v32 = vld [vmem:[#allocation9 + $0x728] ss:$16 sps:$4 sm:$0xff]   ;;  %v10335_v16 = vld [vmem:[#allocation9 + $0x744] ss:$16 sps:$4 sm:$0xff]  }
 0x927   :  { %4629 = vmatprep.mubr.bf16.mxu0 %v3906_v33  ;;  %4751 = vmatprep.mubr.bf16.mxu1 %v3906_v33  ;;  %v10338_v27 = vld [vmem:[#allocation9 + $0x74c] ss:$16 sps:$4 sm:$0xff]   ;;  %v10333_v61 = vld [vmem:[#allocation9 + $0x740] ss:$16 sps:$4 sm:$0xff]   ;;  %v10336_v19 = vld [vmem:[#allocation9 + $0x748] ss:$16 sps:$4 sm:$0xff]  }
 0x928   :  { %4630 = vmatmul.mubr.bf16.gmra.mrb[56].mxu0 %v3898_v35  ;;  %4752 = vmatmul.mubr.bf16.gmra.mrb[56].mxu1 %v3898_v35  ;;  %v10341_v21 = vld [vmem:[#allocation9 + $0x764] ss:$16 sps:$4 sm:$0xff]   ;;  %v10344_v23 = vld [vmem:[#allocation9 + $0x76c] ss:$16 sps:$4 sm:$0xff]   ;;  %v10339_v17 = vld [vmem:[#allocation9 + $0x760] ss:$16 sps:$4 sm:$0xff]  }
 0x929   :  { %4653 = vmatpush1.bf16.msra.mxu0 %v10285_v57  ;;  %4775 = vmatpush1.bf16.msra.mxu1 %v10288_v11  ;;  %v10342_v55 = vld [vmem:[#allocation9 + $0x768] ss:$16 sps:$4 sm:$0xff]   ;;  %v10347_v57 = vld [vmem:[#allocation9 + $0x784] ss:$16 sps:$4 sm:$0xff]   ;;  %v10350_v11 = vld [vmem:[#allocation9 + $0x78c] ss:$16 sps:$4 sm:$0xff]  }
 0x92a   :  { %4639 = vmatprep.mubr.bf16.mxu0 %v3928_v39  ;;  %4761 = vmatprep.mubr.bf16.mxu1 %v3928_v39  ;;  %v10345_v6 = vld [vmem:[#allocation9 + $0x780] ss:$16 sps:$4 sm:$0xff]   ;;  %v10348_v33 = vld [vmem:[#allocation9 + $0x788] ss:$16 sps:$4 sm:$0xff]   ;;  %v10353_v39 = vld [vmem:[#allocation9 + $0x7a4] ss:$16 sps:$4 sm:$0xff]  }
 0x92b   :  { %4654 = vmatprep.subr.bf16.mxu0 %v10293_v51  ;;  %4776 = vmatprep.subr.bf16.mxu1 %v10296_v5  ;;  %v10356_v35 = vld [vmem:[#allocation9 + $0x7ac] ss:$16 sps:$4 sm:$0xff]   ;;  %v3700_v51 = vld [vmem:[#allocation3 + $0x10] sm:$0xfe]  ;;  %v3705_v46 = vld [vmem:[#allocation3 + $0x98] sm:$0x7] }
 0x92c   :  { %v3548_v5 = vld [vmem:[#allocation3 + $0x50] sm:$0xff]  ;;  %v11950_v13 = vpack.c.bf16 %v3705_v46, %v3705_v46  ;;  %v10368_v28 = vld [vmem:[#allocation9 + $0x7ec] ss:$16 sps:$4 sm:$0xff]  }
 0x92d   :  { %4655 = vmatpush1.bf16.msra.mxu0 %v10291_v9  ;;  %4777 = vmatpush1.bf16.msra.mxu1 %v10294_v45  ;;  %v10351_v14 = vld [vmem:[#allocation9 + $0x7a0] ss:$16 sps:$4 sm:$0xff]   ;;  %v10354_v9 = vld [vmem:[#allocation9 + $0x7a8] ss:$16 sps:$4 sm:$0xff]   ;;  %v3708_v45 = vpack.c.bf16 %v11871_v52, %v3700_v51  ;;  %v11948_v63 = vpack.c.bf16 %v11913_v4, %v3548_v5  ;;  %v10395_v51 = vld [vmem:[#allocation9 + $0x84] ss:$16 sps:$4 sm:$0xff]  }
 0x92e   :  { %4656 = vmatprep.subr.bf16.mxu0 %v10299_v48  ;;  %4778 = vmatprep.subr.bf16.mxu1 %v10302_v50  ;;  %v10359_v48 = vld [vmem:[#allocation9 + $0x7c4] ss:$16 sps:$4 sm:$0xff]   ;;  %v10362_v50 = vld [vmem:[#allocation9 + $0x7cc] ss:$16 sps:$4 sm:$0xff]   ;;  %v10363_v4 = vld [vmem:[#allocation9 + $0x7e0] ss:$16 sps:$4 sm:$0xff]  }
 0x92f   :  { %v3870_v47 = vshll.u32 %v3708_v45, 16  ;;  %v3875_v52 = vshll.u32 %v11948_v63, 16  ;;  %v10398_v5 = vld [vmem:[#allocation9 + $0x8c] ss:$16 sps:$4 sm:$0xff]   ;;  %v10393_v46 = vld [vmem:[#allocation9 + $0x80] ss:$16 sps:$4 sm:$0xff]  }
 0x930   :  { %4640 = vmatmul.mubr.bf16.gmra.mrb[60].mxu0 %v3925_v59  ;;  %4762 = vmatmul.mubr.bf16.gmra.mrb[60].mxu1 %v3925_v59  ;;  %v10365_v59 = vld [vmem:[#allocation9 + $0x7e4] ss:$16 sps:$4 sm:$0xff]  }
 0x931   :  { %4657 = vmatpush1.bf16.msra.mxu0 %v10297_v54  ;;  %4779 = vmatpush1.bf16.msra.mxu1 %v10300_v62  ;;  %v10357_v54 = vld [vmem:[#allocation9 + $0x7c0] ss:$16 sps:$4 sm:$0xff]   ;;  %v10360_v62 = vld [vmem:[#allocation9 + $0x7c8] ss:$16 sps:$4 sm:$0xff]  }
 0x932   :  { %4680 = vmatprep.mubr.bf16.mxu0 %v3890_v12  ;;  %4802 = vmatprep.mubr.bf16.mxu1 %v3890_v12  ;;  %v10366_v12 = vld [vmem:[#allocation9 + $0x7e8] ss:$16 sps:$4 sm:$0xff]  }
 0x933   :  { %4658 = vmatprep.subr.bf16.mxu0 %v10305_v8  ;;  %4780 = vmatprep.subr.bf16.mxu1 %v10308_v44  ;;  %v3919_v8 = vshll.u32 %v11950_v13, 16  ;;  %v3704_v44 = vld [vmem:[#allocation3 + $0x90] sm:$0x7] }
 0x935   :  { %4659 = vmatpush1.bf16.msra.mxu0 %v10303_v15  ;;  %4781 = vmatpush1.bf16.msra.mxu1 %v10306_v24  ;;  %v3872_v15 = vrot.slane %v3870_v47, 1  ;;  %v10371_v24 = vld [vmem:[#allocation9 + $0x4] ss:$16 sps:$4 sm:$0xff]   ;;  %v10402_v47 = vld [vmem:[#allocation9 + $0xa8] ss:$16 sps:$4 sm:$0xff]  }
 0x936   :  { %4660 = vmatprep.subr.bf16.mxu0 %v10311_v40  ;;  %4782 = vmatprep.subr.bf16.mxu1 %v10314_v41  ;;  %v10374_v40 = vld [vmem:[#allocation9 + $0xc] ss:$16 sps:$4 sm:$0xff]   ;;  %v3868_v41 = vshrl.u32 %v3708_v45, 16 }
 0x939   :  { %4661 = vmatpush1.bf16.msra.mxu0 %v10309_v43  ;;  %4783 = vmatpush1.bf16.msra.mxu1 %v10312_v0  ;;  %v3877_v43 = vrot.slane %v3875_v52, 1  ;;  %v3712_v0 = vpack.c.bf16 %v3704_v44, %v3704_v44  ;;  %v10405_v52 = vld [vmem:[#allocation9 + $0xc0] ss:$16 sps:$4 sm:$0xff]   ;;  %v10416_v44 = vld [vmem:[#allocation9 + $0xec] ss:$16 sps:$4 sm:$0xff]  }
 0x93a   :  { %4662 = vmatprep.subr.bf16.mxu0 %v10317_v36  ;;  %4784 = vmatprep.subr.bf16.mxu1 %v10320_v37  ;;  %v3915_v36 = vshrl.u32 %v11937_v53, 16  ;;  %v3921_v37 = vrot.slane %v3919_v8, 1  ;;  %v10408_v8 = vld [vmem:[#allocation9 + $0xc8] ss:$16 sps:$4 sm:$0xff]  }
 0x93d   :  { %4663 = vmatpush1.bf16.msra.mxu0 %v10315_v1  ;;  %4785 = vmatpush1.bf16.msra.mxu1 %v10318_v18  ;;  %v3873_v1 = vor.u32 %v3872_v15, %v3868_v41  ;;  %v10369_v18 = vld [vmem:[#allocation9] ss:$16 sps:$4 sm:$0xff]   ;;  %v10419_v15 = vld [vmem:[#allocation9 + $0x104] ss:$16 sps:$4 sm:$0xff]   ;;  %v10420_v41 = vld [vmem:[#allocation9 + $0x108] ss:$16 sps:$4 sm:$0xff]  }
 0x93e   :  { %4664 = vmatprep.subr.bf16.mxu0 %v10323_v29  ;;  %4786 = vmatprep.subr.bf16.mxu1 %v10326_v22  ;;  %v10372_v29 = vld [vmem:[#allocation9 + $0x8] ss:$16 sps:$4 sm:$0xff]   ;;  %v3917_v22 = vor.u32 %v3915_v36, %v11942_v58  ;;  %v10423_v36 = vld [vmem:[#allocation9 + $0x120] ss:$16 sps:$4 sm:$0xff]  }
 0x941   :  { %4665 = vmatpush1.bf16.msra.mxu0 %v10321_v34  ;;  %4787 = vmatpush1.bf16.msra.mxu1 %v10324_v2  ;;  %v3878_v34 = vsel %vm329_vm3, %v3873_v1, %v3877_v43  ;;  %v10377_v2 = vld [vmem:[#allocation9 + $0x24] ss:$16 sps:$4 sm:$0xff]  }
 0x942   :  { %4666 = vmatprep.subr.bf16.mxu0 %v10329_v60  ;;  %4788 = vmatprep.subr.bf16.mxu1 %v10332_v30  ;;  %v10380_v60 = vld [vmem:[#allocation9 + $0x2c] ss:$16 sps:$4 sm:$0xff]   ;;  %v3911_v30 = vshll.u32 %v3712_v0, 16  ;;  %v10431_v1 = vld [vmem:[#allocation9 + $0x144] ss:$16 sps:$4 sm:$0xff]  }
 0x944   :  { %v3913_v58 = vrot.slane %v3911_v30, 1  ;;  %v10438_v30 = vld [vmem:[#allocation9 + $0x168] ss:$16 sps:$4 sm:$0xff]  }
 0x945   :  { %4667 = vmatpush1.bf16.msra.mxu0 %v10327_v26  ;;  %4789 = vmatpush1.bf16.msra.mxu1 %v10330_v32  ;;  %v3922_v26 = vsel %vm329_vm3, %v3917_v22, %v3921_v37  ;;  %v10375_v32 = vld [vmem:[#allocation9 + $0x20] ss:$16 sps:$4 sm:$0xff]   ;;  %v10432_v22 = vld [vmem:[#allocation9 + $0x148] ss:$16 sps:$4 sm:$0xff]  }
 0x946   :  { %4668 = vmatprep.subr.bf16.mxu0 %v10335_v16  ;;  %4790 = vmatprep.subr.bf16.mxu1 %v10338_v27  ;;  %v10378_v16 = vld [vmem:[#allocation9 + $0x28] ss:$16 sps:$4 sm:$0xff]   ;;  %v3907_v27 = vshrl.u32 %v11948_v63, 16 }
 0x949   :  { %4669 = vmatpush1.bf16.msra.mxu0 %v10333_v61  ;;  %4791 = vmatpush1.bf16.msra.mxu1 %v10336_v19  ;;  %v10383_v61 = vld [vmem:[#allocation9 + $0x44] ss:$16 sps:$4 sm:$0xff]   ;;  %v10386_v19 = vld [vmem:[#allocation9 + $0x4c] ss:$16 sps:$4 sm:$0xff]  }
 0x94a   :  { %4670 = vmatprep.subr.bf16.mxu0 %v10341_v21  ;;  %4792 = vmatprep.subr.bf16.mxu1 %v10344_v23  ;;  %v3909_v21 = vor.u32 %v3907_v27, %v3877_v43  ;;  %v3932_v23 = vshrl.u32 %v11950_v13, 16  ;;  %v10401_v13 = vld [vmem:[#allocation9 + $0xa4] ss:$16 sps:$4 sm:$0xff]   ;;  %v10444_v27 = vld [vmem:[#allocation9 + $0x188] ss:$16 sps:$4 sm:$0xff]  }
 0x94b   :  { %v10425_v43 = vld [vmem:[#allocation9 + $0x124] ss:$16 sps:$4 sm:$0xff]  }
 0x94d   :  { %4671 = vmatpush1.bf16.msra.mxu0 %v10339_v17  ;;  %4793 = vmatpush1.bf16.msra.mxu1 %v10342_v55  ;;  %v10381_v17 = vld [vmem:[#allocation9 + $0x40] ss:$16 sps:$4 sm:$0xff]   ;;  %v10384_v55 = vld [vmem:[#allocation9 + $0x48] ss:$16 sps:$4 sm:$0xff]  }
 0x94e   :  { %4672 = vmatprep.subr.bf16.mxu0 %v10347_v57  ;;  %4794 = vmatprep.subr.bf16.mxu1 %v10350_v11  ;;  %v3914_v57 = vsel %vm329_vm3, %v3909_v21, %v3913_v58  ;;  %v3934_v11 = vor.u32 %v3932_v23, %v3921_v37  ;;  %v10426_v37 = vld [vmem:[#allocation9 + $0x128] ss:$16 sps:$4 sm:$0xff]   ;;  %v10455_v23 = vld [vmem:[#allocation9 + $0x1c4] ss:$16 sps:$4 sm:$0xff]  }
 0x94f   :  { %v10450_v21 = vld [vmem:[#allocation9 + $0x1a8] ss:$16 sps:$4 sm:$0xff]  }
 0x951   :  { %4673 = vmatpush1.bf16.msra.mxu0 %v10345_v6  ;;  %4795 = vmatpush1.bf16.msra.mxu1 %v10348_v33  ;;  %v10389_v6 = vld [vmem:[#allocation9 + $0x64] ss:$16 sps:$4 sm:$0xff]   ;;  %v10392_v33 = vld [vmem:[#allocation9 + $0x6c] ss:$16 sps:$4 sm:$0xff]  }
 0x952   :  { %4674 = vmatprep.subr.bf16.mxu0 %v10353_v39  ;;  %4796 = vmatprep.subr.bf16.mxu1 %v10356_v35  ;;  %v10387_v39 = vld [vmem:[#allocation9 + $0x60] ss:$16 sps:$4 sm:$0xff]   ;;  %v10390_v35 = vld [vmem:[#allocation9 + $0x68] ss:$16 sps:$4 sm:$0xff]  }
 0x955   :  { %4675 = vmatpush1.bf16.msra.mxu0 %v10351_v14  ;;  %4797 = vmatpush1.bf16.msra.mxu1 %v10354_v9  ;;  %v3929_v14 = vshrl.u32 %v3712_v0, 16  ;;  %v3539_v9 = vld [vmem:[#allocation3 + $0x8] sm:$0xff] }
 0x956   :  { %4676 = vmatprep.subr.bf16.mxu0 %v10359_v48  ;;  %4798 = vmatprep.subr.bf16.mxu1 %v10362_v50  ;;  %v10396_v48 = vld [vmem:[#allocation9 + $0x88] ss:$16 sps:$4 sm:$0xff]   ;;  %v3559_v50 = vpack.c.bf16 %v11878_v49, %v3539_v9  ;;  %v10413_v49 = vld [vmem:[#allocation9 + $0xe4] ss:$16 sps:$4 sm:$0xff]   ;;  %v10428_v0 = vld [vmem:[#allocation9 + $0x12c] ss:$16 sps:$4 sm:$0xff]  }
 0x957   :  { %v3931_v45 = vor.u32 %v3929_v14, %v3913_v58  ;;  %v10449_v58 = vld [vmem:[#allocation9 + $0x1a4] ss:$16 sps:$4 sm:$0xff]   ;;  %v10465_v14 = vld [vmem:[#allocation9 + $0x200] ss:$16 sps:$4 sm:$0xff]  }
 0x959   :  { %4677 = vmatpush1.bf16.msra.mxu0 %v10357_v54  ;;  %4799 = vmatpush1.bf16.msra.mxu1 %v10360_v62  ;;  %v10404_v54 = vld [vmem:[#allocation9 + $0xac] ss:$16 sps:$4 sm:$0xff]   ;;  %v10399_v62 = vld [vmem:[#allocation9 + $0xa0] ss:$16 sps:$4 sm:$0xff]  }
 0x95a   :  { %4678 = vmatprep.subr.bf16.mxu0 %v10365_v59  ;;  %4800 = vmatprep.subr.bf16.mxu1 %v10368_v28  ;;  %v10407_v59 = vld [vmem:[#allocation9 + $0xc4] ss:$16 sps:$4 sm:$0xff]   ;;  %v10410_v28 = vld [vmem:[#allocation9 + $0xcc] ss:$16 sps:$4 sm:$0xff]  }
 0x95d   :  { %4679 = vmatpush1.bf16.msra.mxu0 %v10363_v4  ;;  %4801 = vmatpush1.bf16.msra.mxu1 %v10366_v12  ;;  %v10411_v4 = vld [vmem:[#allocation9 + $0xe0] ss:$16 sps:$4 sm:$0xff]   ;;  %v10414_v12 = vld [vmem:[#allocation9 + $0xe8] ss:$16 sps:$4 sm:$0xff]  }
 0x95e   :  { %5471 = vmatprep.subr.bf16.mxu0 %v10371_v24  ;;  %5593 = vmatprep.subr.bf16.mxu1 %v10374_v40  ;;  %v10422_v24 = vld [vmem:[#allocation9 + $0x10c] ss:$16 sps:$4 sm:$0xff]   ;;  %v10417_v40 = vld [vmem:[#allocation9 + $0x100] ss:$16 sps:$4 sm:$0xff]  }
 0x960   :  { %4681 = vmatmul.mubr.bf16.vlgmr.msra.gmra.mrb[52].mxu0 %v3878_v34  ;;  %4803 = vmatmul.mubr.bf16.vlgmr.msra.gmra.mrb[52].mxu1 %v3878_v34  ;;  %v10437_v34 = vld [vmem:[#allocation9 + $0x164] ss:$16 sps:$4 sm:$0xff]  }
 0x961   :  { %4690 = vmatprep.mubr.bf16.mxu0 %v3922_v26  ;;  %4812 = vmatprep.mubr.bf16.mxu1 %v3922_v26  ;;  %v10443_v26 = vld [vmem:[#allocation9 + $0x184] ss:$16 sps:$4 sm:$0xff]  }
 0x962   :  { %5472 = vmatpush1.bf16.msra.mxu0 %v10369_v18  ;;  %5594 = vmatpush1.bf16.msra.mxu1 %v10372_v29  ;;  %v10434_v18 = vld [vmem:[#allocation9 + $0x14c] ss:$16 sps:$4 sm:$0xff]   ;;  %v10429_v29 = vld [vmem:[#allocation9 + $0x140] ss:$16 sps:$4 sm:$0xff]  }
 0x963   :  { %5473 = vmatprep.subr.bf16.mxu0 %v10377_v2  ;;  %5595 = vmatprep.subr.bf16.mxu1 %v10380_v60  ;;  %v10440_v2 = vld [vmem:[#allocation9 + $0x16c] ss:$16 sps:$4 sm:$0xff]   ;;  %v10435_v60 = vld [vmem:[#allocation9 + $0x160] ss:$16 sps:$4 sm:$0xff]  }
 0x966   :  { %5474 = vmatpush1.bf16.msra.mxu0 %v10375_v32  ;;  %5596 = vmatpush1.bf16.msra.mxu1 %v10378_v16  ;;  %v10446_v32 = vld [vmem:[#allocation9 + $0x18c] ss:$16 sps:$4 sm:$0xff]   ;;  %v10441_v16 = vld [vmem:[#allocation9 + $0x180] ss:$16 sps:$4 sm:$0xff]  }
 0x967   :  { %5475 = vmatprep.subr.bf16.mxu0 %v10383_v61  ;;  %5597 = vmatprep.subr.bf16.mxu1 %v10386_v19  ;;  %v10452_v61 = vld [vmem:[#allocation9 + $0x1ac] ss:$16 sps:$4 sm:$0xff]   ;;  %v10447_v19 = vld [vmem:[#allocation9 + $0x1a0] ss:$16 sps:$4 sm:$0xff]  }
 0x968   :  { %4691 = vmatmul.mubr.bf16.gmra.mrb[56].mxu0 %v3914_v57  ;;  %4813 = vmatmul.mubr.bf16.gmra.mrb[56].mxu1 %v3914_v57  ;;  %v10456_v57 = vld [vmem:[#allocation9 + $0x1c8] ss:$16 sps:$4 sm:$0xff]  }
 0x969   :  { %4700 = vmatprep.mubr.bf16.mxu0 %v3934_v11  ;;  %4822 = vmatprep.mubr.bf16.mxu1 %v3934_v11  ;;  %v10461_v11 = vld [vmem:[#allocation9 + $0x1e4] ss:$16 sps:$4 sm:$0xff]  }
 0x96a   :  { %5476 = vmatpush1.bf16.msra.mxu0 %v10381_v17  ;;  %5598 = vmatpush1.bf16.msra.mxu1 %v10384_v55  ;;  %v10458_v17 = vld [vmem:[#allocation9 + $0x1cc] ss:$16 sps:$4 sm:$0xff]   ;;  %v10453_v55 = vld [vmem:[#allocation9 + $0x1c0] ss:$16 sps:$4 sm:$0xff]  }
 0x96b   :  { %5477 = vmatprep.subr.bf16.mxu0 %v10389_v6  ;;  %5599 = vmatprep.subr.bf16.mxu1 %v10392_v33  ;;  %v10464_v6 = vld [vmem:[#allocation9 + $0x1ec] ss:$16 sps:$4 sm:$0xff]   ;;  %v10459_v33 = vld [vmem:[#allocation9 + $0x1e0] ss:$16 sps:$4 sm:$0xff]  }
 0x96e   :  { %5478 = vmatpush1.bf16.msra.mxu0 %v10387_v39  ;;  %5600 = vmatpush1.bf16.msra.mxu1 %v10390_v35  ;;  %v10462_v39 = vld [vmem:[#allocation9 + $0x1e8] ss:$16 sps:$4 sm:$0xff]   ;;  %v10467_v35 = vld [vmem:[#allocation9 + $0x204] ss:$16 sps:$4 sm:$0xff]  }
 0x96f   :  { %5479 = vmatprep.subr.bf16.mxu0 %v10395_v51  ;;  %5601 = vmatprep.subr.bf16.mxu1 %v10398_v5  ;;  %v10470_v51 = vld [vmem:[#allocation9 + $0x20c] ss:$16 sps:$4 sm:$0xff]   ;;  %v3538_v5 = vld [vmem:[#allocation3] sm:$0xff] }
 0x970   :  { %4701 = vmatmul.mubr.bf16.gmra.mrb[64].mxu0 %v3931_v45  ;;  %4823 = vmatmul.mubr.bf16.gmra.mrb[64].mxu1 %v3931_v45  ;;  %v3558_v9 = vpack.c.bf16 %v11868_v3, %v3538_v5  ;;  %v10468_v45 = vld [vmem:[#allocation9 + $0x208] ss:$16 sps:$4 sm:$0xff]   ;;  %v10542_v5 = vld [vmem:[#allocation9 + $0x38c] ss:$16 sps:$4 sm:$0xff]  }
 0x971   :  { %5503 = vmatprep.mubr.bf16.mxu0 %v3559_v50  ;;  %5625 = vmatprep.mubr.bf16.mxu1 %v3559_v50  ;;  %v10471_v50 = vld [vmem:[#allocation9 + $0x220] ss:$16 sps:$4 sm:$0xff]   ;;  %v3555_v3 = vld [vmem:[#allocation3 + $0x88] sm:$0x3] }
 0x972   :  { %5480 = vmatpush1.bf16.msra.mxu0 %v10393_v46  ;;  %5602 = vmatpush1.bf16.msra.mxu1 %v10396_v48  ;;  %v10473_v46 = vld [vmem:[#allocation9 + $0x224] ss:$16 sps:$4 sm:$0xff]   ;;  %v10476_v48 = vld [vmem:[#allocation9 + $0x22c] ss:$16 sps:$4 sm:$0xff]  }
 0x973   :  { %5481 = vmatprep.subr.bf16.mxu0 %v10401_v13  ;;  %5603 = vmatprep.subr.bf16.mxu1 %v10404_v54  ;;  %v10474_v13 = vld [vmem:[#allocation9 + $0x228] ss:$16 sps:$4 sm:$0xff]   ;;  %v10479_v54 = vld [vmem:[#allocation9 + $0x244] ss:$16 sps:$4 sm:$0xff]  }
 0x976   :  { %5482 = vmatpush1.bf16.msra.mxu0 %v10399_v62  ;;  %5604 = vmatpush1.bf16.msra.mxu1 %v10402_v47  ;;  %v10482_v62 = vld [vmem:[#allocation9 + $0x24c] ss:$16 sps:$4 sm:$0xff]   ;;  %v10477_v47 = vld [vmem:[#allocation9 + $0x240] ss:$16 sps:$4 sm:$0xff]  }
 0x977   :  { %5483 = vmatprep.subr.bf16.mxu0 %v10407_v59  ;;  %5605 = vmatprep.subr.bf16.mxu1 %v10410_v28  ;;  %v10480_v59 = vld [vmem:[#allocation9 + $0x248] ss:$16 sps:$4 sm:$0xff]   ;;  %v3567_v28 = vpack.c.bf16 %v3555_v3, %v3555_v3 }
 0x978   :  { %v10552_v3 = vld [vmem:[#allocation9 + $0x3c8] ss:$16 sps:$4 sm:$0xff]  }
 0x97a   :  { %5484 = vmatpush1.bf16.msra.mxu0 %v10405_v52  ;;  %5606 = vmatpush1.bf16.msra.mxu1 %v10408_v8  ;;  %v10485_v52 = vld [vmem:[#allocation9 + $0x264] ss:$16 sps:$4 sm:$0xff]   ;;  %v10488_v8 = vld [vmem:[#allocation9 + $0x26c] ss:$16 sps:$4 sm:$0xff]  }
 0x97b   :  { %5485 = vmatprep.subr.bf16.mxu0 %v10413_v49  ;;  %5607 = vmatprep.subr.bf16.mxu1 %v10416_v44  ;;  %v10483_v49 = vld [vmem:[#allocation9 + $0x260] ss:$16 sps:$4 sm:$0xff]   ;;  %v10486_v44 = vld [vmem:[#allocation9 + $0x268] ss:$16 sps:$4 sm:$0xff]  }
 0x97e   :  { %5486 = vmatpush1.bf16.msra.mxu0 %v10411_v4  ;;  %5608 = vmatpush1.bf16.msra.mxu1 %v10414_v12  ;;  %v10491_v4 = vld [vmem:[#allocation9 + $0x284] ss:$16 sps:$4 sm:$0xff]   ;;  %v3554_v12 = vld [vmem:[#allocation3 + $0x80] sm:$0x3] }
 0x97f   :  { %5487 = vmatprep.subr.bf16.mxu0 %v10419_v15  ;;  %5609 = vmatprep.subr.bf16.mxu1 %v10422_v24  ;;  %v10494_v15 = vld [vmem:[#allocation9 + $0x28c] ss:$16 sps:$4 sm:$0xff]  }
 0x980   :  { %v3541_v24 = vld [vmem:[#allocation3 + $0x18] sm:$0xff] }
 0x982   :  { %5488 = vmatpush1.bf16.msra.mxu0 %v10417_v40  ;;  %5610 = vmatpush1.bf16.msra.mxu1 %v10420_v41  ;;  %v10489_v40 = vld [vmem:[#allocation9 + $0x280] ss:$16 sps:$4 sm:$0xff]   ;;  %v3566_v41 = vpack.c.bf16 %v3554_v12, %v3554_v12 }
 0x983   :  { %5489 = vmatprep.subr.bf16.mxu0 %v10425_v43  ;;  %5611 = vmatprep.subr.bf16.mxu1 %v10428_v0  ;;  %v10492_v43 = vld [vmem:[#allocation9 + $0x288] ss:$16 sps:$4 sm:$0xff]   ;;  %v3561_v0 = vpack.c.bf16 %v11881_v20, %v3541_v24  ;;  %v10509_v20 = vld [vmem:[#allocation9 + $0x2e4] ss:$16 sps:$4 sm:$0xff]  }
 0x984   :  { %v10564_v24 = vld [vmem:[#allocation9 + $0x808] ss:$16 sps:$4 sm:$0xff]  }
 0x986   :  { %5490 = vmatpush1.bf16.msra.mxu0 %v10423_v36  ;;  %5612 = vmatpush1.bf16.msra.mxu1 %v10426_v37  ;;  %v10497_v36 = vld [vmem:[#allocation9 + $0x2a4] ss:$16 sps:$4 sm:$0xff]   ;;  %v10500_v37 = vld [vmem:[#allocation9 + $0x2ac] ss:$16 sps:$4 sm:$0xff]  }
 0x987   :  { %5491 = vmatprep.subr.bf16.mxu0 %v10431_v1  ;;  %5613 = vmatprep.subr.bf16.mxu1 %v10434_v18  ;;  %v10495_v1 = vld [vmem:[#allocation9 + $0x2a0] ss:$16 sps:$4 sm:$0xff]   ;;  %v10498_v18 = vld [vmem:[#allocation9 + $0x2a8] ss:$16 sps:$4 sm:$0xff]  }
 0x98a   :  { %5492 = vmatpush1.bf16.msra.mxu0 %v10429_v29  ;;  %5614 = vmatpush1.bf16.msra.mxu1 %v10432_v22  ;;  %v10503_v29 = vld [vmem:[#allocation9 + $0x2c4] ss:$16 sps:$4 sm:$0xff]   ;;  %v10506_v22 = vld [vmem:[#allocation9 + $0x2cc] ss:$16 sps:$4 sm:$0xff]  }
 0x98b   :  { %5493 = vmatprep.subr.bf16.mxu0 %v10437_v34  ;;  %5615 = vmatprep.subr.bf16.mxu1 %v10440_v2  ;;  %v10501_v34 = vld [vmem:[#allocation9 + $0x2c0] ss:$16 sps:$4 sm:$0xff]   ;;  %v10504_v2 = vld [vmem:[#allocation9 + $0x2c8] ss:$16 sps:$4 sm:$0xff]  }
 0x98e   :  { %5494 = vmatpush1.bf16.msra.mxu0 %v10435_v60  ;;  %5616 = vmatpush1.bf16.msra.mxu1 %v10438_v30  ;;  %v10512_v60 = vld [vmem:[#allocation9 + $0x2ec] ss:$16 sps:$4 sm:$0xff]   ;;  %v10507_v30 = vld [vmem:[#allocation9 + $0x2e0] ss:$16 sps:$4 sm:$0xff]  }
 0x98f   :  { %5495 = vmatprep.subr.bf16.mxu0 %v10443_v26  ;;  %5617 = vmatprep.subr.bf16.mxu1 %v10446_v32  ;;  %v10510_v26 = vld [vmem:[#allocation9 + $0x2e8] ss:$16 sps:$4 sm:$0xff]   ;;  %v10515_v32 = vld [vmem:[#allocation9 + $0x304] ss:$16 sps:$4 sm:$0xff]  }
 0x992   :  { %5496 = vmatpush1.bf16.msra.mxu0 %v10441_v16  ;;  %5618 = vmatpush1.bf16.msra.mxu1 %v10444_v27  ;;  %v10518_v16 = vld [vmem:[#allocation9 + $0x30c] ss:$16 sps:$4 sm:$0xff]   ;;  %v10513_v27 = vld [vmem:[#allocation9 + $0x300] ss:$16 sps:$4 sm:$0xff]  }
 0x993   :  { %5497 = vmatprep.subr.bf16.mxu0 %v10449_v58  ;;  %5619 = vmatprep.subr.bf16.mxu1 %v10452_v61  ;;  %v10516_v58 = vld [vmem:[#allocation9 + $0x308] ss:$16 sps:$4 sm:$0xff]   ;;  %v10521_v61 = vld [vmem:[#allocation9 + $0x324] ss:$16 sps:$4 sm:$0xff]  }
 0x996   :  { %5498 = vmatpush1.bf16.msra.mxu0 %v10447_v19  ;;  %5620 = vmatpush1.bf16.msra.mxu1 %v10450_v21  ;;  %v10524_v19 = vld [vmem:[#allocation9 + $0x32c] ss:$16 sps:$4 sm:$0xff]   ;;  %v10519_v21 = vld [vmem:[#allocation9 + $0x320] ss:$16 sps:$4 sm:$0xff]  }
 0x997   :  { %5499 = vmatprep.subr.bf16.mxu0 %v10455_v23  ;;  %5621 = vmatprep.subr.bf16.mxu1 %v10458_v17  ;;  %v10522_v23 = vld [vmem:[#allocation9 + $0x328] ss:$16 sps:$4 sm:$0xff]   ;;  %v10527_v17 = vld [vmem:[#allocation9 + $0x344] ss:$16 sps:$4 sm:$0xff]  }
 0x99a   :  { %5500 = vmatpush1.bf16.msra.mxu0 %v10453_v55  ;;  %5622 = vmatpush1.bf16.msra.mxu1 %v10456_v57  ;;  %v10530_v55 = vld [vmem:[#allocation9 + $0x34c] ss:$16 sps:$4 sm:$0xff]   ;;  %v10525_v57 = vld [vmem:[#allocation9 + $0x340] ss:$16 sps:$4 sm:$0xff]  }
 0x99b   :  { %5501 = vmatprep.subr.bf16.mxu0 %v10461_v11  ;;  %5623 = vmatprep.subr.bf16.mxu1 %v10464_v6  ;;  %v10528_v11 = vld [vmem:[#allocation9 + $0x348] ss:$16 sps:$4 sm:$0xff]   ;;  %v10533_v6 = vld [vmem:[#allocation9 + $0x364] ss:$16 sps:$4 sm:$0xff]  }
 0x99e   :  { %5502 = vmatpush1.bf16.msra.mxu0 %v10459_v33  ;;  %5624 = vmatpush1.bf16.msra.mxu1 %v10462_v39  ;;  %v10536_v33 = vld [vmem:[#allocation9 + $0x36c] ss:$16 sps:$4 sm:$0xff]   ;;  %v10531_v39 = vld [vmem:[#allocation9 + $0x360] ss:$16 sps:$4 sm:$0xff]  }
 0x99f   :  { %5532 = vmatprep.subr.bf16.mxu0 %v10467_v35  ;;  %5654 = vmatprep.subr.bf16.mxu1 %v10470_v51  ;;  %v10534_v35 = vld [vmem:[#allocation9 + $0x368] ss:$16 sps:$4 sm:$0xff]   ;;  %v10539_v51 = vld [vmem:[#allocation9 + $0x384] ss:$16 sps:$4 sm:$0xff]  }
 0x9a1   :  { %5504 = vmatmul.mubr.bf16.vlgmr.msra.gmra.mrb[52].mxu0 %v3558_v9  ;;  %5626 = vmatmul.mubr.bf16.vlgmr.msra.gmra.mrb[52].mxu1 %v3558_v9  ;;  %v10540_v9 = vld [vmem:[#allocation9 + $0x388] ss:$16 sps:$4 sm:$0xff]  }
 0x9a2   :  { %5513 = vmatprep.mubr.bf16.mxu0 %v11922_v10  ;;  %5533 = vmatpush1.bf16.msra.mxu0 %v10465_v14  ;;  %v10537_v14 = vld [vmem:[#allocation9 + $0x380] ss:$16 sps:$4 sm:$0xff]  }
 0x9a3   :  { %5635 = vmatprep.mubr.bf16.mxu1 %v11922_v10  ;;  %5655 = vmatpush1.bf16.msra.mxu1 %v10468_v45  ;;  %v10545_v45 = vld [vmem:[#allocation9 + $0x3a4] ss:$16 sps:$4 sm:$0xff]  }
 0x9a4   :  { %5534 = vmatprep.subr.bf16.mxu0 %v10473_v46  ;;  %5656 = vmatprep.subr.bf16.mxu1 %v10476_v48  ;;  %v10548_v46 = vld [vmem:[#allocation9 + $0x3ac] ss:$16 sps:$4 sm:$0xff]   ;;  %v10543_v48 = vld [vmem:[#allocation9 + $0x3a0] ss:$16 sps:$4 sm:$0xff]  }
 0x9a6   :  { %5535 = vmatpush1.bf16.msra.mxu0 %v10471_v50  ;;  %v10546_v50 = vld [vmem:[#allocation9 + $0x3a8] ss:$16 sps:$4 sm:$0xff]  }
 0x9a7   :  { %5657 = vmatpush1.bf16.msra.mxu1 %v10474_v13  ;;  %5536 = vmatprep.subr.bf16.mxu0 %v10479_v54  ;;  %v10551_v13 = vld [vmem:[#allocation9 + $0x3c4] ss:$16 sps:$4 sm:$0xff]   ;;  %v10554_v54 = vld [vmem:[#allocation9 + $0x3cc] ss:$16 sps:$4 sm:$0xff]  }
 0x9a8   :  { %5658 = vmatprep.subr.bf16.mxu1 %v10482_v62  ;;  %v10549_v62 = vld [vmem:[#allocation9 + $0x3c0] ss:$16 sps:$4 sm:$0xff]  }
 0x9a9   :  { %5514 = vmatmul.mubr.bf16.gmra.mrb[56].mxu0 %v11920_v38  ;;  %5636 = vmatmul.mubr.bf16.gmra.mrb[56].mxu1 %v11920_v38 }
 0x9aa   :  { %5523 = vmatprep.mubr.bf16.mxu0 %v3567_v28  ;;  %5537 = vmatpush1.bf16.msra.mxu0 %v10477_v47  ;;  %v10557_v47 = vld [vmem:[#allocation9 + $0x3e4] ss:$16 sps:$4 sm:$0xff]  }
 0x9ab   :  { %5645 = vmatprep.mubr.bf16.mxu1 %v3567_v28  ;;  %5659 = vmatpush1.bf16.msra.mxu1 %v10480_v59  ;;  %v10560_v59 = vld [vmem:[#allocation9 + $0x3ec] ss:$16 sps:$4 sm:$0xff]   ;;  %v10555_v28 = vld [vmem:[#allocation9 + $0x3e0] ss:$16 sps:$4 sm:$0xff]  }
 0x9ac   :  { %5538 = vmatprep.subr.bf16.mxu0 %v10485_v52  ;;  %5660 = vmatprep.subr.bf16.mxu1 %v10488_v8  ;;  %v10558_v52 = vld [vmem:[#allocation9 + $0x3e8] ss:$16 sps:$4 sm:$0xff]   ;;  %v10563_v8 = vld [vmem:[#allocation9 + $0x804] ss:$16 sps:$4 sm:$0xff]  }
 0x9ae   :  { %5539 = vmatpush1.bf16.msra.mxu0 %v10483_v49  ;;  %v3540_v49 = vld [vmem:[#allocation3 + $0x10] sm:$0xff] }
 0x9af   :  { %5661 = vmatpush1.bf16.msra.mxu1 %v10486_v44  ;;  %5540 = vmatprep.subr.bf16.mxu0 %v10491_v4  ;;  %v10566_v44 = vld [vmem:[#allocation9 + $0x80c] ss:$16 sps:$4 sm:$0xff]   ;;  %v11968_v4 = vld [vmem:[#allocation3 + $0x30] sm:$0xff] }
 0x9b0   :  { %5662 = vmatprep.subr.bf16.mxu1 %v10494_v15  ;;  %v3560_v12 = vpack.c.bf16 %v11968_v4, %v3540_v49  ;;  %v10561_v15 = vld [vmem:[#allocation9 + $0x800] ss:$16 sps:$4 sm:$0xff]  }
 0x9b1   :  { %5524 = vmatmul.mubr.bf16.gmra.mrb[68].mxu0 %v3566_v41  ;;  %5646 = vmatmul.mubr.bf16.gmra.mrb[68].mxu1 %v3566_v41  ;;  %v10572_v41 = vld [vmem:[#allocation9 + $0x82c] ss:$16 sps:$4 sm:$0xff]  }
 0x9b2   :  { %5541 = vmatpush1.bf16.msra.mxu0 %v10489_v40  ;;  %5564 = vmatprep.mubr.bf16.mxu0 %v3561_v0  ;;  %v10569_v40 = vld [vmem:[#allocation9 + $0x824] ss:$16 sps:$4 sm:$0xff]  }
 0x9b3   :  { %5663 = vmatpush1.bf16.msra.mxu1 %v10492_v43  ;;  %5686 = vmatprep.mubr.bf16.mxu1 %v3561_v0  ;;  %v10567_v43 = vld [vmem:[#allocation9 + $0x820] ss:$16 sps:$4 sm:$0xff]   ;;  %v10570_v0 = vld [vmem:[#allocation9 + $0x828] ss:$16 sps:$4 sm:$0xff]  }
 0x9b4   :  { %5542 = vmatprep.subr.bf16.mxu0 %v10497_v36  ;;  %5664 = vmatprep.subr.bf16.mxu1 %v10500_v37  ;;  %v10575_v36 = vld [vmem:[#allocation9 + $0x844] ss:$16 sps:$4 sm:$0xff]   ;;  %v10578_v37 = vld [vmem:[#allocation9 + $0x84c] ss:$16 sps:$4 sm:$0xff]  }
 0x9b6   :  { %5543 = vmatpush1.bf16.msra.mxu0 %v10495_v1  ;;  %v3557_v1 = vld [vmem:[#allocation3 + $0x98] sm:$0x3] }
 0x9b7   :  { %5665 = vmatpush1.bf16.msra.mxu1 %v10498_v18  ;;  %5544 = vmatprep.subr.bf16.mxu0 %v10503_v29  ;;  %v10573_v18 = vld [vmem:[#allocation9 + $0x840] ss:$16 sps:$4 sm:$0xff]   ;;  %v10576_v29 = vld [vmem:[#allocation9 + $0x848] ss:$16 sps:$4 sm:$0xff]  }
 0x9b8   :  { %5666 = vmatprep.subr.bf16.mxu1 %v10506_v22  ;;  %v3569_v22 = vpack.c.bf16 %v3557_v1, %v3557_v1  ;;  %v10627_v1 = vld [vmem:[#allocation9 + $0x960] ss:$16 sps:$4 sm:$0xff]  }
 0x9ba   :  { %5545 = vmatpush1.bf16.msra.mxu0 %v10501_v34  ;;  %v10581_v34 = vld [vmem:[#allocation9 + $0x864] ss:$16 sps:$4 sm:$0xff]  }
 0x9bb   :  { %5667 = vmatpush1.bf16.msra.mxu1 %v10504_v2  ;;  %5546 = vmatprep.subr.bf16.mxu0 %v10509_v20  ;;  %v5716_v2 = vld [vmem:[#allocation3 + $0x8] sm:$0xfc] }
 0x9bc   :  { %5668 = vmatprep.subr.bf16.mxu1 %v10512_v60  ;;  %v10584_v20 = vld [vmem:[#allocation9 + $0x86c] ss:$16 sps:$4 sm:$0xff]   ;;  %v10579_v60 = vld [vmem:[#allocation9 + $0x860] ss:$16 sps:$4 sm:$0xff]  }
 0x9be   :  { %5547 = vmatpush1.bf16.msra.mxu0 %v10507_v30  ;;  %v10761_v30 = vld [vmem:[#allocation3 + $0x28] sm:$0xff] }
 0x9bf   :  { %5669 = vmatpush1.bf16.msra.mxu1 %v10510_v26  ;;  %5548 = vmatprep.subr.bf16.mxu0 %v10515_v32  ;;  %v5724_v26 = vpack.c.bf16 %v10761_v30, %v5716_v2  ;;  %v10582_v32 = vld [vmem:[#allocation9 + $0x868] ss:$16 sps:$4 sm:$0xff]   ;;  %v10639_v30 = vld [vmem:[#allocation9 + $0x9a0] ss:$16 sps:$4 sm:$0xff]  }
 0x9c0   :  { %5670 = vmatprep.subr.bf16.mxu1 %v10518_v16  ;;  %v3556_v16 = vld [vmem:[#allocation3 + $0x90] sm:$0x3]  ;;  %v10636_v2 = vld [vmem:[#allocation9 + $0x988] ss:$16 sps:$4 sm:$0xff]  }
 0x9c2   :  { %5549 = vmatpush1.bf16.msra.mxu0 %v10513_v27  ;;  %v10587_v27 = vld [vmem:[#allocation9 + $0x884] ss:$16 sps:$4 sm:$0xff]  }
 0x9c3   :  { %5671 = vmatpush1.bf16.msra.mxu1 %v10516_v58  ;;  %5550 = vmatprep.subr.bf16.mxu0 %v10521_v61  ;;  %v10590_v58 = vld [vmem:[#allocation9 + $0x88c] ss:$16 sps:$4 sm:$0xff]   ;;  %v5876_v61 = vrot.slane %v11922_v10, 1 }
 0x9c4   :  { %5672 = vmatprep.subr.bf16.mxu1 %v10524_v19  ;;  %v3568_v19 = vpack.c.bf16 %v3556_v16, %v3556_v16  ;;  %v10650_v16 = vld [vmem:[#allocation9 + $0x9cc] ss:$16 sps:$4 sm:$0xff]  }
 0x9c6   :  { %5551 = vmatpush1.bf16.msra.mxu0 %v10519_v21  ;;  %v10585_v21 = vld [vmem:[#allocation9 + $0x880] ss:$16 sps:$4 sm:$0xff]  }
 0x9c7   :  { %5673 = vmatpush1.bf16.msra.mxu1 %v10522_v23  ;;  %5552 = vmatprep.subr.bf16.mxu0 %v10527_v17  ;;  %v5875_v23 = vrot.slane %v5724_v26, 1  ;;  %v10588_v17 = vld [vmem:[#allocation9 + $0x888] ss:$16 sps:$4 sm:$0xff]  }
 0x9c8   :  { %5674 = vmatprep.subr.bf16.mxu1 %v10530_v55  ;;  %v10593_v55 = vld [vmem:[#allocation9 + $0x8a4] ss:$16 sps:$4 sm:$0xff]   ;;  %v10642_v26 = vld [vmem:[#allocation9 + $0x9a8] ss:$16 sps:$4 sm:$0xff]  }
 0x9ca   :  { %5553 = vmatpush1.bf16.msra.mxu0 %v10525_v57  ;;  %v5877_v57 = vsel %vm1345_vm4, %v5875_v23, %v5876_v61  ;;  %v5715_v23 = vld [vmem:[#allocation3] sm:$0xfc] }
 0x9cb   :  { %5675 = vmatpush1.bf16.msra.mxu1 %v10528_v11  ;;  %5554 = vmatprep.subr.bf16.mxu0 %v10533_v6  ;;  %v10596_v11 = vld [vmem:[#allocation9 + $0x8ac] ss:$16 sps:$4 sm:$0xff]   ;;  %v10591_v6 = vld [vmem:[#allocation9 + $0x8a0] ss:$16 sps:$4 sm:$0xff]  }
 0x9cc   :  { %5676 = vmatprep.subr.bf16.mxu1 %v10536_v33  ;;  %v10594_v33 = vld [vmem:[#allocation9 + $0x8a8] ss:$16 sps:$4 sm:$0xff]  }
 0x9ce   :  { %5555 = vmatpush1.bf16.msra.mxu0 %v10531_v39  ;;  %v10599_v39 = vld [vmem:[#allocation9 + $0x8c4] ss:$16 sps:$4 sm:$0xff]  }
 0x9cf   :  { %5677 = vmatpush1.bf16.msra.mxu1 %v10534_v35  ;;  %5556 = vmatprep.subr.bf16.mxu0 %v10539_v51  ;;  %v10602_v35 = vld [vmem:[#allocation9 + $0x8cc] ss:$16 sps:$4 sm:$0xff]   ;;  %v10597_v51 = vld [vmem:[#allocation9 + $0x8c0] ss:$16 sps:$4 sm:$0xff]  }
 0x9d0   :  { %5678 = vmatprep.subr.bf16.mxu1 %v10542_v5  ;;  %v10600_v5 = vld [vmem:[#allocation9 + $0x8c8] ss:$16 sps:$4 sm:$0xff]  }
 0x9d2   :  { %5557 = vmatpush1.bf16.msra.mxu0 %v10537_v14  ;;  %v10605_v14 = vld [vmem:[#allocation9 + $0x8e4] ss:$16 sps:$4 sm:$0xff]  }
 0x9d3   :  { %5679 = vmatpush1.bf16.msra.mxu1 %v10540_v9  ;;  %5558 = vmatprep.subr.bf16.mxu0 %v10545_v45  ;;  %v10608_v9 = vld [vmem:[#allocation9 + $0x8ec] ss:$16 sps:$4 sm:$0xff]   ;;  %v10603_v45 = vld [vmem:[#allocation9 + $0x8e0] ss:$16 sps:$4 sm:$0xff]  }
 0x9d4   :  { %5680 = vmatprep.subr.bf16.mxu1 %v10548_v46  ;;  %v10606_v46 = vld [vmem:[#allocation9 + $0x8e8] ss:$16 sps:$4 sm:$0xff]  }
 0x9d6   :  { %5559 = vmatpush1.bf16.msra.mxu0 %v10543_v48  ;;  %v10611_v48 = vld [vmem:[#allocation9 + $0x904] ss:$16 sps:$4 sm:$0xff]  }
 0x9d7   :  { %5681 = vmatpush1.bf16.msra.mxu1 %v10546_v50  ;;  %5560 = vmatprep.subr.bf16.mxu0 %v10551_v13  ;;  %v10614_v50 = vld [vmem:[#allocation9 + $0x90c] ss:$16 sps:$4 sm:$0xff]   ;;  %v10609_v13 = vld [vmem:[#allocation9 + $0x900] ss:$16 sps:$4 sm:$0xff]  }
 0x9d8   :  { %5682 = vmatprep.subr.bf16.mxu1 %v10554_v54  ;;  %v10612_v54 = vld [vmem:[#allocation9 + $0x908] ss:$16 sps:$4 sm:$0xff]  }
 0x9da   :  { %5561 = vmatpush1.bf16.msra.mxu0 %v10549_v62  ;;  %v10617_v62 = vld [vmem:[#allocation9 + $0x924] ss:$16 sps:$4 sm:$0xff]  }
 0x9db   :  { %5683 = vmatpush1.bf16.msra.mxu1 %v10552_v3  ;;  %5562 = vmatprep.subr.bf16.mxu0 %v10557_v47  ;;  %v10620_v3 = vld [vmem:[#allocation9 + $0x92c] ss:$16 sps:$4 sm:$0xff]  }
 0x9dc   :  { %5684 = vmatprep.subr.bf16.mxu1 %v10560_v59 }
 0x9de   :  { %5563 = vmatpush1.bf16.msra.mxu0 %v10555_v28  ;;  %v10615_v28 = vld [vmem:[#allocation9 + $0x920] ss:$16 sps:$4 sm:$0xff]  }
 0x9df   :  { %5685 = vmatpush1.bf16.msra.mxu1 %v10558_v52  ;;  %6544 = vmatprep.subr.bf16.mxu0 %v10563_v8  ;;  %v10618_v52 = vld [vmem:[#allocation9 + $0x928] ss:$16 sps:$4 sm:$0xff]  }
 0x9e0   :  { %6666 = vmatprep.subr.bf16.mxu1 %v10566_v44  ;;  %v10623_v44 = vld [vmem:[#allocation9 + $0x944] ss:$16 sps:$4 sm:$0xff]  }
 0x9e1   :  { %5565 = vmatmul.mubr.bf16.vlgmr.msra.gmra.mrb[52].mxu0 %v3560_v12 }
 0x9e2   :  { %5687 = vmatmul.mubr.bf16.vlgmr.msra.gmra.mrb[52].mxu1 %v3560_v12  ;;  %5574 = vmatprep.mubr.bf16.mxu0 %v11937_v53 }
 0x9e3   :  { %5696 = vmatprep.mubr.bf16.mxu1 %v11937_v53  ;;  %6545 = vmatpush1.bf16.msra.mxu0 %v10561_v15 }
 0x9e4   :  { %6667 = vmatpush1.bf16.msra.mxu1 %v10564_v24  ;;  %6546 = vmatprep.subr.bf16.mxu0 %v10569_v40  ;;  %v10626_v24 = vld [vmem:[#allocation9 + $0x94c] ss:$16 sps:$4 sm:$0xff]  }
 0x9e5   :  { %6668 = vmatprep.subr.bf16.mxu1 %v10572_v41 }
 0x9e7   :  { %6547 = vmatpush1.bf16.msra.mxu0 %v10567_v43  ;;  %v10621_v43 = vld [vmem:[#allocation9 + $0x940] ss:$16 sps:$4 sm:$0xff]  }
 0x9e8   :  { %6669 = vmatpush1.bf16.msra.mxu1 %v10570_v0  ;;  %6548 = vmatprep.subr.bf16.mxu0 %v10575_v36  ;;  %v10624_v0 = vld [vmem:[#allocation9 + $0x948] ss:$16 sps:$4 sm:$0xff]   ;;  %v10629_v36 = vld [vmem:[#allocation9 + $0x964] ss:$16 sps:$4 sm:$0xff]  }
 0x9e9   :  { %5575 = vmatmul.mubr.bf16.gmra.mrb[56].mxu0 %v11948_v63  ;;  %6670 = vmatprep.subr.bf16.mxu1 %v10578_v37  ;;  %v10632_v37 = vld [vmem:[#allocation9 + $0x96c] ss:$16 sps:$4 sm:$0xff]  }
 0x9ea   :  { %5697 = vmatmul.mubr.bf16.gmra.mrb[56].mxu1 %v11948_v63  ;;  %5584 = vmatprep.mubr.bf16.mxu0 %v3569_v22 }
 0x9eb   :  { %5706 = vmatprep.mubr.bf16.mxu1 %v3569_v22  ;;  %6549 = vmatpush1.bf16.msra.mxu0 %v10573_v18  ;;  %v10630_v18 = vld [vmem:[#allocation9 + $0x968] ss:$16 sps:$4 sm:$0xff]   ;;  %v10638_v22 = vld [vmem:[#allocation9 + $0x98c] ss:$16 sps:$4 sm:$0xff]  }
 0x9ec   :  { %6671 = vmatpush1.bf16.msra.mxu1 %v10576_v29  ;;  %6550 = vmatprep.subr.bf16.mxu0 %v10581_v34  ;;  %v10635_v29 = vld [vmem:[#allocation9 + $0x984] ss:$16 sps:$4 sm:$0xff]   ;;  %v10633_v34 = vld [vmem:[#allocation9 + $0x980] ss:$16 sps:$4 sm:$0xff]  }
 0x9ed   :  { %6672 = vmatprep.subr.bf16.mxu1 %v10584_v20  ;;  %v10641_v20 = vld [vmem:[#allocation9 + $0x9a4] ss:$16 sps:$4 sm:$0xff]  }
 0x9ef   :  { %6551 = vmatpush1.bf16.msra.mxu0 %v10579_v60  ;;  %v10644_v60 = vld [vmem:[#allocation9 + $0x9ac] ss:$16 sps:$4 sm:$0xff]  }
 0x9f0   :  { %6673 = vmatpush1.bf16.msra.mxu1 %v10582_v32  ;;  %6552 = vmatprep.subr.bf16.mxu0 %v10587_v27  ;;  %v10647_v32 = vld [vmem:[#allocation9 + $0x9c4] ss:$16 sps:$4 sm:$0xff]   ;;  %v10645_v27 = vld [vmem:[#allocation9 + $0x9c0] ss:$16 sps:$4 sm:$0xff]  }
 0x9f1   :  { %5585 = vmatmul.mubr.bf16.gmra.mrb[72].mxu0 %v3568_v19  ;;  %6674 = vmatprep.subr.bf16.mxu1 %v10590_v58  ;;  %v5720_v58 = vld [vmem:[#allocation3 + $0x88] sm:$0xf] }
 0x9f2   :  { %5707 = vmatmul.mubr.bf16.gmra.mrb[72].mxu1 %v3568_v19  ;;  %6576 = vmatprep.mubr.bf16.mxu0 %v5877_v57  ;;  %v10648_v19 = vld [vmem:[#allocation9 + $0x9c8] ss:$16 sps:$4 sm:$0xff]  }
 0x9f3   :  { %6553 = vmatpush1.bf16.msra.mxu0 %v10585_v21  ;;  %6698 = vmatprep.mubr.bf16.mxu1 %v5877_v57  ;;  %v10653_v21 = vld [vmem:[#allocation9 + $0x9e4] ss:$16 sps:$4 sm:$0xff]   ;;  %v10651_v57 = vld [vmem:[#allocation9 + $0x9e0] ss:$16 sps:$4 sm:$0xff]  }
 0x9f4   :  { %6675 = vmatpush1.bf16.msra.mxu1 %v10588_v17  ;;  %6554 = vmatprep.subr.bf16.mxu0 %v10593_v55  ;;  %v10656_v17 = vld [vmem:[#allocation9 + $0x9ec] ss:$16 sps:$4 sm:$0xff]   ;;  %v5728_v55 = vpack.c.bf16 %v5720_v58, %v5720_v58  ;;  %v10696_v58 = vld [vmem:[#allocation9 + $0xac8] ss:$16 sps:$4 sm:$0xff]  }
 0x9f5   :  { %6676 = vmatprep.subr.bf16.mxu1 %v10596_v11  ;;  %v10762_v11 = vld [vmem:[#allocation3 + $0x20] sm:$0xff] }
 0x9f7   :  { %6555 = vmatpush1.bf16.msra.mxu0 %v10591_v6  ;;  %v5723_v6 = vpack.c.bf16 %v10762_v11, %v5715_v23  ;;  %v10699_v23 = vld [vmem:[#allocation9 + $0xae0] ss:$16 sps:$4 sm:$0xff]  }
 0x9f8   :  { %6677 = vmatpush1.bf16.msra.mxu1 %v10594_v33  ;;  %6556 = vmatprep.subr.bf16.mxu0 %v10599_v39  ;;  %v10654_v33 = vld [vmem:[#allocation9 + $0x9e8] ss:$16 sps:$4 sm:$0xff]   ;;  %v10659_v39 = vld [vmem:[#allocation9 + $0xa04] ss:$16 sps:$4 sm:$0xff]   ;;  %v10705_v11 = vld [vmem:[#allocation9 + $0xb00] ss:$16 sps:$4 sm:$0xff]  }
 0x9f9   :  { %6678 = vmatprep.subr.bf16.mxu1 %v10602_v35  ;;  %v5873_v35 = vrot.slane %v11920_v38, 1  ;;  %v10668_v38 = vld [vmem:[#allocation9 + $0xa2c] ss:$16 sps:$4 sm:$0xff]  }
 0x9fb   :  { %6557 = vmatpush1.bf16.msra.mxu0 %v10597_v51  ;;  %v10662_v51 = vld [vmem:[#allocation9 + $0xa0c] ss:$16 sps:$4 sm:$0xff]  }
 0x9fc   :  { %6679 = vmatpush1.bf16.msra.mxu1 %v10600_v5  ;;  %6558 = vmatprep.subr.bf16.mxu0 %v10605_v14  ;;  %v5886_v5 = vrot.slane %v5728_v55, 1  ;;  %v5719_v14 = vld [vmem:[#allocation3 + $0x80] sm:$0xf]  ;;  %v10707_v55 = vld [vmem:[#allocation9 + $0xb04] ss:$16 sps:$4 sm:$0xff]  }
 0x9fd   :  { %6680 = vmatprep.subr.bf16.mxu1 %v10608_v9  ;;  %v5872_v9 = vrot.slane %v5723_v6, 1  ;;  %v10708_v6 = vld [vmem:[#allocation9 + $0xb08] ss:$16 sps:$4 sm:$0xff]  }
 0x9ff   :  { %6559 = vmatpush1.bf16.msra.mxu0 %v10603_v45  ;;  %v10657_v45 = vld [vmem:[#allocation9 + $0xa00] ss:$16 sps:$4 sm:$0xff]  }
 0xa00   :  { %6681 = vmatpush1.bf16.msra.mxu1 %v10606_v46  ;;  %6560 = vmatprep.subr.bf16.mxu0 %v10611_v48  ;;  %v5874_v46 = vsel %vm1345_vm4, %v5872_v9, %v5873_v35  ;;  %v10660_v48 = vld [vmem:[#allocation9 + $0xa08] ss:$16 sps:$4 sm:$0xff]  }
 0xa01   :  { %6682 = vmatprep.subr.bf16.mxu1 %v10614_v50  ;;  %v10665_v50 = vld [vmem:[#allocation9 + $0xa24] ss:$16 sps:$4 sm:$0xff]  }
 0xa03   :  { %6561 = vmatpush1.bf16.msra.mxu0 %v10609_v13  ;;  %v11979_v47 = vpop.f32.mrb[60].mxu0  ;;  %v11981_v59 = vpop.f32.mrb[60].mxu1  ;;  %v5727_v13 = vpack.c.bf16 %v5719_v14, %v5719_v14 }
 0xa04   :  { %6683 = vmatpush1.bf16.msra.mxu1 %v10612_v54  ;;  %6562 = vmatprep.subr.bf16.mxu0 %v10617_v62  ;;  %v11983_v8 = vpop.f32.mrb[61].mxu0  ;;  %v11985_v49 = vpop.f32.mrb[61].mxu1  ;;  %v5887_v54 = vsel %vm1345_vm4, %v5876_v61, %v5886_v5  ;;  %v10663_v62 = vld [vmem:[#allocation9 + $0xa20] ss:$16 sps:$4 sm:$0xff]   ;;  %v10672_v61 = vld [vmem:[#allocation9 + $0xa48] ss:$16 sps:$4 sm:$0xff]  }
 0xa05   :  { %6684 = vmatprep.subr.bf16.mxu1 %v10620_v3  ;;  %v4645_v12 = vpop.f32.mrb[62].mxu0  ;;  %v4767_v15 = vpop.f32.mrb[62].mxu1  ;;  %v10666_v3 = vld [vmem:[#allocation9 + $0xa28] ss:$16 sps:$4 sm:$0xff]  }
 0xa06   :  { %v4646_v40 = vpop.f32.mrb[63].mxu0  ;;  %v4768_v41 = vpop.f32.mrb[63].mxu1  ;;  %v10669_v12 = vld [vmem:[#allocation9 + $0xa40] ss:$16 sps:$4 sm:$0xff]   ;;  %v10677_v15 = vld [vmem:[#allocation9 + $0xa64] ss:$16 sps:$4 sm:$0xff]  }
 0xa07   :  { %6563 = vmatpush1.bf16.msra.mxu0 %v10615_v28  ;;  %v5884_v28 = vrot.slane %v5727_v13, 1  ;;  %v10680_v40 = vld [vmem:[#allocation9 + $0xa6c] ss:$16 sps:$4 sm:$0xff]   ;;  %v10675_v41 = vld [vmem:[#allocation9 + $0xa60] ss:$16 sps:$4 sm:$0xff]  }
 0xa08   :  { %6685 = vmatpush1.bf16.msra.mxu1 %v10618_v52  ;;  %6564 = vmatprep.subr.bf16.mxu0 %v10623_v44  ;;  %v10671_v52 = vld [vmem:[#allocation9 + $0xa44] ss:$16 sps:$4 sm:$0xff]   ;;  %v10674_v44 = vld [vmem:[#allocation9 + $0xa4c] ss:$16 sps:$4 sm:$0xff]   ;;  %v10714_v13 = vld [vmem:[#allocation9 + $0xb28] ss:$16 sps:$4 sm:$0xff]  }
 0xa09   :  { %6686 = vmatprep.subr.bf16.mxu1 %v10626_v24  ;;  %v5885_v10 = vsel %vm1345_vm4, %v5873_v35, %v5884_v28  ;;  %v5718_v24 = vld [vmem:[#allocation3 + $0x18] sm:$0xfc] }
 0xa0b   :  { %6565 = vmatpush1.bf16.msra.mxu0 %v10621_v43  ;;  %v10763_v43 = vld [vmem:[#allocation3 + $0x38] sm:$0xff] }
 0xa0c   :  { %6687 = vmatpush1.bf16.msra.mxu1 %v10624_v0  ;;  %6566 = vmatprep.subr.bf16.mxu0 %v10629_v36  ;;  %v5726_v0 = vpack.c.bf16 %v10763_v43, %v5718_v24  ;;  %v10678_v36 = vld [vmem:[#allocation9 + $0xa68] ss:$16 sps:$4 sm:$0xff]   ;;  %v10735_v43 = vld [vmem:[#allocation9 + $0xba0] ss:$16 sps:$4 sm:$0xff]  }
 0xa0d   :  { %6688 = vmatprep.subr.bf16.mxu1 %v10632_v37  ;;  %v10683_v37 = vld [vmem:[#allocation9 + $0xa84] ss:$16 sps:$4 sm:$0xff]   ;;  %v10732_v24 = vld [vmem:[#allocation9 + $0xb88] ss:$16 sps:$4 sm:$0xff]  }
 0xa0f   :  { %6567 = vmatpush1.bf16.msra.mxu0 %v10627_v1  ;;  %v10686_v1 = vld [vmem:[#allocation9 + $0xa8c] ss:$16 sps:$4 sm:$0xff]  }
 0xa10   :  { %6689 = vmatpush1.bf16.msra.mxu1 %v10630_v18  ;;  %6568 = vmatprep.subr.bf16.mxu0 %v10635_v29  ;;  %v5882_v18 = vrot.slane %v11937_v53, 1  ;;  %v10681_v29 = vld [vmem:[#allocation9 + $0xa80] ss:$16 sps:$4 sm:$0xff]  }
 0xa11   :  { %6690 = vmatprep.subr.bf16.mxu1 %v10638_v22  ;;  %v5881_v22 = vrot.slane %v5726_v0, 1  ;;  %v10738_v0 = vld [vmem:[#allocation9 + $0xba8] ss:$16 sps:$4 sm:$0xff]  }
 0xa13   :  { %6569 = vmatpush1.bf16.msra.mxu0 %v10633_v34  ;;  %v10684_v34 = vld [vmem:[#allocation9 + $0xa88] ss:$16 sps:$4 sm:$0xff]  }
 0xa14   :  { %6691 = vmatpush1.bf16.msra.mxu1 %v10636_v2  ;;  %6570 = vmatprep.subr.bf16.mxu0 %v10641_v20  ;;  %v10689_v2 = vld [vmem:[#allocation9 + $0xaa4] ss:$16 sps:$4 sm:$0xff]   ;;  %v5883_v20 = vsel %vm1345_vm4, %v5881_v22, %v5882_v18  ;;  %v10744_v22 = vld [vmem:[#allocation9 + $0xbc8] ss:$16 sps:$4 sm:$0xff]  }
 0xa15   :  { %6692 = vmatprep.subr.bf16.mxu1 %v10644_v60  ;;  %v10692_v60 = vld [vmem:[#allocation9 + $0xaac] ss:$16 sps:$4 sm:$0xff]  }
 0xa17   :  { %6571 = vmatpush1.bf16.msra.mxu0 %v10639_v30  ;;  %v10687_v30 = vld [vmem:[#allocation9 + $0xaa0] ss:$16 sps:$4 sm:$0xff]  }
 0xa18   :  { %6693 = vmatpush1.bf16.msra.mxu1 %v10642_v26  ;;  %6572 = vmatprep.subr.bf16.mxu0 %v10647_v32  ;;  %v10690_v26 = vld [vmem:[#allocation9 + $0xaa8] ss:$16 sps:$4 sm:$0xff]   ;;  %v10695_v32 = vld [vmem:[#allocation9 + $0xac4] ss:$16 sps:$4 sm:$0xff]  }
 0xa19   :  { %6694 = vmatprep.subr.bf16.mxu1 %v10650_v16  ;;  %v10698_v16 = vld [vmem:[#allocation9 + $0xacc] ss:$16 sps:$4 sm:$0xff]  }
 0xa1b   :  { %6573 = vmatpush1.bf16.msra.mxu0 %v10645_v27  ;;  %v10693_v27 = vld [vmem:[#allocation9 + $0xac0] ss:$16 sps:$4 sm:$0xff]  }
 0xa1c   :  { %6695 = vmatpush1.bf16.msra.mxu1 %v10648_v19  ;;  %6574 = vmatprep.subr.bf16.mxu0 %v10653_v21  ;;  %v10701_v19 = vld [vmem:[#allocation9 + $0xae4] ss:$16 sps:$4 sm:$0xff]   ;;  %v10704_v21 = vld [vmem:[#allocation9 + $0xaec] ss:$16 sps:$4 sm:$0xff]  }
 0xa1d   :  { %6696 = vmatprep.subr.bf16.mxu1 %v10656_v17  ;;  %v10702_v17 = vld [vmem:[#allocation9 + $0xae8] ss:$16 sps:$4 sm:$0xff]  }
 0xa1f   :  { %6575 = vmatpush1.bf16.msra.mxu0 %v10651_v57  ;;  %v10710_v57 = vld [vmem:[#allocation9 + $0xb0c] ss:$16 sps:$4 sm:$0xff]  }
 0xa20   :  { %6697 = vmatpush1.bf16.msra.mxu1 %v10654_v33  ;;  %6605 = vmatprep.subr.bf16.mxu0 %v10659_v39  ;;  %v10713_v33 = vld [vmem:[#allocation9 + $0xb24] ss:$16 sps:$4 sm:$0xff]   ;;  %v10716_v39 = vld [vmem:[#allocation9 + $0xb2c] ss:$16 sps:$4 sm:$0xff]  }
 0xa21   :  { %6727 = vmatprep.subr.bf16.mxu1 %v10662_v51 }
 0xa22   :  { %6577 = vmatmul.mubr.bf16.vlgmr.msra.gmra.mrb[52].mxu0 %v5874_v46 }
 0xa23   :  { %6699 = vmatmul.mubr.bf16.vlgmr.msra.gmra.mrb[52].mxu1 %v5874_v46  ;;  %6586 = vmatprep.mubr.bf16.mxu0 %v5887_v54  ;;  %v10711_v46 = vld [vmem:[#allocation9 + $0xb20] ss:$16 sps:$4 sm:$0xff]  }
 0xa24   :  { %6606 = vmatpush1.bf16.msra.mxu0 %v10657_v45  ;;  %6708 = vmatprep.mubr.bf16.mxu1 %v5887_v54 }
 0xa25   :  { %6728 = vmatpush1.bf16.msra.mxu1 %v10660_v48  ;;  %6607 = vmatprep.subr.bf16.mxu0 %v10665_v50 }
 0xa26   :  { %6729 = vmatprep.subr.bf16.mxu1 %v10668_v38 }
 0xa28   :  { %6608 = vmatpush1.bf16.msra.mxu0 %v10663_v62  ;;  %v10719_v62 = vld [vmem:[#allocation9 + $0xb44] ss:$16 sps:$4 sm:$0xff]  }
 0xa29   :  { %6730 = vmatpush1.bf16.msra.mxu1 %v10666_v3  ;;  %6609 = vmatprep.subr.bf16.mxu0 %v10671_v52  ;;  %v10720_v52 = vld [vmem:[#allocation9 + $0xb48] ss:$16 sps:$4 sm:$0xff]  }
 0xa2a   :  { %6587 = vmatmul.mubr.bf16.gmra.mrb[56].mxu0 %v5885_v10  ;;  %6731 = vmatprep.subr.bf16.mxu1 %v10674_v44  ;;  %v10725_v44 = vld [vmem:[#allocation9 + $0xb64] ss:$16 sps:$4 sm:$0xff]  }
 0xa2b   :  { %6709 = vmatmul.mubr.bf16.gmra.mrb[56].mxu1 %v5885_v10  ;;  %6596 = vmatprep.mubr.bf16.mxu0 %v5886_v5  ;;  %v10731_v10 = vld [vmem:[#allocation9 + $0xb84] ss:$16 sps:$4 sm:$0xff]  }
 0xa2c   :  { %6610 = vmatpush1.bf16.msra.mxu0 %v10669_v12  ;;  %6718 = vmatprep.mubr.bf16.mxu1 %v5886_v5  ;;  %v10726_v12 = vld [vmem:[#allocation9 + $0xb68] ss:$16 sps:$4 sm:$0xff]  }
 0xa2d   :  { %6732 = vmatpush1.bf16.msra.mxu1 %v10672_v61  ;;  %6611 = vmatprep.subr.bf16.mxu0 %v10677_v15  ;;  %v10734_v61 = vld [vmem:[#allocation9 + $0xb8c] ss:$16 sps:$4 sm:$0xff]   ;;  %v10729_v15 = vld [vmem:[#allocation9 + $0xb80] ss:$16 sps:$4 sm:$0xff]  }
 0xa2e   :  { %6733 = vmatprep.subr.bf16.mxu1 %v10680_v40  ;;  %v10737_v40 = vld [vmem:[#allocation9 + $0xba4] ss:$16 sps:$4 sm:$0xff]  }
 0xa30   :  { %6612 = vmatpush1.bf16.msra.mxu0 %v10675_v41  ;;  %v10740_v41 = vld [vmem:[#allocation9 + $0xbac] ss:$16 sps:$4 sm:$0xff]  }
 0xa31   :  { %6734 = vmatpush1.bf16.msra.mxu1 %v10678_v36  ;;  %6613 = vmatprep.subr.bf16.mxu0 %v10683_v37  ;;  %v10743_v36 = vld [vmem:[#allocation9 + $0xbc4] ss:$16 sps:$4 sm:$0xff]   ;;  %v10746_v37 = vld [vmem:[#allocation9 + $0xbcc] ss:$16 sps:$4 sm:$0xff]  }
 0xa32   :  { %6597 = vmatmul.mubr.bf16.gmra.mrb[76].mxu0 %v5884_v28  ;;  %6735 = vmatprep.subr.bf16.mxu1 %v10686_v1  ;;  %v10741_v1 = vld [vmem:[#allocation9 + $0xbc0] ss:$16 sps:$4 sm:$0xff]  }
 0xa33   :  { %6719 = vmatmul.mubr.bf16.gmra.mrb[76].mxu1 %v5884_v28  ;;  %6637 = vmatprep.mubr.bf16.mxu0 %v5883_v20  ;;  %v10717_v28 = vld [vmem:[#allocation9 + $0xb40] ss:$16 sps:$4 sm:$0xff]  }
 0xa34   :  { %6614 = vmatpush1.bf16.msra.mxu0 %v10681_v29  ;;  %6759 = vmatprep.mubr.bf16.mxu1 %v5883_v20  ;;  %v5722_v29 = vld [vmem:[#allocation3 + $0x98] sm:$0xf]  ;;  %v10752_v20 = vld [vmem:[#allocation9 + $0xbec] ss:$16 sps:$4 sm:$0xff]  }
 0xa35   :  { %6736 = vmatpush1.bf16.msra.mxu1 %v10684_v34  ;;  %6615 = vmatprep.subr.bf16.mxu0 %v10689_v2  ;;  %v10749_v34 = vld [vmem:[#allocation9 + $0xbe4] ss:$16 sps:$4 sm:$0xff]  }
 0xa36   :  { %6737 = vmatprep.subr.bf16.mxu1 %v10692_v60  ;;  %v5717_v2 = vld [vmem:[#allocation3 + $0x10] sm:$0xfc]  ;;  %v5730_v60 = vpack.c.bf16 %v5722_v29, %v5722_v29 }
 0xa38   :  { %6616 = vmatpush1.bf16.msra.mxu0 %v10687_v30  ;;  %v10747_v30 = vld [vmem:[#allocation9 + $0xbe0] ss:$16 sps:$4 sm:$0xff]  }
 0xa39   :  { %6738 = vmatpush1.bf16.msra.mxu1 %v10690_v26  ;;  %6617 = vmatprep.subr.bf16.mxu0 %v10695_v32  ;;  %v5725_v26 = vpack.c.bf16 %v11968_v4, %v5717_v2  ;;  %v10750_v32 = vld [vmem:[#allocation9 + $0xbe8] ss:$16 sps:$4 sm:$0xff]  }
 0xa3a   :  { %6739 = vmatprep.subr.bf16.mxu1 %v10698_v16  ;;  %v5879_v16 = vrot.slane %v11948_v63, 1 }
 0xa3c   :  { %6618 = vmatpush1.bf16.msra.mxu0 %v10693_v27  ;;  %v5890_v27 = vrot.slane %v5730_v60, 1 }
 0xa3d   :  { %6740 = vmatpush1.bf16.msra.mxu1 %v10696_v58  ;;  %6619 = vmatprep.subr.bf16.mxu0 %v10701_v19  ;;  %v5721_v58 = vld [vmem:[#allocation3 + $0x90] sm:$0xf]  ;;  %v5878_v19 = vrot.slane %v5725_v26, 1 }
 0xa3e   :  { %6741 = vmatprep.subr.bf16.mxu1 %v10704_v21 }
 0xa3f   :  { %v5880_v21 = vsel %vm1345_vm4, %v5878_v19, %v5879_v16 }
 0xa40   :  { %6620 = vmatpush1.bf16.msra.mxu0 %v10699_v23  ;;  %v5729_v23 = vpack.c.bf16 %v5721_v58, %v5721_v58 }
 0xa41   :  { %6742 = vmatpush1.bf16.msra.mxu1 %v10702_v17  ;;  %6621 = vmatprep.subr.bf16.mxu0 %v10707_v55  ;;  %v5891_v17 = vsel %vm1345_vm4, %v5882_v18, %v5890_v27 }
 0xa42   :  { %6743 = vmatprep.subr.bf16.mxu1 %v10710_v57  ;;  %v5888_v4 = vrot.slane %v5729_v23, 1 }
 0xa43   :  { %v4702_v35 = vpop.f32.mrb[64].mxu0  ;;  %v4824_v51 = vpop.f32.mrb[64].mxu1 }
 0xa44   :  { %6622 = vmatpush1.bf16.msra.mxu0 %v10705_v11  ;;  %v11998_v5 = vadd.f32 %v4702_v35, %v11979_v47  ;;  %v12001_v14 = vadd.f32 %v4824_v51, %v11981_v59  ;;  %v4704_v9 = vpop.f32.mrb[65].mxu0  ;;  %v4826_v45 = vpop.f32.mrb[65].mxu1  ;;  %v10722_v59 = vld [vmem:[#allocation9 + $0xb4c] ss:$16 sps:$4 sm:$0xff]   ;;  %v5889_v55 = vsel %vm1345_vm4, %v5879_v16, %v5888_v4 }
 0xa45   :  { %6744 = vmatpush1.bf16.msra.mxu1 %v10708_v6  ;;  %v12004_v48 = vadd.f32 %v4704_v9, %v11983_v8  ;;  %v12007_v50 = vadd.f32 %v4826_v45, %v11985_v49  ;;  %6623 = vmatprep.subr.bf16.mxu0 %v10713_v33  ;;  %v4706_v54 = vpop.f32.mrb[66].mxu0  ;;  %v4828_v38 = vpop.f32.mrb[66].mxu1  ;;  %v10728_v8 = vld [vmem:[#allocation9 + $0xb6c] ss:$16 sps:$4 sm:$0xff]   ;;  %v10723_v49 = vld [vmem:[#allocation9 + $0xb60] ss:$16 sps:$4 sm:$0xff]  }
 0xa46   :  { %6745 = vmatprep.subr.bf16.mxu1 %v10716_v39  ;;  %v4707_v47 = vpop.f32.mrb[67].mxu0  ;;  %v4829_v3 = vpop.f32.mrb[67].mxu1 }
 0xa48   :  { %6624 = vmatpush1.bf16.msra.mxu0 %v10711_v46 }
 0xa49   :  { %6746 = vmatpush1.bf16.msra.mxu1 %v10714_v13  ;;  %6625 = vmatprep.subr.bf16.mxu0 %v10719_v62 }
 0xa4a   :  { %6747 = vmatprep.subr.bf16.mxu1 %v10722_v59 }
 0xa4c   :  { %6626 = vmatpush1.bf16.msra.mxu0 %v10717_v28 }
 0xa4d   :  { %6748 = vmatpush1.bf16.msra.mxu1 %v10720_v52  ;;  %6627 = vmatprep.subr.bf16.mxu0 %v10725_v44 }
 0xa4e   :  { %6749 = vmatprep.subr.bf16.mxu1 %v10728_v8 }
 0xa50   :  { %6628 = vmatpush1.bf16.msra.mxu0 %v10723_v49 }
 0xa51   :  { %6750 = vmatpush1.bf16.msra.mxu1 %v10726_v12  ;;  %6629 = vmatprep.subr.bf16.mxu0 %v10731_v10 }
 0xa52   :  { %6751 = vmatprep.subr.bf16.mxu1 %v10734_v61 }
 0xa54   :  { %6630 = vmatpush1.bf16.msra.mxu0 %v10729_v15  ;;  %v6809_v15 = vld [vmem:[#allocation10 + $0x3] ss:$8 sm:$0xf] }
 0xa55   :  { %6752 = vmatpush1.bf16.msra.mxu1 %v10732_v24  ;;  %6631 = vmatprep.subr.bf16.mxu0 %v10737_v40  ;;  %v12037_v40 = vrot.slane %v6809_v15, %v12925_v7 }
 0xa56   :  { %6753 = vmatprep.subr.bf16.mxu1 %v10740_v41  ;;  %v12040_v41 = vrot.slane %v6809_v15, %v12923_v42 }
 0xa58   :  { %6632 = vmatpush1.bf16.msra.mxu0 %v10735_v43 }
 0xa59   :  { %6754 = vmatpush1.bf16.msra.mxu1 %v10738_v0  ;;  %6633 = vmatprep.subr.bf16.mxu0 %v10743_v36  ;;  %v12043_v36 = vrot.slane %v6809_v15, %v12926_v31 }
 0xa5a   :  { %6755 = vmatprep.subr.bf16.mxu1 %v10746_v37  ;;  %v12046_v37 = vrot.slane %v6809_v15, %v12924_v25 }
 0xa5c   :  { %6634 = vmatpush1.bf16.msra.mxu0 %v10741_v1 }
 0xa5d   :  { %6756 = vmatpush1.bf16.msra.mxu1 %v10744_v22  ;;  %6635 = vmatprep.subr.bf16.mxu0 %v10749_v34 }
 0xa5e   :  { %6757 = vmatprep.subr.bf16.mxu1 %v10752_v20 }
 0xa60   :  { %6636 = vmatpush1.bf16.msra.mxu0 %v10747_v30 }
 0xa61   :  { %6758 = vmatpush1.bf16.msra.mxu1 %v10750_v32 }
 0xa63   :  { %6638 = vmatmul.mubr.bf16.vlgmr.msra.gmra.mrb[52].mxu0 %v5880_v21 }
 0xa64   :  { %6760 = vmatmul.mubr.bf16.vlgmr.msra.gmra.mrb[52].mxu1 %v5880_v21  ;;  %6647 = vmatprep.mubr.bf16.mxu0 %v5891_v17 }
 0xa65   :  { %6769 = vmatprep.mubr.bf16.mxu1 %v5891_v17 }
 0xa6b   :  { %6648 = vmatmul.mubr.bf16.gmra.mrb[56].mxu0 %v5889_v55 }
 0xa6c   :  { %6770 = vmatmul.mubr.bf16.gmra.mrb[56].mxu1 %v5889_v55  ;;  %6657 = vmatprep.mubr.bf16.mxu0 %v5890_v27 }
 0xa6d   :  { %6779 = vmatprep.mubr.bf16.mxu1 %v5890_v27 }
 0xa73   :  { %6658 = vmatmul.mubr.bf16.gmra.mrb[80].mxu0 %v5888_v4 }
 0xa74   :  { %6780 = vmatmul.mubr.bf16.gmra.mrb[80].mxu1 %v5888_v4  ;;  %6940 = vmatprep.mubr.f32.mxu0 %v12915_v56 }
 0xa75   :  { %7011 = vmatprep.mubr.f32.mxu1 %v12915_v56 }
 0xa84   :  { %v5525_v63 = vpop.f32.mrb[68].mxu0  ;;  %v5647_v53 = vpop.f32.mrb[68].mxu1 }
 0xa85   :  { %v5526_v18 = vadd.f32 %v5525_v63, %v11998_v5  ;;  %v5648_v57 = vadd.f32 %v5647_v53, %v12001_v14  ;;  %v5527_v11 = vpop.f32.mrb[69].mxu0  ;;  %v5649_v6 = vpop.f32.mrb[69].mxu1 }
 0xa86   :  { %v5528_v33 = vadd.f32 %v5527_v11, %v12004_v48  ;;  %v5650_v39 = vadd.f32 %v5649_v6, %v12007_v50  ;;  %v5529_v35 = vpop.f32.mrb[70].mxu0  ;;  %v5651_v51 = vpop.f32.mrb[70].mxu1 }
 0xa87   :  { %v5530_v9 = vpop.f32.mrb[71].mxu0  ;;  %v5652_v45 = vpop.f32.mrb[71].mxu1 }
 0xac4   :  { %v5586_v46 = vpop.f32.mrb[72].mxu0 }
 0xac5   :  { %v12022_v13 = vadd.f32 %v5586_v46, %v5526_v18  ;;  %v5708_v54 = vpop.f32.mrb[72].mxu1  ;;  %v5588_v38 = vpop.f32.mrb[73].mxu0 }
 0xac6   :  { %v12024_v62 = vadd.f32 %v5708_v54, %v5648_v57  ;;  %v12026_v5 = vadd.f32 %v5588_v38, %v5528_v33  ;;  %v5710_v14 = vpop.f32.mrb[73].mxu1  ;;  %v5590_v47 = vpop.f32.mrb[74].mxu0 }
 0xac7   :  { %v12028_v3 = vadd.f32 %v5710_v14, %v5650_v39  ;;  %v5712_v48 = vpop.f32.mrb[74].mxu1  ;;  %v5591_v59 = vpop.f32.mrb[75].mxu0 }
 0xac8   :  { %v5713_v50 = vpop.f32.mrb[75].mxu1 }
 0xb05   :  { %v6598_v28 = vpop.f32.mrb[76].mxu0 }
 0xb06   :  { %v12030_v52 = vpop.f32.mrb[76].mxu1  ;;  %v12032_v44 = vpop.f32.mrb[77].mxu0 }
 0xb07   :  { %v12034_v8 = vpop.f32.mrb[77].mxu1  ;;  %v6602_v49 = vpop.f32.mrb[78].mxu0 }
 0xb08   :  { %v6724_v12 = vpop.f32.mrb[78].mxu1  ;;  %v6603_v10 = vpop.f32.mrb[79].mxu0 }
 0xb09   :  { %v6725_v61 = vpop.f32.mrb[79].mxu1 }
 0xb36   :  { %v6639_v24 = vpop.f32.mrb[52].mxu0 }
 0xb37   :  { %v6761_v43 = vpop.f32.mrb[52].mxu1  ;;  %v6641_v0 = vpop.f32.mrb[53].mxu0  ;;  %v12061_v32 = vadd.f32 %v12040_v41, %v6639_v24 }
 0xb38   :  { %v6763_v1 = vpop.f32.mrb[53].mxu1  ;;  %v6643_v29 = vpop.f32.mrb[54].mxu0  ;;  %v12052_v20 = vadd.f32 %v12037_v40, %v6641_v0  ;;  %v12070_v58 = vadd.f32 %v12046_v37, %v6761_v43 }
 0xb39   :  { %v12049_v22 = vadd.f32 %v12040_v41, %v6643_v29  ;;  %v6765_v34 = vpop.f32.mrb[54].mxu1  ;;  %v6645_v2 = vpop.f32.mrb[55].mxu0  ;;  %v12064_v16 = vadd.f32 %v12043_v36, %v6763_v1 }
 0xb3a   :  { %v12055_v60 = vadd.f32 %v12046_v37, %v6765_v34  ;;  %v12058_v30 = vadd.f32 %v12037_v40, %v6645_v2  ;;  %v6767_v26 = vpop.f32.mrb[55].mxu1 }
 0xb3b   :  { %v12067_v27 = vadd.f32 %v12043_v36, %v6767_v26  ;;  %v9605_v21 = vpack.c.bf16 %v12049_v22, %v12061_v32 }
 0xb3c   :  { %v9603_v19 = vpack.c.bf16 %v12058_v30, %v12052_v20  ;;  %v9613_v17 = vpack.c.bf16 %v12055_v60, %v12070_v58 }
 0xb3d   :  { %v9611_v23 = vpack.c.bf16 %v12067_v27, %v12064_v16 }
 0xb3e   :  { %v6649_v4 = vpop.f32.mrb[56].mxu0  ;;  %9604 = vmatprep.subr.bf16.mxu0 %v9603_v19  ;;  %v7050_v19 = vld [vmem:[%s12812_s4 + $0x100] sm:$0xff] }
 0xb3f   :  { %v6771_v55 = vpop.f32.mrb[56].mxu1  ;;  %9612 = vmatprep.subr.bf16.mxu1 %v9611_v23  ;;  %v6651_v63 = vpop.f32.mrb[57].mxu0  ;;  %9606 = vmatpush1.bf16.msra.mxu0 %v9605_v21  ;;  %v12093_v9 = vadd.f32 %v12040_v41, %v6649_v4  ;;  %v7051_v23 = vld [vmem:[%s12812_s4 + $0x108] sm:$0xff] }
 0xb40   :  { %v6773_v53 = vpop.f32.mrb[57].mxu1  ;;  %9614 = vmatpush1.bf16.msra.mxu1 %v9613_v17  ;;  %v6653_v18 = vpop.f32.mrb[58].mxu0  ;;  %v12084_v33 = vadd.f32 %v12037_v40, %v6651_v63  ;;  %v12102_v54 = vadd.f32 %v12046_v37, %v6771_v55  ;;  %v7037_v17 = vld [vmem:[%s12812_s4 + $0x98] sm:$0xff] }
 0xb41   :  { %v12081_v57 = vadd.f32 %v12040_v41, %v6653_v18  ;;  %v6775_v11 = vpop.f32.mrb[58].mxu1  ;;  %v6655_v6 = vpop.f32.mrb[59].mxu0  ;;  %v12096_v45 = vadd.f32 %v12043_v36, %v6773_v53  ;;  %v7068_v53 = vld [vmem:[%s12812_s4 + $0x190] sm:$0xff]  ;;  %v7069_v18 = vld [vmem:[%s12812_s4 + $0x198] sm:$0xff] }
 0xb42   :  { %v12087_v39 = vadd.f32 %v12046_v37, %v6775_v11  ;;  %v12090_v35 = vadd.f32 %v12037_v40, %v6655_v6  ;;  %v6777_v51 = vpop.f32.mrb[59].mxu1  ;;  %v12181_v6 = vpack.c.bf16 %v7051_v23, %v7050_v19  ;;  %v7057_v23 = vld [vmem:[%s12812_s4 + $0x138] sm:$0xff] }
 0xb43   :  { %v12099_v46 = vadd.f32 %v12043_v36, %v6777_v51  ;;  %v9609_v14 = vpack.c.bf16 %v12081_v57, %v12093_v9 }
 0xb44   :  { %v9607_v38 = vpack.c.bf16 %v12090_v35, %v12084_v33  ;;  %v9617_v48 = vpack.c.bf16 %v12087_v39, %v12102_v54 }
 0xb45   :  { %v9615_v47 = vpack.c.bf16 %v12099_v46, %v12096_v45 }
 0xb46   :  { %v6659_v59 = vpop.f32.mrb[80].mxu0  ;;  %9608 = vmatprep.subr.bf16.mxu0 %v9607_v38  ;;  %v7021_v38 = vld [vmem:[%s12812_s4 + $0x18] sm:$0xff] }
 0xb47   :  { %v6660_v50 = vadd.f32 %v6659_v59, %v6598_v28  ;;  %v6781_v49 = vpop.f32.mrb[80].mxu1  ;;  %9616 = vmatprep.subr.bf16.mxu1 %v9615_v47  ;;  %v6661_v12 = vpop.f32.mrb[81].mxu0  ;;  %9610 = vmatpush1.bf16.msra.mxu0 %v9609_v14  ;;  %v7034_v28 = vld [vmem:[%s12812_s4 + $0x80] sm:$0xff]  ;;  %v7052_v14 = vld [vmem:[%s12812_s4 + $0x110] sm:$0xff]  ;;  %v12198_v47 = vpack.c.bf16 %v7069_v18, %v7068_v53  ;;  %v7075_v18 = vld [vmem:[%s12812_s4 + $0x1c8] sm:$0xff] }
 0xb48   :  { %v6782_v10 = vadd.f32 %v6781_v49, %v12030_v52  ;;  %v6662_v61 = vadd.f32 %v6661_v12, %v12032_v44  ;;  %v6783_v15 = vpop.f32.mrb[81].mxu1  ;;  %9618 = vmatpush1.bf16.msra.mxu1 %v9617_v48  ;;  %v6663_v24 = vpop.f32.mrb[82].mxu0  ;;  %v7035_v44 = vld [vmem:[%s12812_s4 + $0x88] sm:$0xff]  ;;  %v7053_v48 = vld [vmem:[%s12812_s4 + $0x118] sm:$0xff]  ;;  %v7038_v59 = vld [vmem:[%s12812_s4 + $0xa0] sm:$0xff] }
 0xb49   :  { %v6804_v43 = vadd.f32 %v6660_v50, %v12022_v13  ;;  %v6784_v0 = vadd.f32 %v6783_v15, %v12034_v8  ;;  %v6785_v1 = vpop.f32.mrb[82].mxu1  ;;  %v6664_v29 = vpop.f32.mrb[83].mxu0  ;;  %v7066_v13 = vld [vmem:[%s12812_s4 + $0x180] sm:$0xff]  ;;  %v7067_v8 = vld [vmem:[%s12812_s4 + $0x188] sm:$0xff]  ;;  %v12160_v63 = vpack.c.bf16 %v7035_v44, %v7034_v28  ;;  %v7040_v28 = vld [vmem:[%s12812_s4 + $0xb0] sm:$0xff] }
 0xb4a   :  { %v6806_v34 = vadd.f32 %v6782_v10, %v12024_v62  ;;  %v6805_v2 = vadd.f32 %v6662_v61, %v12026_v5  ;;  %v6786_v52 = vpop.f32.mrb[83].mxu1  ;;  %v7018_v62 = vld [vmem:[%s12812_s4] sm:$0xff]  ;;  %v7019_v5 = vld [vmem:[%s12812_s4 + $0x8] sm:$0xff]  ;;  %v12224_v61 = vpack.c.bf16 %v7053_v48, %v7052_v14 }
 0xb4b   :  { %v6807_v26 = vadd.f32 %v6784_v0, %v12028_v3  ;;  %v7036_v3 = vld [vmem:[%s12812_s4 + $0x90] sm:$0xff]  ;;  %v12153_v4 = vadd.f32 %v12040_v41, %v6804_v43  ;;  %v12173_v41 = vpack.c.bf16 %v7067_v8, %v7066_v13  ;;  %v7039_v50 = vld [vmem:[%s12812_s4 + $0xa8] sm:$0xff]  ;;  %v7070_v49 = vld [vmem:[%s12812_s4 + $0x1a0] sm:$0xff] }
 0xb4c   :  { %v12141_v21 = vadd.f32 %v12037_v40, %v6805_v2  ;;  %v12158_v40 = vld [vmem:[#allocation13] sm:$0x3]  ;;  %v12169_v11 = vadd.f32 %v12046_v37, %v6806_v34  ;;  %v12183_v51 = vpack.c.bf16 %v7037_v17, %v7036_v3  ;;  %v7020_v37 = vld [vmem:[%s12812_s4 + $0x10] sm:$0xff]  ;;  %v7071_v12 = vld [vmem:[%s12812_s4 + $0x1a8] sm:$0xff]  ;;  %v12226_v15 = vpack.c.bf16 %v7039_v50, %v7038_v59 }
 0xb4d   :  { %v12156_v55 = vadd.f32 %v12043_v36, %v6807_v26  ;;  %v12175_v36 = vpack.c.bf16 %v7019_v5, %v7018_v62  ;;  %v12220_v10 = vpack.c.bf16 %v7021_v38, %v7020_v37  ;;  %v7022_v24 = vld [vmem:[%s12812_s4 + $0x20] sm:$0xff]  ;;  %v7023_v43 = vld [vmem:[%s12812_s4 + $0x28] sm:$0xff]  ;;  %v12238_v1 = vpack.c.bf16 %v7071_v12, %v7070_v49  ;;  %v7041_v34 = vld [vmem:[%s12812_s4 + $0xb8] sm:$0xff] }
 0xb4e   :  { %9111 = vmatprep.subr.msk.mxu0 %vm1880_vm5, %v12141_v21  ;;  %v7054_v0 = vld [vmem:[%s12812_s4 + $0x120] sm:$0xff]  ;;  %v7055_v29 = vld [vmem:[%s12812_s4 + $0x128] sm:$0xff]  ;;  %v7072_v2 = vld [vmem:[%s12812_s4 + $0x1b0] sm:$0xff]  ;;  %v12256_v44 = vpack.c.bf16 %v7023_v43, %v7022_v24  ;;  %v12262_v8 = vpack.c.bf16 %v7041_v34, %v7040_v28 }
 0xb4f   :  { %9114 = vmatprep.subr.msk.mxu1 %vm1880_vm5, %v12156_v55  ;;  %9112 = vmatpush1.msk.msra.mxu0 %vm1880_vm5, %v12153_v4  ;;  %v7073_v52 = vld [vmem:[%s12812_s4 + $0x1b8] sm:$0xff]  ;;  %v12260_v13 = vpack.c.bf16 %v7055_v29, %v7054_v0  ;;  %v7024_v26 = vld [vmem:[%s12812_s4 + $0x30] sm:$0xff]  ;;  %v7042_v3 = vld [vmem:[%s12812_s4 + $0xc0] sm:$0xff] }
 0xb50   :  { %9115 = vmatpush1.msk.msra.mxu1 %vm1880_vm5, %v12169_v11  ;;  %9113 = vmatmul.mubr.msk.f32.vlgmr.msra.gmra.mrb[84].mxu0 %vm1876_vm6, %v12158_v40  ;;  %v7025_v62 = vld [vmem:[%s12812_s4 + $0x38] sm:$0xff]  ;;  %v7056_v5 = vld [vmem:[%s12812_s4 + $0x130] sm:$0xff]  ;;  %v12274_v19 = vpack.c.bf16 %v7073_v52, %v7072_v2  ;;  %v7043_v17 = vld [vmem:[%s12812_s4 + $0xc8] sm:$0xff] }
 0xb51   :  { %9116 = vmatmul.mubr.msk.f32.vlgmr.msra.gmra.mrb[84].mxu1 %vm1876_vm6, %v12158_v40  ;;  %9620 = vmatprep.subr.bf16.mxu0 %v12160_v63  ;;  %v7074_v53 = vld [vmem:[%s12812_s4 + $0x1c0] sm:$0xff]  ;;  %v12292_v37 = vpack.c.bf16 %v7025_v62, %v7024_v26  ;;  %v12296_v38 = vpack.c.bf16 %v7057_v23, %v7056_v5  ;;  %v12298_v14 = vpack.c.bf16 %v7043_v17, %v7042_v3  ;;  %v7027_v59 = vld [vmem:[%s12812_s4 + $0x48] sm:$0xff]  ;;  %v7044_v24 = vld [vmem:[%s12812_s4 + $0xd0] sm:$0xff] }
 0xb52   :  { %9652 = vmatprep.subr.bf16.mxu1 %v12173_v41  ;;  %9622 = vmatpush3.bf16.msra.mxu0 %v12175_v36  ;;  %v7026_v48 = vld [vmem:[%s12812_s4 + $0x40] sm:$0xff]  ;;  %v12310_v49 = vpack.c.bf16 %v7075_v18, %v7074_v53  ;;  %v7059_v12 = vld [vmem:[%s12812_s4 + $0x148] sm:$0xff]  ;;  %v7045_v43 = vld [vmem:[%s12812_s4 + $0xd8] sm:$0xff] }
 0xb53   :  { %9654 = vmatpush3.bf16.msra.mxu1 %v12181_v6  ;;  %9624 = vmatprep.subr.bf16.mxu0 %v12183_v51  ;;  %v7058_v50 = vld [vmem:[%s12812_s4 + $0x140] sm:$0xff]  ;;  %v7076_v0 = vld [vmem:[%s12812_s4 + $0x1d0] sm:$0xff]  ;;  %v7077_v29 = vld [vmem:[%s12812_s4 + $0x1d8] sm:$0xff]  ;;  %v12328_v28 = vpack.c.bf16 %v7027_v59, %v7026_v48  ;;  %v12334_v2 = vpack.c.bf16 %v7045_v43, %v7044_v24 }
 0xb54   :  { %9656 = vmatprep.subr.bf16.mxu1 %v12198_v47  ;;  %v12332_v34 = vpack.c.bf16 %v7059_v12, %v7058_v50  ;;  %v7028_v52 = vld [vmem:[%s12812_s4 + $0x50] sm:$0xff]  ;;  %v7029_v26 = vld [vmem:[%s12812_s4 + $0x58] sm:$0xff]  ;;  %v12346_v5 = vpack.c.bf16 %v7077_v29, %v7076_v0  ;;  %v7046_v3 = vld [vmem:[%s12812_s4 + $0xe0] sm:$0xff] }
 0xb55   :  { %v7060_v62 = vld [vmem:[%s12812_s4 + $0x150] sm:$0xff]  ;;  %v7061_v23 = vld [vmem:[%s12812_s4 + $0x158] sm:$0xff]  ;;  %v7047_v17 = vld [vmem:[%s12812_s4 + $0xe8] sm:$0xff]  ;;  %v12364_v48 = vpack.c.bf16 %v7029_v26, %v7028_v52 }
 0xb56   :  { %9626 = vmatpush3.bf16.msra.mxu0 %v12220_v10  ;;  %v7078_v53 = vld [vmem:[%s12812_s4 + $0x1e0] sm:$0xff]  ;;  %v7079_v18 = vld [vmem:[%s12812_s4 + $0x1e8] sm:$0xff]  ;;  %v12368_v59 = vpack.c.bf16 %v7061_v23, %v7060_v62  ;;  %v12370_v50 = vpack.c.bf16 %v7047_v17, %v7046_v3  ;;  %v7048_v52 = vld [vmem:[%s12812_s4 + $0xf0] sm:$0xff] }
 0xb57   :  { %9658 = vmatpush3.bf16.msra.mxu1 %v12224_v61  ;;  %9628 = vmatprep.subr.bf16.mxu0 %v12226_v15  ;;  %v7030_v12 = vld [vmem:[%s12812_s4 + $0x60] sm:$0xff]  ;;  %v7031_v24 = vld [vmem:[%s12812_s4 + $0x68] sm:$0xff]  ;;  %v12382_v0 = vpack.c.bf16 %v7079_v18, %v7078_v53  ;;  %v7049_v26 = vld [vmem:[%s12812_s4 + $0xf8] sm:$0xff] }
 0xb58   :  { %9660 = vmatprep.subr.bf16.mxu1 %v12238_v1  ;;  %v7062_v43 = vld [vmem:[%s12812_s4 + $0x160] sm:$0xff]  ;;  %v7063_v29 = vld [vmem:[%s12812_s4 + $0x168] sm:$0xff]  ;;  %v7080_v62 = vld [vmem:[%s12812_s4 + $0x1f0] sm:$0xff]  ;;  %v12400_v3 = vpack.c.bf16 %v7031_v24, %v7030_v12  ;;  %v12406_v53 = vpack.c.bf16 %v7049_v26, %v7048_v52 }
 0xb59   :  { %v7081_v23 = vld [vmem:[%s12812_s4 + $0x1f8] sm:$0xff]  ;;  %v12404_v17 = vpack.c.bf16 %v7063_v29, %v7062_v43  ;;  %v7032_v12 = vld [vmem:[%s12812_s4 + $0x70] sm:$0xff] }
 0xb5a   :  { %9630 = vmatpush3.bf16.msra.mxu0 %v12256_v44  ;;  %v12409_v18 = vpack.c.bf16 %v7081_v23, %v7080_v62  ;;  %v7033_v24 = vld [vmem:[%s12812_s4 + $0x78] sm:$0xff]  ;;  %v7064_v43 = vld [vmem:[%s12812_s4 + $0x170] sm:$0xff] }
 0xb5b   :  { %9662 = vmatpush3.bf16.msra.mxu1 %v12260_v13  ;;  %9632 = vmatprep.subr.bf16.mxu0 %v12262_v8  ;;  %v12424_v29 = vpack.c.bf16 %v7033_v24, %v7032_v12  ;;  %v7065_v52 = vld [vmem:[%s12812_s4 + $0x178] sm:$0xff]  ;;  %v12435_v12 = vld [vmem:[#allocation12] sm:$0xff] }
 0xb5c   :  { %9664 = vmatprep.subr.bf16.mxu1 %v12274_v19  ;;  %12935 = vst [vmem:[#allocation25_spill] sm:$0xff] %v12409_v18  ;;  %v12429_v26 = vpack.c.bf16 %v7065_v52, %v7064_v43  ;;  %12938 = vst [vmem:[#allocation30_spill] sm:$0xff] %v12435_v12  ;;  %v12437_v24 = vld [vmem:[#allocation12 + $0x8] sm:$0xff]  ;;  %v12441_v43 = vcombine.high %v12435_v12, %v12435_v12 }
 0xb5d   :  { %12936 = vst [vmem:[#allocation26_spill] sm:$0xff] %v12424_v29  ;;  %12939 = vst [vmem:[#allocation31_spill] sm:$0xff] %v12437_v24  ;;  %v12445_v52 = vcombine.high %v12437_v24, %v12437_v24 }
 0xb5e   :  { %9634 = vmatpush3.bf16.msra.mxu0 %v12292_v37  ;;  %12937 = vst [vmem:[#allocation27_spill] sm:$0xff] %v12429_v26  ;;  %12940 = vst [vmem:[#allocation28_spill] sm:$0xff] %v12441_v43 }
 0xb5f   :  { %9666 = vmatpush3.bf16.msra.mxu1 %v12296_v38  ;;  %9636 = vmatprep.subr.bf16.mxu0 %v12298_v14  ;;  %12941 = vst [vmem:[#allocation29_spill] sm:$0xff] %v12445_v52 }
 0xb60   :  { %9668 = vmatprep.subr.bf16.mxu1 %v12310_v49 }
 0xb62   :  { %9638 = vmatpush3.bf16.msra.mxu0 %v12328_v28 }
 0xb63   :  { %9670 = vmatpush3.bf16.msra.mxu1 %v12332_v34  ;;  %9640 = vmatprep.subr.bf16.mxu0 %v12334_v2 }
 0xb64   :  { %9672 = vmatprep.subr.bf16.mxu1 %v12346_v5 }
 0xb66   :  { %9642 = vmatpush3.bf16.msra.mxu0 %v12364_v48 }
 0xb67   :  { %9674 = vmatpush3.bf16.msra.mxu1 %v12368_v59  ;;  %9644 = vmatprep.subr.bf16.mxu0 %v12370_v50 }
 0xb68   :  { %9676 = vmatprep.subr.bf16.mxu1 %v12382_v0 }
 0xb6a   :  { %9646 = vmatpush3.bf16.msra.mxu0 %v12400_v3 }
 0xb6b   :  { %9678 = vmatpush3.bf16.msra.mxu1 %v12404_v17  ;;  %9648 = vmatprep.subr.bf16.mxu0 %v12406_v53 }
 0xb6c   :  { %9680 = vmatprep.subr.bf16.mxu1 %v12409_v18 }
 0xb6e   :  { %9650 = vmatpush3.bf16.msra.mxu0 %v12424_v29 }
 0xb6f   :  { %9682 = vmatpush3.bf16.msra.mxu1 %v12429_v26  ;;  %9117 = vmatprep.subr.msk.mxu0 %vm2250_vm7, %v12441_v43 }
 0xb70   :  { %9120 = vmatprep.subr.msk.mxu1 %vm2250_vm7, %v12445_v52 }
 0xc23   :  { %v6942_v62 = vpop.f32.mrb[84].mxu0 }
 0xc24   :  { %v7013_v23 = vpop.f32.mrb[84].mxu1  ;;  %v6944_v31 = vpop.f32.mrb[85].mxu0 }
 0xc25   :  { %v7015_v7 = vpop.f32.mrb[85].mxu1  ;;  %7146 = vmatprep.mubr.f32.mxu0 %v6944_v31 }
 0xc26   :  { %7216 = vmatprep.mubr.f32.mxu1 %v7015_v7  ;;  %7147 = vmatmul.mubr.f32.vlgmr.msra.gmra.mrb[86].mxu0 %v6942_v62 }
 0xc27   :  { %7217 = vmatmul.mubr.f32.vlgmr.msra.gmra.mrb[86].mxu1 %v7013_v23  ;;  %7304 = vmatprep.mubr.f32.mxu0 %v12915_v56 }
 0xc28   :  { %7375 = vmatprep.mubr.f32.mxu1 %v12915_v56  ;;  %9118 = vmatpush1.msk.msra.mxu0 %vm2250_vm7, %v12435_v12 }
 0xc29   :  { %9121 = vmatpush1.msk.msra.mxu1 %vm2250_vm7, %v12437_v24 }
 0xcf9   :  { %v9335_v7 = vpop.f32.mrb[86].mxu0 }
 0xcfa   :  { %v9370_v31 = vpop.f32.mrb[86].mxu1  ;;  %v9336_v62 = vpop.f32.mrb[87].mxu0 }
 0xcfb   :  { %v9337_v23 = vadd.f32 %v9336_v62, %v9335_v7  ;;  %v9371_v25 = vpop.f32.mrb[87].mxu1  ;;  %v12462_v7 = vld [vmem:[%s12815_s7] sm:$0xff] }
 0xcfc   :  { %v9372_v42 = vadd.f32 %v9371_v25, %v9370_v31  ;;  %12942 = vst [vmem:[#allocation32_spill] sm:$0xff] %v12462_v7  ;;  %v12488_v25 = vld [vmem:[%s12815_s7 + $0x10] sm:$0xff] }
 0xcfd   :  { %12944 = vst [vmem:[#allocation34_spill] sm:$0xff] %v12488_v25 }
 0xcfe   :  { %v7219_v26 = vadd.f32 %v9372_v42, %v9337_v23  ;;  %v12477_v42 = vld [vmem:[%s12815_s7 + $0x8] sm:$0xff] }
 0xcff   :  { %12943 = vst [vmem:[#allocation33_spill] sm:$0xff] %v12477_v42 }
 0xd00   :  { %v7222_v29 = vmul.f32 0.00048828125, %v7219_v26  ;;  %v12510_v26 = vld [vmem:[%s12815_s7 + $0x20] sm:$0x3] }
 0xd01   :  { %12946 = vst [vmem:[#allocation36_spill] sm:$0xff] %v12510_v26 }
 0xd02   :  { %9119 = vmatmul.mubr.msk.f32.vlgmr.msra.gmra.mrb[88].mxu0 %vm2246_vm8, %v7222_v29  ;;  %9122 = vmatmul.mubr.msk.f32.vlgmr.msra.gmra.mrb[88].mxu1 %vm2246_vm8, %v7222_v29  ;;  %v12499_v29 = vld [vmem:[%s12815_s7 + $0x18] sm:$0xff]  ;;  %s10937_s7 = smov [#allocation15]  }
 0xd03   :  { %7473 = vmatprep.mubr.f32.mxu0 %v12915_v56  ;;  %7568 = vmatprep.mubr.f32.mxu1 %v12915_v56  ;;  %12945 = vst [vmem:[#allocation35_spill] sm:$0xff] %v12499_v29  ;;  %s8468_s26 = sshll.u32 %s10937_s7, 4  ;;  %s8469_s26 = int_to_ptr.vmem [resolvable:$true] %s8468_s26 }
 0xd04   :  { %s10896_s27 = scalar_lea.vmem %s8469_s26, 2048  ;;  %p10901_p7 = scmp.lt.s32.totalorder %s8469_s26, %s8469_s26 }
 0xd05   :  { %p10897_p6 = scmp.ne.s32.totalorder %s8469_s26, %s10896_s27  ;;  %p10902_p8 = scmp.lt.s32.totalorder %s10896_s27, %s10896_s27 }
 0xd07   :  { %p10903_p9 = por %p10902_p8, %p10901_p7 }
 0xd09   :  { %p10904_p10 = pnand %p10903_p9, %p10897_p6 }
 0xdd5   :  { %v7306_v12 = vpop.f32.mrb[88].mxu0  ;;  %v7377_v52 = vpop.f32.mrb[88].mxu1 }
 0xdd6   :  { %v7308_v43 = vpop.f32.mrb[89].mxu0  ;;  %v7379_v24 = vpop.f32.mrb[89].mxu1 }
 0xdd7   :  { %9123 = vmatprep.subr.msk.mxu0 %vm1880_vm5, %v7308_v43  ;;  %9130 = vmatprep.subr.msk.mxu1 %vm1880_vm5, %v7379_v24 }
 0xdd8   :  { %9124 = vmatpush1.msk.msra.mxu0 %vm1880_vm5, %v7306_v12  ;;  %9131 = vmatpush1.msk.msra.mxu1 %vm1880_vm5, %v7377_v52 }
 0xdd9   :  { %9125 = vmatmul.mubr.msk.f32.vlgmr.msra.gmra.mrb[90].mxu0 %vm2401_vm9, %v12462_v7  ;;  %9132 = vmatmul.mubr.msk.f32.vlgmr.msra.gmra.mrb[90].mxu1 %vm2401_vm9, %v12462_v7 }
 0xdda   :  { %7479 = vmatprep.mubr.f32.mxu0 %v12915_v56  ;;  %7574 = vmatprep.mubr.f32.mxu1 %v12915_v56 }
 0xddd   :  { %9126 = vmatmul.mubr.msk.f32.gmra.mrb[92].mxu0 %vm2401_vm9, %v12477_v42  ;;  %9133 = vmatmul.mubr.msk.f32.gmra.mrb[92].mxu1 %vm2401_vm9, %v12477_v42 }
 0xdde   :  { %7485 = vmatprep.mubr.f32.mxu0 %v12915_v56  ;;  %7580 = vmatprep.mubr.f32.mxu1 %v12915_v56 }
 0xde1   :  { %9127 = vmatmul.mubr.msk.f32.gmra.mrb[94].mxu0 %vm2401_vm9, %v12488_v25  ;;  %9134 = vmatmul.mubr.msk.f32.gmra.mrb[94].mxu1 %vm2401_vm9, %v12488_v25 }
 0xde2   :  { %7491 = vmatprep.mubr.f32.mxu0 %v12915_v56  ;;  %7586 = vmatprep.mubr.f32.mxu1 %v12915_v56 }
 0xde5   :  { %9128 = vmatmul.mubr.msk.f32.gmra.mrb[96].mxu0 %vm2401_vm9, %v12499_v29  ;;  %9135 = vmatmul.mubr.msk.f32.gmra.mrb[96].mxu1 %vm2401_vm9, %v12499_v29 }
 0xde6   :  { %7497 = vmatprep.mubr.f32.mxu0 %v12915_v56  ;;  %7592 = vmatprep.mubr.f32.mxu1 %v12915_v56 }
 0xde9   :  { %9129 = vmatmul.mubr.msk.f32.gmra.mrb[98].mxu0 %vm2401_vm9, %v12510_v26  ;;  %9136 = vmatmul.mubr.msk.f32.gmra.mrb[98].mxu1 %vm2401_vm9, %v12510_v26 }
 0xdea   :  { %7715 = vmatprep.mubr.f32.mxu0 %v12915_v56  ;;  %7786 = vmatprep.mubr.f32.mxu1 %v12915_v56 }
 0xeac   :  { %v7475_v12 = vpop.f32.mrb[90].mxu0  ;;  %v7570_v24 = vpop.f32.mrb[90].mxu1 }
 0xead   :  { %v7477_v43 = vpop.f32.mrb[91].mxu0  ;;  %v7572_v52 = vpop.f32.mrb[91].mxu1  ;;  %v12525_v25 = vsub.f32 %v12061_v32, %v7475_v12  ;;  %v12528_v26 = vsub.f32 %v12070_v58, %v7570_v24 }
 0xeae   :  { %v12519_v31 = vsub.f32 %v12052_v20, %v7477_v43  ;;  %v12522_v62 = vsub.f32 %v12064_v16, %v7572_v52 }
 0xeaf   :  { %12949 = vst [vmem:[#allocation37_spill] sm:$0xff] %v12525_v25  ;;  %12950 = vst [vmem:[#allocation38_spill] sm:$0xff] %v12528_v26  ;;  %v7619_v12 = vmul.f32 %v12525_v25, %v12525_v25  ;;  %v7621_v24 = vmul.f32 %v12528_v26, %v12528_v26 }
 0xeb0   :  { %12947 = vst [vmem:[#allocation39_spill] sm:$0xff] %v12519_v31  ;;  %12948 = vst [vmem:[#allocation40_spill] sm:$0xff] %v12522_v62  ;;  %v7481_v23 = vpop.f32.mrb[92].mxu0  ;;  %v7576_v29 = vpop.f32.mrb[92].mxu1 }
 0xeb1   :  { %v12531_v42 = vsub.f32 %v12049_v22, %v7481_v23  ;;  %v12534_v7 = vsub.f32 %v12055_v60, %v7576_v29  ;;  %v7483_v56 = vpop.f32.mrb[93].mxu0  ;;  %v7578_v20 = vpop.f32.mrb[93].mxu1  ;;  %v7620_v22 = vmul.f32 %v12519_v31, %v12519_v31  ;;  %v7622_v60 = vmul.f32 %v12522_v62, %v12522_v62 }
 0xeb2   :  { %v12537_v43 = vsub.f32 %v12058_v30, %v7483_v56  ;;  %v12540_v16 = vsub.f32 %v12067_v27, %v7578_v20 }
 0xeb3   :  { %12951 = vst [vmem:[#allocation41_spill] sm:$0xff] %v12531_v42  ;;  %12952 = vst [vmem:[#allocation42_spill] sm:$0xff] %v12534_v7  ;;  %v7623_v32 = vmul.f32 %v12531_v42, %v12531_v42  ;;  %v7625_v58 = vmul.f32 %v12534_v7, %v12534_v7 }
 0xeb4   :  { %12953 = vst [vmem:[#allocation43_spill] sm:$0xff] %v12537_v43  ;;  %12954 = vst [vmem:[#allocation44_spill] sm:$0xff] %v12540_v16  ;;  %v7624_v29 = vmul.f32 %v12537_v43, %v12537_v43  ;;  %v7626_v56 = vmul.f32 %v12540_v16, %v12540_v16  ;;  %v7487_v30 = vpop.f32.mrb[94].mxu0  ;;  %v7582_v27 = vpop.f32.mrb[94].mxu1 }
 0xeb5   :  { %v7489_v52 = vpop.f32.mrb[95].mxu0  ;;  %v7584_v23 = vpop.f32.mrb[95].mxu1  ;;  %v9685_v42 = vpack.c.bf16 %v7623_v32, %v7619_v12  ;;  %v9693_v62 = vpack.c.bf16 %v7625_v58, %v7621_v24  ;;  %v12559_v31 = vsub.f32 %v12093_v9, %v7487_v30  ;;  %v12568_v26 = vsub.f32 %v12102_v54, %v7582_v27 }
 0xeb6   :  { %v9683_v20 = vpack.c.bf16 %v7624_v29, %v7620_v22  ;;  %v9691_v7 = vpack.c.bf16 %v7626_v56, %v7622_v60  ;;  %v12562_v43 = vsub.f32 %v12084_v33, %v7489_v52  ;;  %v12565_v16 = vsub.f32 %v12096_v45, %v7584_v23 }
 0xeb8   :  { %v7493_v18 = vpop.f32.mrb[96].mxu0  ;;  %v7588_v25 = vpop.f32.mrb[96].mxu1  ;;  %9684 = vmatprep.subr.bf16.mxu0 %v9683_v20  ;;  %9692 = vmatprep.subr.bf16.mxu1 %v9691_v7 }
 0xeb9   :  { %v12571_v22 = vsub.f32 %v12081_v57, %v7493_v18  ;;  %v12574_v32 = vsub.f32 %v12087_v39, %v7588_v25  ;;  %v7495_v9 = vpop.f32.mrb[97].mxu0  ;;  %v7590_v58 = vpop.f32.mrb[97].mxu1  ;;  %9686 = vmatpush1.bf16.msra.mxu0 %v9685_v42  ;;  %9694 = vmatpush1.bf16.msra.mxu1 %v9693_v62  ;;  %v7628_v39 = vmul.f32 %v12562_v43, %v12562_v43 }
 0xeba   :  { %v12577_v33 = vsub.f32 %v12090_v35, %v7495_v9  ;;  %v12580_v45 = vsub.f32 %v12099_v46, %v7590_v58  ;;  %v7630_v18 = vmul.f32 %v12565_v16, %v12565_v16  ;;  %v7627_v25 = vmul.f32 %v12559_v31, %v12559_v31  ;;  %v6811_v58 = vld [vmem:[#allocation10 + $0x4] ss:$8 sm:$0xf] }
 0xebb   :  { %v7631_v54 = vmul.f32 %v12571_v22, %v12571_v22  ;;  %v7633_v57 = vmul.f32 %v12574_v32, %v12574_v32  ;;  %v7629_v62 = vmul.f32 %v12568_v26, %v12568_v26 }
 0xebc   :  { %v7632_v7 = vmul.f32 %v12577_v33, %v12577_v33  ;;  %v7634_v35 = vmul.f32 %v12580_v45, %v12580_v45  ;;  %v7499_v46 = vpop.f32.mrb[98].mxu0  ;;  %v7594_v42 = vpop.f32.mrb[98].mxu1 }
 0xebd   :  { %v7501_v60 = vpop.f32.mrb[99].mxu0  ;;  %v7596_v29 = vpop.f32.mrb[99].mxu1  ;;  %v9689_v24 = vpack.c.bf16 %v7631_v54, %v7627_v25  ;;  %v9697_v52 = vpack.c.bf16 %v7633_v57, %v7629_v62  ;;  %v12605_v23 = vsub.f32 %v12153_v4, %v7499_v46  ;;  %v12608_v20 = vsub.f32 %v12169_v11, %v7594_v42  ;;  %v12957_v11 = vld [vmem:[#allocation27_spill] sm:$0xff]  ;;  %v12971_v42 = vld [vmem:[#allocation22_spill] sm:$0xff] }
 0xebe   :  { %v12599_v56 = vsub.f32 %v12141_v21, %v7501_v60  ;;  %v12602_v30 = vsub.f32 %v12156_v55, %v7596_v29  ;;  %v9687_v27 = vpack.c.bf16 %v7632_v7, %v7628_v39  ;;  %v9695_v12 = vpack.c.bf16 %v7634_v35, %v7630_v18  ;;  %v12968_v54 = vld [vmem:[#allocation23_spill] sm:$0xff]  ;;  %v12969_v39 = vld [vmem:[#allocation24_spill] sm:$0xff]  ;;  %v12970_v35 = vld [vmem:[#allocation21_spill] sm:$0xff] }
 0xebf   :  { %v7635_v4 = vmul.f32 %v12605_v23, %v12605_v23  ;;  %v7637_v55 = vmul.f32 %v12608_v20, %v12608_v20  ;;  %v12705_v57 = vrot.slane %v6811_v58, %v12968_v54  ;;  %v12708_v18 = vrot.slane %v6811_v58, %v12969_v39  ;;  %v6813_v7 = vld [vmem:[#allocation10 + $0x5] ss:$8 sm:$0xf] }
 0xec0   :  { %v7636_v9 = vmul.f32 %v12599_v56, %v12599_v56  ;;  %v7638_v21 = vmul.f32 %v12602_v30, %v12602_v30  ;;  %9688 = vmatprep.subr.bf16.mxu0 %v9687_v27  ;;  %9696 = vmatprep.subr.bf16.mxu1 %v9695_v12  ;;  %v12711_v46 = vrot.slane %v6811_v58, %v12970_v35 }
 0xec1   :  { %9690 = vmatpush1.bf16.msra.mxu0 %v9689_v24  ;;  %9698 = vmatpush1.bf16.msra.mxu1 %v9697_v52  ;;  %v12714_v25 = vrot.slane %v6811_v58, %v12971_v42  ;;  %v12718_v27 = vrot.slane %v6813_v7, %v12968_v54  ;;  %v12722_v24 = vrot.slane %v6813_v7, %v12969_v39  ;;  %v12979_v58 = vld [vmem:[#allocation44_spill] sm:$0xff] }
 0xec2   :  { %9137 = vmatprep.subr.msk.mxu0 %vm1880_vm5, %v7636_v9  ;;  %9140 = vmatprep.subr.msk.mxu1 %vm1880_vm5, %v7638_v21 }
 0xec5   :  { %9138 = vmatpush1.msk.msra.mxu0 %vm1880_vm5, %v7635_v4  ;;  %9141 = vmatpush1.msk.msra.mxu1 %vm1880_vm5, %v7637_v55  ;;  %v12726_v4 = vrot.slane %v6813_v7, %v12970_v35 }
 0xec6   :  { %9139 = vmatmul.mubr.msk.f32.vlgmr.msra.gmra.mrb[100].mxu0 %vm1876_vm6, %v12158_v40  ;;  %9142 = vmatmul.mubr.msk.f32.vlgmr.msra.gmra.mrb[100].mxu1 %vm1876_vm6, %v12158_v40  ;;  %v12955_v40 = vld [vmem:[#allocation25_spill] sm:$0xff] }
 0xec7   :  { %9700 = vmatprep.subr.bf16.mxu0 %v12160_v63  ;;  %9732 = vmatprep.subr.bf16.mxu1 %v12173_v41  ;;  %v12956_v63 = vld [vmem:[#allocation26_spill] sm:$0xff]  ;;  %v12958_v41 = vld [vmem:[#allocation28_spill] sm:$0xff] }
 0xec8   :  { %9702 = vmatpush3.bf16.msra.mxu0 %v12175_v36  ;;  %9734 = vmatpush3.bf16.msra.mxu1 %v12181_v6  ;;  %v12959_v36 = vld [vmem:[#allocation29_spill] sm:$0xff] }
 0xec9   :  { %9704 = vmatprep.subr.bf16.mxu0 %v12183_v51  ;;  %9736 = vmatprep.subr.bf16.mxu1 %v12198_v47 }
 0xecc   :  { %9706 = vmatpush3.bf16.msra.mxu0 %v12220_v10  ;;  %9738 = vmatpush3.bf16.msra.mxu1 %v12224_v61  ;;  %v12960_v61 = vld [vmem:[#allocation30_spill] sm:$0xff] }
 0xecd   :  { %9708 = vmatprep.subr.bf16.mxu0 %v12226_v15  ;;  %9740 = vmatprep.subr.bf16.mxu1 %v12238_v1  ;;  %v12961_v15 = vmov 0.0   ;;  %v12962_v1 = vld [vmem:[#allocation31_spill] sm:$0xff] }
 0xed0   :  { %9710 = vmatpush3.bf16.msra.mxu0 %v12256_v44  ;;  %9742 = vmatpush3.bf16.msra.mxu1 %v12260_v13 }
 0xed1   :  { %9712 = vmatprep.subr.bf16.mxu0 %v12262_v8  ;;  %9744 = vmatprep.subr.bf16.mxu1 %v12274_v19 }
 0xed4   :  { %9714 = vmatpush3.bf16.msra.mxu0 %v12292_v37  ;;  %9746 = vmatpush3.bf16.msra.mxu1 %v12296_v38 }
 0xed5   :  { %9716 = vmatprep.subr.bf16.mxu0 %v12298_v14  ;;  %9748 = vmatprep.subr.bf16.mxu1 %v12310_v49 }
 0xed8   :  { %9718 = vmatpush3.bf16.msra.mxu0 %v12328_v28  ;;  %9750 = vmatpush3.bf16.msra.mxu1 %v12332_v34 }
 0xed9   :  { %9720 = vmatprep.subr.bf16.mxu0 %v12334_v2  ;;  %9752 = vmatprep.subr.bf16.mxu1 %v12346_v5 }
 0xedc   :  { %9722 = vmatpush3.bf16.msra.mxu0 %v12364_v48  ;;  %9754 = vmatpush3.bf16.msra.mxu1 %v12368_v59 }
 0xedd   :  { %9724 = vmatprep.subr.bf16.mxu0 %v12370_v50  ;;  %9756 = vmatprep.subr.bf16.mxu1 %v12382_v0  ;;  %v12963_v50 = vld [vmem:[#allocation32_spill] sm:$0xff]  ;;  %v12964_v0 = vld [vmem:[#allocation33_spill] sm:$0xff] }
 0xee0   :  { %9726 = vmatpush3.bf16.msra.mxu0 %v12400_v3  ;;  %9758 = vmatpush3.bf16.msra.mxu1 %v12404_v17  ;;  %v12965_v3 = vld [vmem:[#allocation34_spill] sm:$0xff]  ;;  %v12966_v17 = vld [vmem:[#allocation35_spill] sm:$0xff] }
 0xee1   :  { %9728 = vmatprep.subr.bf16.mxu0 %v12406_v53  ;;  %9760 = vmatprep.subr.bf16.mxu1 %v12955_v40  ;;  %v12967_v53 = vld [vmem:[#allocation36_spill] sm:$0xff]  ;;  %v12730_v40 = vrot.slane %v6813_v7, %v12971_v42 }
 0xee4   :  { %9730 = vmatpush3.bf16.msra.mxu0 %v12956_v63  ;;  %9762 = vmatpush3.bf16.msra.mxu1 %v12957_v11  ;;  %v12972_v63 = vld [vmem:[#allocation37_spill] sm:$0xff] }
 0xee5   :  { %9143 = vmatprep.subr.msk.mxu0 %vm2250_vm7, %v12958_v41  ;;  %9146 = vmatprep.subr.msk.mxu1 %vm2250_vm7, %v12959_v36  ;;  %v12973_v41 = vld [vmem:[#allocation38_spill] sm:$0xff] }
 0xf99   :  { %v7717_v6 = vpop.f32.mrb[100].mxu0  ;;  %v7788_v51 = vpop.f32.mrb[100].mxu1 }
 0xf9a   :  { %v7719_v47 = vpop.f32.mrb[101].mxu0  ;;  %v7790_v10 = vpop.f32.mrb[101].mxu1 }
 0xf9b   :  { %7857 = vmatprep.mubr.f32.mxu0 %v7719_v47  ;;  %7927 = vmatprep.mubr.f32.mxu1 %v7790_v10  ;;  %v12975_v47 = vld [vmem:[#allocation40_spill] sm:$0xff] }
 0xf9c   :  { %7858 = vmatmul.mubr.f32.vlgmr.msra.gmra.mrb[102].mxu0 %v7717_v6  ;;  %7928 = vmatmul.mubr.f32.vlgmr.msra.gmra.mrb[102].mxu1 %v7788_v51  ;;  %v12974_v6 = vld [vmem:[#allocation39_spill] sm:$0xff] }
 0xf9d   :  { %9144 = vmatpush1.msk.msra.mxu0 %vm2250_vm7, %v12960_v61  ;;  %8003 = vmatprep.mubr.f32.mxu0 %v12961_v15 }
 0xf9e   :  { %9147 = vmatpush1.msk.msra.mxu1 %vm2250_vm7, %v12962_v1  ;;  %8074 = vmatprep.mubr.f32.mxu1 %v12961_v15 }
0x106f   :  { %v9405_v44 = vpop.f32.mrb[102].mxu0  ;;  %v9440_v13 = vpop.f32.mrb[102].mxu1 }
0x1070   :  { %v9406_v8 = vpop.f32.mrb[103].mxu0  ;;  %v9441_v19 = vpop.f32.mrb[103].mxu1 }
0x1071   :  { %v9407_v37 = vadd.f32 %v9406_v8, %v9405_v44  ;;  %v9442_v38 = vadd.f32 %v9441_v19, %v9440_v13 }
0x1073   :  { %v7930_v14 = vadd.f32 %v9442_v38, %v9407_v37 }
0x1075   :  { %v7933_v49 = vmul.f32 0.00048828125, %v7930_v14 }
0x1077   :  { %v7934_v28 = vadd.f32 1e-05, %v7933_v49 }
0x1079   :  { %10757 = vrsqrt.f32 %v7934_v28 }
0x1083   :  { %v10758_v34 = vpop.eup %10757 }
0x1084   :  { %9145 = vmatmul.mubr.msk.f32.vlgmr.msra.gmra.mrb[104].mxu0 %vm2246_vm8, %v10758_v34  ;;  %9148 = vmatmul.mubr.msk.f32.vlgmr.msra.gmra.mrb[104].mxu1 %vm2246_vm8, %v10758_v34 }
0x1085   :  { %8157 = vmatprep.mubr.f32.mxu0 %v12961_v15  ;;  %8252 = vmatprep.mubr.f32.mxu1 %v12961_v15 }
0x1157   :  { %v8005_v2 = vpop.f32.mrb[104].mxu0  ;;  %v8076_v5 = vpop.f32.mrb[104].mxu1 }
0x1158   :  { %v8007_v48 = vpop.f32.mrb[105].mxu0  ;;  %v8078_v59 = vpop.f32.mrb[105].mxu1 }
0x1159   :  { %9149 = vmatprep.subr.msk.mxu0 %vm1880_vm5, %v8007_v48  ;;  %9156 = vmatprep.subr.msk.mxu1 %vm1880_vm5, %v8078_v59  ;;  %v12977_v59 = vld [vmem:[#allocation42_spill] sm:$0xff] }
0x115a   :  { %9150 = vmatpush1.msk.msra.mxu0 %vm1880_vm5, %v8005_v2  ;;  %9157 = vmatpush1.msk.msra.mxu1 %vm1880_vm5, %v8076_v5  ;;  %v12976_v5 = vld [vmem:[#allocation41_spill] sm:$0xff] }
0x115b   :  { %9151 = vmatmul.mubr.msk.f32.vlgmr.msra.gmra.mrb[106].mxu0 %vm2401_vm9, %v12963_v50  ;;  %9158 = vmatmul.mubr.msk.f32.vlgmr.msra.gmra.mrb[106].mxu1 %vm2401_vm9, %v12963_v50 }
0x115c   :  { %8163 = vmatprep.mubr.f32.mxu0 %v12961_v15  ;;  %8258 = vmatprep.mubr.f32.mxu1 %v12961_v15 }
0x115f   :  { %9152 = vmatmul.mubr.msk.f32.gmra.mrb[108].mxu0 %vm2401_vm9, %v12964_v0  ;;  %9159 = vmatmul.mubr.msk.f32.gmra.mrb[108].mxu1 %vm2401_vm9, %v12964_v0 }
0x1160   :  { %8169 = vmatprep.mubr.f32.mxu0 %v12961_v15  ;;  %8264 = vmatprep.mubr.f32.mxu1 %v12961_v15 }
0x1163   :  { %9153 = vmatmul.mubr.msk.f32.gmra.mrb[110].mxu0 %vm2401_vm9, %v12965_v3  ;;  %9160 = vmatmul.mubr.msk.f32.gmra.mrb[110].mxu1 %vm2401_vm9, %v12965_v3 }
0x1164   :  { %8175 = vmatprep.mubr.f32.mxu0 %v12961_v15  ;;  %8270 = vmatprep.mubr.f32.mxu1 %v12961_v15 }
0x1167   :  { %9154 = vmatmul.mubr.msk.f32.gmra.mrb[112].mxu0 %vm2401_vm9, %v12966_v17  ;;  %9161 = vmatmul.mubr.msk.f32.gmra.mrb[112].mxu1 %vm2401_vm9, %v12966_v17  ;;  %v12978_v17 = vld [vmem:[#allocation43_spill] sm:$0xff] }
0x1168   :  { %8181 = vmatprep.mubr.f32.mxu0 %v12961_v15  ;;  %8276 = vmatprep.mubr.f32.mxu1 %v12961_v15 }
0x116b   :  { %9155 = vmatmul.mubr.msk.f32.gmra.mrb[114].mxu0 %vm2401_vm9, %v12967_v53  ;;  %9162 = vmatmul.mubr.msk.f32.gmra.mrb[114].mxu1 %vm2401_vm9, %v12967_v53 }
0x122e   :  { %v8159_v62 = vpop.f32.mrb[106].mxu0  ;;  %v8254_v60 = vpop.f32.mrb[106].mxu1 }
0x122f   :  { %v8304_v29 = vmul.f32 %v12705_v57, %v8159_v62  ;;  %v8306_v12 = vmul.f32 %v12708_v18, %v8254_v60  ;;  %v8161_v52 = vpop.f32.mrb[107].mxu0  ;;  %v8256_v9 = vpop.f32.mrb[107].mxu1 }
0x1230   :  { %v8305_v21 = vmul.f32 %v12711_v46, %v8161_v52  ;;  %v8307_v55 = vmul.f32 %v12714_v25, %v8256_v9 }
0x1231   :  { %v8324_v11 = vmul.f32 %v8304_v29, %v12972_v63  ;;  %v8326_v36 = vmul.f32 %v8306_v12, %v12973_v41 }
0x1232   :  { %v8325_v51 = vmul.f32 %v8305_v21, %v12974_v6  ;;  %v8327_v10 = vmul.f32 %v8307_v55, %v12975_v47  ;;  %v8165_v61 = vpop.f32.mrb[108].mxu0  ;;  %v8260_v15 = vpop.f32.mrb[108].mxu1 }
0x1233   :  { %v8365_v1 = vadd.f32 %v12718_v27, %v8324_v11  ;;  %v8367_v44 = vadd.f32 %v12722_v24, %v8326_v36  ;;  %v8308_v13 = vmul.f32 %v12705_v57, %v8165_v61  ;;  %v8310_v8 = vmul.f32 %v12708_v18, %v8260_v15  ;;  %v8167_v19 = vpop.f32.mrb[109].mxu0  ;;  %v8262_v37 = vpop.f32.mrb[109].mxu1 }
0x1234   :  { %v8366_v38 = vadd.f32 %v12726_v4, %v8325_v51  ;;  %v8368_v14 = vadd.f32 %v12730_v40, %v8327_v10  ;;  %v8309_v49 = vmul.f32 %v12711_v46, %v8167_v19  ;;  %v8311_v28 = vmul.f32 %v12714_v25, %v8262_v37 }
0x1235   :  { %v8385_v34 = vmax.f32 %v8365_v1, 0.0  ;;  %v8387_v2 = vmax.f32 %v8367_v44, 0.0  ;;  %v8328_v48 = vmul.f32 %v8308_v13, %v12976_v5  ;;  %v8330_v50 = vmul.f32 %v8310_v8, %v12977_v59 }
0x1236   :  { %v8386_v0 = vmax.f32 %v8366_v38, 0.0  ;;  %v8388_v3 = vmax.f32 %v8368_v14, 0.0  ;;  %v8329_v53 = vmul.f32 %v8309_v49, %v12978_v17  ;;  %v8331_v54 = vmul.f32 %v8311_v28, %v12979_v58  ;;  %v8171_v39 = vpop.f32.mrb[110].mxu0  ;;  %v8266_v7 = vpop.f32.mrb[110].mxu1 }
0x1237   :  { %8405 = vst [vmem:[#allocation15] sm:$0xff] %v8385_v34  ;;  %8407 = vst [vmem:[#allocation15 + $0x10] sm:$0xff] %v8387_v2  ;;  %v8369_v35 = vadd.f32 %v12718_v27, %v8328_v48  ;;  %v8371_v42 = vadd.f32 %v12722_v24, %v8330_v50  ;;  %v8312_v62 = vmul.f32 %v12705_v57, %v8171_v39  ;;  %v8173_v29 = vpop.f32.mrb[111].mxu0  ;;  %v8268_v12 = vpop.f32.mrb[111].mxu1 }
0x1238   :  { %v8314_v60 = vmul.f32 %v12708_v18, %v8266_v7  ;;  %8406 = vst [vmem:[#allocation15 + $0x8] sm:$0xff] %v8386_v0  ;;  %8408 = vst [vmem:[#allocation15 + $0x18] sm:$0xff] %v8388_v3  ;;  %v8370_v52 = vadd.f32 %v12726_v4, %v8329_v53  ;;  %v8372_v9 = vadd.f32 %v12730_v40, %v8331_v54 }
0x1239   :  { %v8313_v21 = vmul.f32 %v12711_v46, %v8173_v29  ;;  %v8315_v55 = vmul.f32 %v12714_v25, %v8268_v12  ;;  %v8389_v63 = vmax.f32 %v8369_v35, 0.0  ;;  %v8391_v11 = vmax.f32 %v8371_v42, 0.0 }
0x123a   :  { %v8332_v41 = vmul.f32 %v8312_v62, %v12559_v31  ;;  %v8334_v36 = vmul.f32 %v8314_v60, %v12568_v26  ;;  %v8390_v6 = vmax.f32 %v8370_v52, 0.0  ;;  %v8392_v51 = vmax.f32 %v8372_v9, 0.0  ;;  %v8177_v61 = vpop.f32.mrb[112].mxu0  ;;  %v8272_v15 = vpop.f32.mrb[112].mxu1 }
0x123b   :  { %v8333_v47 = vmul.f32 %v8313_v21, %v12562_v43  ;;  %v8335_v10 = vmul.f32 %v8315_v55, %v12565_v16  ;;  %8409 = vst [vmem:[#allocation15 + $0x20] sm:$0xff] %v8389_v63  ;;  %8411 = vst [vmem:[#allocation15 + $0x30] sm:$0xff] %v8391_v11  ;;  %v8316_v13 = vmul.f32 %v12705_v57, %v8177_v61  ;;  %v8179_v26 = vpop.f32.mrb[113].mxu0  ;;  %v8274_v8 = vpop.f32.mrb[113].mxu1 }
0x123c   :  { %v8373_v1 = vadd.f32 %v12718_v27, %v8332_v41  ;;  %v8375_v44 = vadd.f32 %v12722_v24, %v8334_v36  ;;  %v8318_v31 = vmul.f32 %v12708_v18, %v8272_v15  ;;  %8410 = vst [vmem:[#allocation15 + $0x28] sm:$0xff] %v8390_v6  ;;  %8412 = vst [vmem:[#allocation15 + $0x38] sm:$0xff] %v8392_v51 }
0x123d   :  { %v8374_v43 = vadd.f32 %v12726_v4, %v8333_v47  ;;  %v8376_v16 = vadd.f32 %v12730_v40, %v8335_v10  ;;  %v8317_v19 = vmul.f32 %v12711_v46, %v8179_v26  ;;  %v8319_v37 = vmul.f32 %v12714_v25, %v8274_v8 }
0x123e   :  { %v8393_v38 = vmax.f32 %v8373_v1, 0.0  ;;  %v8395_v14 = vmax.f32 %v8375_v44, 0.0  ;;  %v8336_v49 = vmul.f32 %v8316_v13, %v12571_v22  ;;  %v8338_v28 = vmul.f32 %v8318_v31, %v12574_v32  ;;  %v8183_v59 = vpop.f32.mrb[114].mxu0  ;;  %v8278_v50 = vpop.f32.mrb[114].mxu1 }
0x123f   :  { %v8394_v34 = vmax.f32 %v8374_v43, 0.0  ;;  %v8396_v2 = vmax.f32 %v8376_v16, 0.0  ;;  %v8337_v5 = vmul.f32 %v8317_v19, %v12577_v33  ;;  %v8339_v48 = vmul.f32 %v8319_v37, %v12580_v45  ;;  %v8185_v58 = vpop.f32.mrb[115].mxu0  ;;  %v8280_v54 = vpop.f32.mrb[115].mxu1 }
0x1240   :  { %v8426_v0 = vrot.slane %v8393_v38, 2  ;;  %v8432_v3 = vrot.slane %v8395_v14, 2  ;;  %v8377_v17 = vadd.f32 %v12718_v27, %v8336_v49  ;;  %v8379_v53 = vadd.f32 %v12722_v24, %v8338_v28 }
0x1241   :  { %v8429_v39 = vrot.slane %v8394_v34, 2  ;;  %v8435_v22 = vrot.slane %v8396_v2, 2  ;;  %v8378_v32 = vadd.f32 %v12726_v4, %v8337_v5  ;;  %v8380_v7 = vadd.f32 %v12730_v40, %v8339_v48 }
0x1242   :  { %v8397_v35 = vmax.f32 %v8377_v17, 0.0  ;;  %v8399_v33 = vmax.f32 %v8379_v53, 0.0  ;;  %v8320_v45 = vmul.f32 %v12705_v57, %v8183_v59  ;;  %v8322_v42 = vmul.f32 %v12708_v18, %v8278_v50 }
0x1243   :  { %v8398_v62 = vmax.f32 %v8378_v32, 0.0  ;;  %v8400_v60 = vmax.f32 %v8380_v7, 0.0  ;;  %v8321_v29 = vmul.f32 %v12711_v46, %v8185_v58  ;;  %v8323_v12 = vmul.f32 %v12714_v25, %v8280_v54 }
0x1244   :  { %v8427_v52 = vrot.slane %v8397_v35, 2  ;;  %v8433_v9 = vrot.slane %v8399_v33, 2  ;;  %v8340_v21 = vmul.f32 %v8320_v45, %v12605_v23  ;;  %v8342_v55 = vmul.f32 %v8322_v42, %v12608_v20 }
0x1245   :  { %v8430_v63 = vrot.slane %v8398_v62, 2  ;;  %v8436_v11 = vrot.slane %v8400_v60, 2  ;;  %v8341_v41 = vmul.f32 %v8321_v29, %v12599_v56  ;;  %v8343_v57 = vmul.f32 %v8323_v12, %v12602_v30 }
0x1246   :  { %v8428_v18 = vsel %vm8425_vm11, %v8426_v0, %v8427_v52  ;;  %v8434_v36 = vsel %vm8425_vm11, %v8432_v3, %v8433_v9  ;;  %v8381_v46 = vadd.f32 %v12718_v27, %v8340_v21  ;;  %v8383_v25 = vadd.f32 %v12722_v24, %v8342_v55 }
0x1247   :  { %8455 = vst [vmem:[#allocation15 + $0x40] sm:$0xff] %v8428_v18  ;;  %8457 = vst [vmem:[#allocation15 + $0x50] sm:$0xff] %v8434_v36  ;;  %v8431_v23 = vsel %vm8425_vm11, %v8429_v39, %v8430_v63  ;;  %v8437_v20 = vsel %vm8425_vm11, %v8435_v22, %v8436_v11  ;;  %v8382_v6 = vadd.f32 %v12726_v4, %v8341_v41 }
0x1248   :  { %v8384_v56 = vadd.f32 %v12730_v40, %v8343_v57  ;;  %8456 = vst [vmem:[#allocation15 + $0x48] sm:$0xff] %v8431_v23  ;;  %8458 = vst [vmem:[#allocation15 + $0x58] sm:$0xff] %v8437_v20  ;;  %v8401_v30 = vmax.f32 %v8381_v46, 0.0  ;;  %v8403_v51 = vmax.f32 %v8383_v25, 0.0 }
0x1249   :  { %v8402_v47 = vmax.f32 %v8382_v6, 0.0 }
0x124a   :  { %v8404_v10 = vmax.f32 %v8384_v56, 0.0  ;;  %v8438_v27 = vrot.slane %v8401_v30, 2  ;;  %v8442_v24 = vrot.slane %v8403_v51, 2 }
0x124b   :  { %v8440_v61 = vrot.slane %v8402_v47, 2 }
0x124c   :  { %v8444_v15 = vrot.slane %v8404_v10, 2  ;;  %v8439_v1 = vsel %vm8425_vm11, %v8427_v52, %v8438_v27  ;;  %v8443_v44 = vsel %vm8425_vm11, %v8433_v9, %v8442_v24 }
0x124d   :  { %8459 = vst [vmem:[#allocation15 + $0x60] sm:$0xff] %v8439_v1  ;;  %8461 = vst [vmem:[#allocation15 + $0x70] sm:$0xff] %v8443_v44  ;;  %v8441_v4 = vsel %vm8425_vm11, %v8430_v63, %v8440_v61 }
0x124e   :  { %v8445_v40 = vsel %vm8425_vm11, %v8436_v11, %v8444_v15  ;;  %8460 = vst [vmem:[#allocation15 + $0x68] sm:$0xff] %v8441_v4 }
0x124f   :  { %8462 = vst [vmem:[#allocation15 + $0x78] sm:$0xff] %v8445_v40 }
0x1250   :  { %10907 = shalt.err (!%p10904_p10)
}
0x1251   :  { %s10908_s1 = scalar_lea.hbm %s12816_s8, 2048 }
0x1252   :  { %p10909_p11 = scmp.ne.s32.totalorder %s12816_s8, %s10908_s1  ;;  %p10912_p12 = scmp.lt.u32.totalorder %s10908_s1, %s12816_s8 }
0x1254   :  { %p10914_p13 = pnand %p10912_p12, %p10909_p11 }
0x1256   :  { %10917 = shalt.err (!%p10914_p13)
}
0x1257   :  { %s10938_s10 = smov 512   ;;  %s10939_s11 = smov 32  }
0x1258   :  { %8474 = dma.vmem_to_hbm [thread:$0]  %s8469_s26, 2048, %s12816_s8, [#allocation6], %s10938_s10, %s10938_s10, %s10939_s11  }
0x1259   :  { %10926 = dma.done.wait [#allocation6], 2048  }
0x125a   :  { %10927 = vsyncadd [#allocation6], 4294965248 }
0x125b   :  { %8478 = vsyncpa [#allocation5], 1 }
0x125c   :  { %8479 = vsyncpa [#allocation8], 1 }
0x125d   :  { %8480 = vsyncpa [#allocation11], 1 }
0x125e   :  { %8481 = vsyncpa [#allocation14], 1 }
0x125f   :  { %8482 = vsyncpa [#allocation6], 1 }

</bundles_post_ra>
